<compile_context>
chip_gen: v7x
topology: tpu7x:2x2x1
jax: 0.10.0
libtpu: 0.0.40
codegen_flags: <defaults>
</compile_context>

<pallas_src>
import functools
import math

import jax
import jax.numpy as jnp
from jax import lax
from jax.experimental import pallas as pl
from jax.experimental.pallas import tpu as pltpu

_MASK_VALUE = -1e30

_PAR2 = pltpu.CompilerParams(dimension_semantics=("parallel", "parallel"))
_PAR3 = pltpu.CompilerParams(dimension_semantics=("parallel", "parallel", "parallel"))


# ---------------------------------------------------------------------------
# In-kernel helpers
# ---------------------------------------------------------------------------
def _erf_approx(x):
    """Abramowitz & Stegun 7.1.26 erf approximation (|err| < 1.5e-7).

    Keeps nn.GELU (exact erf) semantics to f32 accuracy while only using ops
    with guaranteed Mosaic lowerings (exp / mul / add / where / abs).
    """
    p = 0.3275911
    a1, a2, a3, a4, a5 = (0.254829592, -0.284496736, 1.421413741,
                          -1.453152027, 1.061405429)
    ax = jnp.abs(x)
    t = 1.0 / (1.0 + p * ax)
    poly = ((((a5 * t + a4) * t + a3) * t + a2) * t + a1) * t
    r = 1.0 - poly * jnp.exp(-ax * ax)
    return jnp.where(x >= 0, r, -r)


def _gelu(x):
    return 0.5 * x * (1.0 + _erf_approx(x * (1.0 / math.sqrt(2.0))))


def _channel_layernorm(y, g, b, eps):
    """LayerNorm over the channel (sublane) axis of a (C, tT) tile."""
    mu = jnp.mean(y, axis=0, keepdims=True)
    r = y - mu
    sigma = jnp.mean(r * r, axis=0, keepdims=True)
    return r * lax.rsqrt(sigma + eps) * g + b


# ---------------------------------------------------------------------------
# Kernels
# ---------------------------------------------------------------------------
def _ln_qkv_kernel(x_ref, hl_ref, hr_ref, m_ref, g1_ref, b1_ref,
                   wc_ref, ng_ref, nb_ref, wp_ref, bp_ref,
                   q_ref, k_ref, v_ref, *, eps):
    """Fused ln1 -> depthwise conv(k=3, no bias) -> mask -> LN -> 1x1 proj for q/k/v."""
    x = x_ref[0].astype(jnp.float32)                        # (C, tT)
    C, tT = x.shape
    g1, b1 = g1_ref[...], b1_ref[...]
    x_ln = _channel_layernorm(x, g1, b1, eps)
    # Halo columns hold RAW x[:, j*tT - 1] / x[:, (j+1)*tT]; apply ln1 in-kernel
    # (LayerNorm is per-timestep so this is exact) and zero them at the sequence
    # boundaries to reproduce the conv's zero padding.
    hl = _channel_layernorm(hl_ref[0, 0].astype(jnp.float32), g1, b1, eps)   # (C, 1)
    hr = _channel_layernorm(hr_ref[0, 0].astype(jnp.float32), g1, b1, eps)   # (C, 1)
    j = pl.program_id(1)
    hl = hl * jnp.where(j > 0, 1.0, 0.0)
    hr = hr * jnp.where(j < pl.num_programs(1) - 1, 1.0, 0.0)
    col = lax.broadcasted_iota(jnp.int32, (C, tT), 1)
    # x_ln[t-1]: lane-rotate right, patch column 0 with the left halo.
    x_prev = jnp.where(col == 0, hl, pltpu.roll(x_ln, shift=1, axis=1))
    # x_ln[t+1]: lane-rotate left (shift by tT-1 == -1), patch last col with halo.
    x_next = jnp.where(col == tT - 1, hr, pltpu.roll(x_ln, shift=tT - 1, axis=1))
    m = m_ref[0].astype(jnp.float32)                        # (1, tT)
    out_refs = (q_ref, k_ref, v_ref)
    for idx in range(3):                                    # static unroll: q, k, v
        wc = wc_ref[idx].astype(jnp.float32)                # (C, 3)
        y = x_prev * wc[:, 0:1] + x_ln * wc[:, 1:2] + x_next * wc[:, 2:3]
        y = _channel_layernorm(y * m, ng_ref[idx], nb_ref[idx], eps)
        y = jnp.dot(wp_ref[idx], y, preferred_element_type=jnp.float32) + bp_ref[idx]
        out_refs[idx][0] = y.astype(out_refs[idx].dtype)


def _attention_kernel(q_ref, k_ref, v_ref, m_ref, o_ref, *, scale):
    """Masked softmax attention for one (batch, head, query-tile)."""
    q = q_ref[0].astype(jnp.float32) * scale                # (nc, tq)
    k = k_ref[0].astype(jnp.float32)                        # (nc, T)
    v = v_ref[0].astype(jnp.float32)                        # (nc, T)
    m = m_ref[0].astype(jnp.float32)                        # (1, T)
    # att[i, j] = sum_d q[d, i] * k[d, j]
    att = lax.dot_general(q, k, (((0,), (0,)), ((), ())),
                          preferred_element_type=jnp.float32)        # (tq, T)
    att = jnp.where(m > 0.0, att, _MASK_VALUE)
    att = att - jnp.max(att, axis=-1, keepdims=True)
    p = jnp.exp(att)
    p = p / jnp.sum(p, axis=-1, keepdims=True)
    # out[d, i] = sum_j (v*m)[d, j] * p[i, j]
    out = lax.dot_general(v * m, p, (((1,), (1,)), ((), ())),
                          preferred_element_type=jnp.float32)        # (nc, tq)
    o_ref[0] = out.astype(o_ref.dtype)
    # TODO(synk): switch to an online-softmax (flash) KV-tiled variant for very
    # long T so the (tq, T) score tile does not grow with sequence length.


def _ln_fc_gelu_kernel(x_ref, g_ref, b_ref, w_ref, bias_ref, o_ref, *, eps):
    """Fused ln2 -> 1x1 conv -> GELU."""
    x = x_ref[0].astype(jnp.float32)                        # (Cin, tT)
    y = _channel_layernorm(x, g_ref[...], b_ref[...], eps)
    y = jnp.dot(w_ref[...], y, preferred_element_type=jnp.float32) + bias_ref[...]
    o_ref[0] = _gelu(y).astype(o_ref.dtype)


def _pointwise_res_kernel(x_ref, w_ref, b_ref, m_ref, r_ref, o_ref, *, mask_residual):
    """1x1 conv -> mask -> (+ optionally masked) residual add."""
    x = x_ref[0].astype(jnp.float32)                        # (Cin, tT)
    m = m_ref[0].astype(jnp.float32)                        # (1, tT)
    y = (jnp.dot(w_ref[...], x, preferred_element_type=jnp.float32) + b_ref[...]) * m
    res = r_ref[0].astype(jnp.float32)                      # (Cout, tT)
    if mask_residual:
        res = res * m
    o_ref[0] = (y + res).astype(o_ref.dtype)


# ---------------------------------------------------------------------------
# pallas_call wrappers
# ---------------------------------------------------------------------------
def _ln_qkv(x, hl4, hr4, mask_f, g1, b1, wc, ng, nb, wp, bp, eps, tile_t):
    B, C, T = x.shape
    shp = jax.ShapeDtypeStruct((B, C, T), x.dtype)
    act_spec = pl.BlockSpec((1, C, tile_t), lambda i, j: (i, 0, j))
    return pl.pallas_call(
        functools.partial(_ln_qkv_kernel, eps=eps),
        out_shape=(shp, shp, shp),
        grid=(B, T // tile_t),
        in_specs=[
            act_spec,
            pl.BlockSpec((1, 1, C, 1), lambda i, j: (i, j, 0, 0)),
            pl.BlockSpec((1, 1, C, 1), lambda i, j: (i, j, 0, 0)),
            pl.BlockSpec((1, 1, tile_t), lambda i, j: (i, 0, j)),
            pl.BlockSpec((C, 1), lambda i, j: (0, 0)),
            pl.BlockSpec((C, 1), lambda i, j: (0, 0)),
            pl.BlockSpec((3, C, 3), lambda i, j: (0, 0, 0)),
            pl.BlockSpec((3, C, 1), lambda i, j: (0, 0, 0)),
            pl.BlockSpec((3, C, 1), lambda i, j: (0, 0, 0)),
            pl.BlockSpec((3, C, C), lambda i, j: (0, 0, 0)),
            pl.BlockSpec((3, C, 1), lambda i, j: (0, 0, 0)),
        ],
        out_specs=(act_spec, act_spec, act_spec),
        compiler_params=_PAR2,
    )(x, hl4, hr4, mask_f, g1, b1, wc, ng, nb, wp, bp)


def _attention(q, k, v, mask_f, n_head, tile_q):
    B, C, T = q.shape
    nc = C // n_head
    scale = 1.0 / math.sqrt(nc)
    return pl.pallas_call(
        functools.partial(_attention_kernel, scale=scale),
        out_shape=jax.ShapeDtypeStruct((B, C, T), q.dtype),
        grid=(B, n_head, T // tile_q),
        in_specs=[
            pl.BlockSpec((1, nc, tile_q), lambda b, h, j: (b, h, j)),
            pl.BlockSpec((1, nc, T), lambda b, h, j: (b, h, 0)),
            pl.BlockSpec((1, nc, T), lambda b, h, j: (b, h, 0)),
            pl.BlockSpec((1, 1, T), lambda b, h, j: (b, 0, 0)),
        ],
        out_specs=pl.BlockSpec((1, nc, tile_q), lambda b, h, j: (b, h, j)),
        compiler_params=_PAR3,
    )(q, k, v, mask_f)


def _ln_fc_gelu(x, g, b, w, bias, eps, tile_t):
    B, Cin, T = x.shape
    Cout = w.shape[0]
    return pl.pallas_call(
        functools.partial(_ln_fc_gelu_kernel, eps=eps),
        out_shape=jax.ShapeDtypeStruct((B, Cout, T), x.dtype),
        grid=(B, T // tile_t),
        in_specs=[
            pl.BlockSpec((1, Cin, tile_t), lambda i, j: (i, 0, j)),
            pl.BlockSpec((Cin, 1), lambda i, j: (0, 0)),
            pl.BlockSpec((Cin, 1), lambda i, j: (0, 0)),
            pl.BlockSpec((Cout, Cin), lambda i, j: (0, 0)),
            pl.BlockSpec((Cout, 1), lambda i, j: (0, 0)),
        ],
        out_specs=pl.BlockSpec((1, Cout, tile_t), lambda i, j: (i, 0, j)),
        compiler_params=_PAR2,
    )(x, g, b, w, bias)


def _pointwise_mask_res(x, w, b, mask_f, residual, mask_residual, tile_t):
    B, Cin, T = x.shape
    Cout = w.shape[0]
    return pl.pallas_call(
        functools.partial(_pointwise_res_kernel, mask_residual=mask_residual),
        out_shape=jax.ShapeDtypeStruct((B, Cout, T), x.dtype),
        grid=(B, T // tile_t),
        in_specs=[
            pl.BlockSpec((1, Cin, tile_t), lambda i, j: (i, 0, j)),
            pl.BlockSpec((Cout, Cin), lambda i, j: (0, 0)),
            pl.BlockSpec((Cout, 1), lambda i, j: (0, 0)),
            pl.BlockSpec((1, 1, tile_t), lambda i, j: (i, 0, j)),
            pl.BlockSpec((1, Cout, tile_t), lambda i, j: (i, 0, j)),
        ],
        out_specs=pl.BlockSpec((1, Cout, tile_t), lambda i, j: (i, 0, j)),
        compiler_params=_PAR2,
    )(x, w, b, mask_f, residual)


# ---------------------------------------------------------------------------
# Host-side helpers
# ---------------------------------------------------------------------------
def _make_halos(x, tile_t):
    """Left/right neighbour columns of every T-tile of x, shaped (B, nT, C, 1)."""
    B, C, T = x.shape
    zero = jnp.zeros((B, C, 1), x.dtype)
    lefts = x[:, :, tile_t - 1:T - 1:tile_t]        # column j*tT - 1, j = 1..nT-1
    rights = x[:, :, tile_t::tile_t]                # column (j+1)*tT, j = 0..nT-2
    hl = jnp.concatenate([zero, lefts], axis=2)     # (B, C, nT); placeholder at t = -1
    hr = jnp.concatenate([rights, zero], axis=2)    # (B, C, nT); placeholder at t = T
    hl = jnp.transpose(hl, (0, 2, 1))[..., None]    # (B, nT, C, 1)
    hr = jnp.transpose(hr, (0, 2, 1))[..., None]
    return hl, hr


def _pick_tile_t(C, n_hidden, T, itemsize=4, budget_bytes=8 * 1024 * 1024):
    """Largest 128-multiple lane tile whose double-buffered per-step activation
    blocks (heaviest fused kernel) stay comfortably inside the default scoped
    VMEM limit on v5e/v6e/v7x."""
    # per-lane-column f32 words, double-buffered:
    #   fused qkv: 1 input + 3 outputs of C  -> 8*C
    #   ln2+fc1  : C in + n_hidden out       -> 2*(C + n_hidden)
    #   fc2+res  : n_hidden in + C res + C o -> 2*(n_hidden + 2*C)
    cols = max(8 * C, 2 * (n_hidden + 2 * C))
    tt = (budget_bytes // (cols * itemsize)) // 128 * 128
    tt = min(max(tt, 128), 2048, T)
    while T % tt != 0:
        tt -= 128
    return tt


def _pick_tile_q(T, budget_bytes=4 * 1024 * 1024):
    """Query tile so the (tq, T) f32 score tile stays small."""
    tq = (budget_bytes // (4 * T)) // 128 * 128
    tq = min(max(tq, 128), T)
    while T % tq != 0:
        tq -= 128
    return tq


# ---------------------------------------------------------------------------
# Full TransformerBlock forward (Pallas)
# ---------------------------------------------------------------------------
def transformer_block(x, mask, params, *, n_head, eps=1e-5, tile_t=None, tile_q=None):
    """Inference forward of TransformerBlock (n_ds_strides=(1,1), global MHA).

    x: (B, C, T) float; mask: (B, 1, T) bool. Returns (out, out_mask)."""
    B, C, T = x.shape
    assert C % n_head == 0
    nc = C // n_head
    assert nc % 8 == 0 or n_head == 1, "head_dim should be a multiple of 8 on TPU"
    assert T % 128 == 0, "T must be a multiple of 128"
    # TODO(synk): zero-pad x/mask up to a 128 multiple (and slice the output)
    # to support arbitrary sequence lengths.

    n_hidden = params["fc1_w"].shape[0]
    tile_t = tile_t if tile_t is not None else _pick_tile_t(C, n_hidden, T)
    tile_q = tile_q if tile_q is not None else _pick_tile_q(T)
    assert T % tile_t == 0 and tile_t % 128 == 0
    assert T % tile_q == 0 and tile_q % 128 == 0

    f32 = jnp.float32
    mask_f = mask.astype(x.dtype)                           # (B, 1, T) 0/1

    def colv(v):                                            # (C,) -> (C, 1) f32
        return v.reshape(-1, 1).astype(f32)

    # 1) fused: ln1 -> {q,k,v} depthwise conv -> mask -> LayerNorm -> 1x1 proj
    hl4, hr4 = _make_halos(x, tile_t)
    wc = jnp.stack([params["q_conv_w"], params["k_conv_w"],
                    params["v_conv_w"]]).astype(f32)                     # (3, C, 3)
    ng = jnp.stack([params["q_norm_g"], params["k_norm_g"],
                    params["v_norm_g"]])[..., None].astype(f32)          # (3, C, 1)
    nb = jnp.stack([params["q_norm_b"], params["k_norm_b"],
                    params["v_norm_b"]])[..., None].astype(f32)          # (3, C, 1)
    wp = jnp.stack([params["q_proj_w"], params["k_proj_w"],
                    params["v_proj_w"]]).astype(f32)                     # (3, C, C)
    bp = jnp.stack([params["q_proj_b"], params["k_proj_b"],
                    params["v_proj_b"]])[..., None].astype(f32)          # (3, C, 1)
    q, k, v = _ln_qkv(x, hl4, hr4, mask_f,
                      colv(params["ln1_g"]), colv(params["ln1_b"]),
                      wc, ng, nb, wp, bp, eps, tile_t)

    # 2) masked multi-head attention
    att = _attention(q, k, v, mask_f, n_head, tile_q)

    # 3) output projection + mask + skip (pool_skip == Identity, drop_path == Identity)
    out1 = _pointwise_mask_res(att, params["proj_w"].astype(f32),
                               colv(params["proj_b"]), mask_f, x,
                               mask_residual=True, tile_t=tile_t)

    # 4) MLP: fused ln2 -> 1x1 + GELU, then 1x1 + mask + residual
    h = _ln_fc_gelu(out1, colv(params["ln2_g"]), colv(params["ln2_b"]),
                    params["fc1_w"].astype(f32), colv(params["fc1_b"]), eps, tile_t)
    out = _pointwise_mask_res(h, params["fc2_w"].astype(f32),
                              colv(params["fc2_b"]), mask_f, out1,
                              mask_residual=False, tile_t=tile_t)
    # TODO(synk): optional pos_embd * mask addition (pos_embd=None in this config).
    return out, mask


# ---------------------------------------------------------------------------
# Pure-JAX reference (mirrors the PyTorch forward, eval mode)
# ---------------------------------------------------------------------------
def _ref_layer_norm(x, g, b, eps):
    mu = jnp.mean(x, axis=1, keepdims=True)
    r = x - mu
    s = jnp.mean(r * r, axis=1, keepdims=True)
    return r / jnp.sqrt(s + eps) * g.reshape(1, -1, 1) + b.reshape(1, -1, 1)


def _ref_dwconv3(x, w):
    xp = jnp.pad(x, ((0, 0), (0, 0), (1, 1)))
    return (xp[:, :, :-2] * w[None, :, 0:1]
            + xp[:, :, 1:-1] * w[None, :, 1:2]
            + xp[:, :, 2:] * w[None, :, 2:3])


def _ref_pointwise(x, w, b):
    return (jnp.einsum("oc,bct->bot", w, x, precision=lax.Precision.HIGHEST)
            + b.reshape(1, -1, 1))


def transformer_block_ref(x, mask, params, *, n_head, eps=1e-5):
    B, C, T = x.shape
    nc = C // n_head
    mask_f = mask.astype(x.dtype)

    xn = _ref_layer_norm(x, params["ln1_g"], params["ln1_b"], eps)

    def qkv(prefix):
        y = _ref_dwconv3(xn, params[prefix + "_conv_w"]) * mask_f
        y = _ref_layer_norm(y, params[prefix + "_norm_g"], params[prefix + "_norm_b"], eps)
        return _ref_pointwise(y, params[prefix + "_proj_w"], params[prefix + "_proj_b"])

    q, k, v = qkv("q"), qkv("k"), qkv("v")

    def heads(t):   # (B, C, T) -> (B, H, T, nc)
        return t.reshape(B, n_head, nc, T).transpose(0, 1, 3, 2)

    qh, kh, vh = heads(q), heads(k), heads(v)
    scale = 1.0 / math.sqrt(nc)
    att = jnp.einsum("bhid,bhjd->bhij", qh * scale, kh,
                     precision=lax.Precision.HIGHEST)
    att = jnp.where(mask_f[:, :, None, :] > 0, att, _MASK_VALUE)
    att = jax.nn.softmax(att, axis=-1)
    vm = vh * mask_f[:, :, :, None]
    out = jnp.einsum("bhij,bhjd->bhid", att, vm, precision=lax.Precision.HIGHEST)
    out = out.transpose(0, 1, 3, 2).reshape(B, C, T)

    out = _ref_pointwise(out, params["proj_w"], params["proj_b"]) * mask_f
    out = x * mask_f + out

    h = _ref_layer_norm(out, params["ln2_g"], params["ln2_b"], eps)
    h = jax.nn.gelu(_ref_pointwise(h, params["fc1_w"], params["fc1_b"]),
                    approximate=False)
    h = _ref_pointwise(h, params["fc2_w"], params["fc2_b"])
    out = out + h * mask_f
    return out, mask


# ---------------------------------------------------------------------------
# Self-test
# ---------------------------------------------------------------------------
if __name__ == "__main__":
    B, C, T = 2, 32, 256            # batch, embedding channels, sequence length
    n_head, n_hidden = 4, 128       # head_dim = 8, MLP hidden = 4 * C
    eps = 1e-5

    key = jax.random.PRNGKey(0)
    ks = list(jax.random.split(key, 32))

    def nrm(shape, scale=0.1):
        return scale * jax.random.normal(ks.pop(), shape, dtype=jnp.float32)

    params = {
        "ln1_g": 1.0 + nrm((C,)), "ln1_b": nrm((C,)),
        "ln2_g": 1.0 + nrm((C,)), "ln2_b": nrm((C,)),
        "proj_w": nrm((C, C), 1.0 / math.sqrt(C)), "proj_b": nrm((C,)),
        "fc1_w": nrm((n_hidden, C), 1.0 / math.sqrt(C)), "fc1_b": nrm((n_hidden,)),
        "fc2_w": nrm((C, n_hidden), 1.0 / math.sqrt(n_hidden)), "fc2_b": nrm((C,)),
    }
    for pfx in ("q", "k", "v"):
        params[pfx + "_conv_w"] = nrm((C, 3), 0.3)
        params[pfx + "_norm_g"] = 1.0 + nrm((C,))
        params[pfx + "_norm_b"] = nrm((C,))
        params[pfx + "_proj_w"] = nrm((C, C), 1.0 / math.sqrt(C))
        params[pfx + "_proj_b"] = nrm((C,))

    x = jax.random.normal(ks.pop(), (B, C, T), dtype=jnp.float32)
    lengths = jnp.array([T, 3 * T // 4], dtype=jnp.int32)
    mask = jnp.arange(T)[None, None, :] < lengths[:, None, None]   # (B, 1, T) bool

    # Force tile_t=128 / tile_q=128 so the multi-tile + halo path is exercised.
    run = jax.jit(functools.partial(transformer_block, n_head=n_head, eps=eps,
                                    tile_t=128, tile_q=128))
    out, out_mask = run(x, mask, params)
    out = jax.block_until_ready(out)

    ref_out, ref_mask = transformer_block_ref(x, mask, params, n_head=n_head, eps=eps)

    assert out.shape == (B, C, T)
    assert bool(jnp.array_equal(out_mask, ref_mask))
    assert bool(jnp.allclose(out, ref_out, atol=2e-3, rtol=2e-3))
    print("KERNEL_OK")
</pallas_src>

<mosaic_0001>
module attributes {stable_mosaic.version = 11 : i64} {
  func.func @_pointwise_res_kernel(%arg0: i32, %arg1: i32, %arg2: memref<1x32x128xf32, #tpu.memory_space<vmem>>, %arg3: memref<32x32xf32, #tpu.memory_space<vmem>>, %arg4: memref<32x1xf32, #tpu.memory_space<vmem>>, %arg5: memref<1x1x128xf32, #tpu.memory_space<vmem>>, %arg6: memref<1x32x128xf32, #tpu.memory_space<vmem>>, %arg7: memref<1x32x128xf32, #tpu.memory_space<vmem>>) attributes {dimension_semantics = [#tpu.dimension_semantics<parallel>, #tpu.dimension_semantics<parallel>], iteration_bounds = array<i64: 2, 2>, scalar_prefetch = 0 : i64, scratch_operands = 0 : i64, tpu.core_type = #tpu.core_type<tc>, window_params = [{transform_indices = @transform_0, window_bounds = array<i64: 1, 32, 128>}, {pipeline_mode = #tpu.pipeline_mode<synchronous>, transform_indices = @transform_1, window_bounds = array<i64: 32, 32>}, {pipeline_mode = #tpu.pipeline_mode<synchronous>, transform_indices = @transform_2, window_bounds = array<i64: 32, 1>}, {transform_indices = @transform_3, window_bounds = array<i64: 1, 1, 128>}, {transform_indices = @transform_4, window_bounds = array<i64: 1, 32, 128>}, {transform_indices = @transform_5, window_bounds = array<i64: 1, 32, 128>}]} {
    %c0 = arith.constant 0 : index
    %c0_0 = arith.constant 0 : index
    %c0_1 = arith.constant 0 : index
    %0 = vector.load %arg2[%c0, %c0_0, %c0_1] : memref<1x32x128xf32, #tpu.memory_space<vmem>>, vector<1x32x128xf32>
    %1 = vector.shape_cast %0 : vector<1x32x128xf32> to vector<32x128xf32>
    %c0_2 = arith.constant 0 : index
    %c0_3 = arith.constant 0 : index
    %c0_4 = arith.constant 0 : index
    %2 = vector.load %arg5[%c0_2, %c0_3, %c0_4] : memref<1x1x128xf32, #tpu.memory_space<vmem>>, vector<1x1x128xf32>
    %3 = vector.shape_cast %2 : vector<1x1x128xf32> to vector<1x128xf32>
    %c0_5 = arith.constant 0 : index
    %c0_6 = arith.constant 0 : index
    %4 = vector.load %arg3[%c0_5, %c0_6] : memref<32x32xf32, #tpu.memory_space<vmem>>, vector<32x32xf32>
    %cst = arith.constant dense<0.000000e+00> : vector<32x128xf32>
    %5 = tpu.matmul %4, %1, %cst {dimension_numbers = #tpu.dot_dimension_numbers<[1], [0], [0], [1], [0, 0, 1, 1], [], []>} : vector<32x32xf32>, vector<32x128xf32>, vector<32x128xf32> -> vector<32x128xf32>
    %c0_7 = arith.constant 0 : index
    %c0_8 = arith.constant 0 : index
    %6 = vector.load %arg4[%c0_7, %c0_8] : memref<32x1xf32, #tpu.memory_space<vmem>>, vector<32x1xf32>
    %7 = vector.broadcast %6 : vector<32x1xf32> to vector<32x128xf32>
    %8 = arith.addf %5, %7 : vector<32x128xf32>
    %9 = vector.broadcast %3 : vector<1x128xf32> to vector<32x128xf32>
    %10 = arith.mulf %8, %9 : vector<32x128xf32>
    %c0_9 = arith.constant 0 : index
    %c0_10 = arith.constant 0 : index
    %c0_11 = arith.constant 0 : index
    %11 = vector.load %arg6[%c0_9, %c0_10, %c0_11] : memref<1x32x128xf32, #tpu.memory_space<vmem>>, vector<1x32x128xf32>
    %12 = vector.shape_cast %11 : vector<1x32x128xf32> to vector<32x128xf32>
    %13 = vector.broadcast %3 : vector<1x128xf32> to vector<32x128xf32>
    %14 = arith.mulf %12, %13 : vector<32x128xf32>
    %15 = arith.addf %10, %14 : vector<32x128xf32>
    %c0_12 = arith.constant 0 : index
    %c0_13 = arith.constant 0 : index
    %c0_14 = arith.constant 0 : index
    %16 = vector.load %arg7[%c0_12, %c0_13, %c0_14] : memref<1x32x128xf32, #tpu.memory_space<vmem>>, vector<1x32x128xf32>
    %17 = vector.shape_cast %16 : vector<1x32x128xf32> to vector<32x128xf32>
    %18 = vector.shape_cast %15 : vector<32x128xf32> to vector<1x32x128xf32>
    tpu.vector_store %arg7[%c0_12, %c0_13, %c0_14], %18 {strides = array<i32>} : memref<1x32x128xf32, #tpu.memory_space<vmem>>, vector<1x32x128xf32>,
    return
  }
  func.func @transform_0(%arg0: i32, %arg1: i32) -> (i32, i32, i32) {
    %c0_i32 = arith.constant 0 : i32
    %c0_i32_0 = arith.constant 0 : i32
    return %arg0, %c0_i32, %arg1 : i32, i32, i32
  }
  func.func @transform_1(%arg0: i32, %arg1: i32) -> (i32, i32) {
    %c0_i32 = arith.constant 0 : i32
    %c0_i32_0 = arith.constant 0 : i32
    %c0_i32_1 = arith.constant 0 : i32
    return %c0_i32, %c0_i32_0 : i32, i32
  }
  func.func @transform_2(%arg0: i32, %arg1: i32) -> (i32, i32) {
    %c0_i32 = arith.constant 0 : i32
    %c0_i32_0 = arith.constant 0 : i32
    %c0_i32_1 = arith.constant 0 : i32
    return %c0_i32, %c0_i32_0 : i32, i32
  }
  func.func @transform_3(%arg0: i32, %arg1: i32) -> (i32, i32, i32) {
    %c0_i32 = arith.constant 0 : i32
    %c0_i32_0 = arith.constant 0 : i32
    return %arg0, %c0_i32, %arg1 : i32, i32, i32
  }
  func.func @transform_4(%arg0: i32, %arg1: i32) -> (i32, i32, i32) {
    %c0_i32 = arith.constant 0 : i32
    %c0_i32_0 = arith.constant 0 : i32
    return %arg0, %c0_i32, %arg1 : i32, i32, i32
  }
  func.func @transform_5(%arg0: i32, %arg1: i32) -> (i32, i32, i32) {
    %c0_i32 = arith.constant 0 : i32
    %c0_i32_0 = arith.constant 0 : i32
    return %arg0, %c0_i32, %arg1 : i32, i32, i32
  }
}

module attributes {stable_mosaic.version = 11 : i64} {
  func.func @_attention_kernel(%arg0: i32, %arg1: i32, %arg2: i32, %arg3: memref<1x8x128xf32, #tpu.memory_space<vmem>>, %arg4: memref<1x8x256xf32, #tpu.memory_space<vmem>>, %arg5: memref<1x8x256xf32, #tpu.memory_space<vmem>>, %arg6: memref<1x1x256xf32, #tpu.memory_space<vmem>>, %arg7: memref<1x8x128xf32, #tpu.memory_space<vmem>>) attributes {dimension_semantics = [#tpu.dimension_semantics<parallel>, #tpu.dimension_semantics<parallel>, #tpu.dimension_semantics<parallel>], iteration_bounds = array<i64: 2, 4, 2>, scalar_prefetch = 0 : i64, scratch_operands = 0 : i64, tpu.core_type = #tpu.core_type<tc>, window_params = [{transform_indices = @transform_0, window_bounds = array<i64: 1, 8, 128>}, {transform_indices = @transform_1, window_bounds = array<i64: 1, 8, 256>}, {transform_indices = @transform_2, window_bounds = array<i64: 1, 8, 256>}, {transform_indices = @transform_3, window_bounds = array<i64: 1, 1, 256>}, {transform_indices = @transform_4, window_bounds = array<i64: 1, 8, 128>}]} {
    %c0 = arith.constant 0 : index
    %c0_0 = arith.constant 0 : index
    %c0_1 = arith.constant 0 : index
    %0 = vector.load %arg3[%c0, %c0_0, %c0_1] : memref<1x8x128xf32, #tpu.memory_space<vmem>>, vector<1x8x128xf32>
    %1 = vector.shape_cast %0 : vector<1x8x128xf32> to vector<8x128xf32>
    %cst = arith.constant 0.353553385 : f32
    %2 = vector.broadcast %cst : f32 to vector<8x128xf32>
    %3 = arith.mulf %1, %2 : vector<8x128xf32>
    %c0_2 = arith.constant 0 : index
    %c0_3 = arith.constant 0 : index
    %c0_4 = arith.constant 0 : index
    %4 = vector.load %arg4[%c0_2, %c0_3, %c0_4] : memref<1x8x256xf32, #tpu.memory_space<vmem>>, vector<1x8x256xf32>
    %5 = vector.shape_cast %4 : vector<1x8x256xf32> to vector<8x256xf32>
    %c0_5 = arith.constant 0 : index
    %c0_6 = arith.constant 0 : index
    %c0_7 = arith.constant 0 : index
    %6 = vector.load %arg5[%c0_5, %c0_6, %c0_7] : memref<1x8x256xf32, #tpu.memory_space<vmem>>, vector<1x8x256xf32>
    %7 = vector.shape_cast %6 : vector<1x8x256xf32> to vector<8x256xf32>
    %c0_8 = arith.constant 0 : index
    %c0_9 = arith.constant 0 : index
    %c0_10 = arith.constant 0 : index
    %8 = vector.load %arg6[%c0_8, %c0_9, %c0_10] : memref<1x1x256xf32, #tpu.memory_space<vmem>>, vector<1x1x256xf32>
    %9 = vector.shape_cast %8 : vector<1x1x256xf32> to vector<1x256xf32>
    %cst_11 = arith.constant dense<0.000000e+00> : vector<128x256xf32>
    %10 = tpu.matmul %3, %5, %cst_11 {dimension_numbers = #tpu.dot_dimension_numbers<[0], [0], [1], [1], [0, 1, 1, 1], [], []>} : vector<8x128xf32>, vector<8x256xf32>, vector<128x256xf32> -> vector<128x256xf32>
    %cst_12 = arith.constant 0.000000e+00 : f32
    %11 = vector.broadcast %cst_12 : f32 to vector<1x256xf32>
    %12 = arith.cmpf ogt, %9, %11 : vector<1x256xf32>
    %cst_13 = arith.constant -1.000000e+30 : f32
    %13 = vector.shape_cast %12 : vector<1x256xi1> to vector<1x256xi1>
    %14 = vector.broadcast %13 : vector<1x256xi1> to vector<128x256xi1>
    %15 = vector.broadcast %cst_13 : f32 to vector<128x256xf32>
    %16 = arith.select %14, %10, %15 : vector<128x256xi1>, vector<128x256xf32>
    %cst_14 = arith.constant dense<0xFF800000> : vector<128xf32>
    %17 = vector.multi_reduction <maximumf>, %16, %cst_14 [1] : vector<128x256xf32> to vector<128xf32>
    %18 = vector.shape_cast %17 : vector<128xf32> to vector<128x1xf32>
    %19 = vector.broadcast %18 : vector<128x1xf32> to vector<128x256xf32>
    %20 = arith.subf %16, %19 : vector<128x256xf32>
    %21 = math.exp %20 : vector<128x256xf32>
    %cst_15 = arith.constant dense<0.000000e+00> : vector<128xf32>
    %22 = vector.multi_reduction <add>, %21, %cst_15 [1] : vector<128x256xf32> to vector<128xf32>
    %23 = vector.shape_cast %22 : vector<128xf32> to vector<128x1xf32>
    %24 = vector.broadcast %23 : vector<128x1xf32> to vector<128x256xf32>
    %25 = arith.divf %21, %24 : vector<128x256xf32>
    %26 = vector.broadcast %9 : vector<1x256xf32> to vector<8x256xf32>
    %27 = arith.mulf %7, %26 : vector<8x256xf32>
    %cst_16 = arith.constant dense<0.000000e+00> : vector<8x128xf32>
    %28 = tpu.matmul %27, %25, %cst_16 {dimension_numbers = #tpu.dot_dimension_numbers<[1], [1], [0], [0], [0, 0, 1, 0], [], []>} : vector<8x256xf32>, vector<128x256xf32>, vector<8x128xf32> -> vector<8x128xf32>
    %c0_17 = arith.constant 0 : index
    %c0_18 = arith.constant 0 : index
    %c0_19 = arith.constant 0 : index
    %29 = vector.load %arg7[%c0_17, %c0_18, %c0_19] : memref<1x8x128xf32, #tpu.memory_space<vmem>>, vector<1x8x128xf32>
    %30 = vector.shape_cast %29 : vector<1x8x128xf32> to vector<8x128xf32>
    %31 = vector.shape_cast %28 : vector<8x128xf32> to vector<1x8x128xf32>
    tpu.vector_store %arg7[%c0_17, %c0_18, %c0_19], %31 {strides = array<i32>} : memref<1x8x128xf32, #tpu.memory_space<vmem>>, vector<1x8x128xf32>,
    return
  }
  func.func @transform_0(%arg0: i32, %arg1: i32, %arg2: i32) -> (i32, i32, i32) {
    %c0_i32 = arith.constant 0 : i32
    return %arg0, %arg1, %arg2 : i32, i32, i32
  }
  func.func @transform_1(%arg0: i32, %arg1: i32, %arg2: i32) -> (i32, i32, i32) {
    %c0_i32 = arith.constant 0 : i32
    %c0_i32_0 = arith.constant 0 : i32
    return %arg0, %arg1, %c0_i32 : i32, i32, i32
  }
  func.func @transform_2(%arg0: i32, %arg1: i32, %arg2: i32) -> (i32, i32, i32) {
    %c0_i32 = arith.constant 0 : i32
    %c0_i32_0 = arith.constant 0 : i32
    return %arg0, %arg1, %c0_i32 : i32, i32, i32
  }
  func.func @transform_3(%arg0: i32, %arg1: i32, %arg2: i32) -> (i32, i32, i32) {
    %c0_i32 = arith.constant 0 : i32
    %c0_i32_0 = arith.constant 0 : i32
    %c0_i32_1 = arith.constant 0 : i32
    return %arg0, %c0_i32, %c0_i32_0 : i32, i32, i32
  }
  func.func @transform_4(%arg0: i32, %arg1: i32, %arg2: i32) -> (i32, i32, i32) {
    %c0_i32 = arith.constant 0 : i32
    return %arg0, %arg1, %arg2 : i32, i32, i32
  }
}

module attributes {stable_mosaic.version = 11 : i64} {
  func.func @_ln_qkv_kernel(%arg0: i32, %arg1: i32, %arg2: memref<1x32x128xf32, #tpu.memory_space<vmem>>, %arg3: memref<1x1x32x1xf32, #tpu.memory_space<vmem>>, %arg4: memref<1x1x32x1xf32, #tpu.memory_space<vmem>>, %arg5: memref<1x1x128xf32, #tpu.memory_space<vmem>>, %arg6: memref<32x1xf32, #tpu.memory_space<vmem>>, %arg7: memref<32x1xf32, #tpu.memory_space<vmem>>, %arg8: memref<3x32x3xf32, #tpu.memory_space<vmem>>, %arg9: memref<3x32x1xf32, #tpu.memory_space<vmem>>, %arg10: memref<3x32x1xf32, #tpu.memory_space<vmem>>, %arg11: memref<3x32x32xf32, #tpu.memory_space<vmem>>, %arg12: memref<3x32x1xf32, #tpu.memory_space<vmem>>, %arg13: memref<1x32x128xf32, #tpu.memory_space<vmem>>, %arg14: memref<1x32x128xf32, #tpu.memory_space<vmem>>, %arg15: memref<1x32x128xf32, #tpu.memory_space<vmem>>) attributes {dimension_semantics = [#tpu.dimension_semantics<parallel>, #tpu.dimension_semantics<parallel>], iteration_bounds = array<i64: 2, 2>, scalar_prefetch = 0 : i64, scratch_operands = 0 : i64, tpu.core_type = #tpu.core_type<tc>, window_params = [{transform_indices = @transform_0, window_bounds = array<i64: 1, 32, 128>}, {transform_indices = @transform_1, window_bounds = array<i64: 1, 1, 32, 1>}, {transform_indices = @transform_2, window_bounds = array<i64: 1, 1, 32, 1>}, {transform_indices = @transform_3, window_bounds = array<i64: 1, 1, 128>}, {pipeline_mode = #tpu.pipeline_mode<synchronous>, transform_indices = @transform_4, window_bounds = array<i64: 32, 1>}, {pipeline_mode = #tpu.pipeline_mode<synchronous>, transform_indices = @transform_5, window_bounds = array<i64: 32, 1>}, {pipeline_mode = #tpu.pipeline_mode<synchronous>, transform_indices = @transform_6, window_bounds = array<i64: 3, 32, 3>}, {pipeline_mode = #tpu.pipeline_mode<synchronous>, transform_indices = @transform_7, window_bounds = array<i64: 3, 32, 1>}, {pipeline_mode = #tpu.pipeline_mode<synchronous>, transform_indices = @transform_8, window_bounds = array<i64: 3, 32, 1>}, {pipeline_mode = #tpu.pipeline_mode<synchronous>, transform_indices = @transform_9, window_bounds = array<i64: 3, 32, 32>}, {pipeline_mode = #tpu.pipeline_mode<synchronous>, transform_indices = @transform_10, window_bounds = array<i64: 3, 32, 1>}, {transform_indices = @transform_11, window_bounds = array<i64: 1, 32, 128>}, {transform_indices = @transform_12, window_bounds = array<i64: 1, 32, 128>}, {transform_indices = @transform_13, window_bounds = array<i64: 1, 32, 128>}]} {
    %c0 = arith.constant 0 : index
    %c0_0 = arith.constant 0 : index
    %c0_1 = arith.constant 0 : index
    %0 = vector.load %arg2[%c0, %c0_0, %c0_1] : memref<1x32x128xf32, #tpu.memory_space<vmem>>, vector<1x32x128xf32>
    %1 = vector.shape_cast %0 : vector<1x32x128xf32> to vector<32x128xf32>
    %c0_2 = arith.constant 0 : index
    %c0_3 = arith.constant 0 : index
    %2 = vector.load %arg6[%c0_2, %c0_3] : memref<32x1xf32, #tpu.memory_space<vmem>>, vector<32x1xf32>
    %c0_4 = arith.constant 0 : index
    %c0_5 = arith.constant 0 : index
    %3 = vector.load %arg7[%c0_4, %c0_5] : memref<32x1xf32, #tpu.memory_space<vmem>>, vector<32x1xf32>
    %cst = arith.constant dense<0.000000e+00> : vector<128xf32>
    %4 = vector.multi_reduction <add>, %1, %cst [0] : vector<32x128xf32> to vector<128xf32>
    %5 = vector.shape_cast %4 : vector<128xf32> to vector<1x128xf32>
    %cst_6 = arith.constant 3.200000e+01 : f32
    %6 = vector.broadcast %cst_6 : f32 to vector<1x128xf32>
    %7 = arith.divf %5, %6 : vector<1x128xf32>
    %8 = vector.broadcast %7 : vector<1x128xf32> to vector<32x128xf32>
    %9 = arith.subf %1, %8 : vector<32x128xf32>
    %10 = arith.mulf %9, %9 : vector<32x128xf32>
    %cst_7 = arith.constant dense<0.000000e+00> : vector<128xf32>
    %11 = vector.multi_reduction <add>, %10, %cst_7 [0] : vector<32x128xf32> to vector<128xf32>
    %12 = vector.shape_cast %11 : vector<128xf32> to vector<1x128xf32>
    %cst_8 = arith.constant 3.200000e+01 : f32
    %13 = vector.broadcast %cst_8 : f32 to vector<1x128xf32>
    %14 = arith.divf %12, %13 : vector<1x128xf32>
    %cst_9 = arith.constant 9.99999974E-6 : f32
    %15 = vector.broadcast %cst_9 : f32 to vector<1x128xf32>
    %16 = arith.addf %14, %15 : vector<1x128xf32>
    %17 = math.rsqrt %16 : vector<1x128xf32>
    %18 = vector.broadcast %17 : vector<1x128xf32> to vector<32x128xf32>
    %19 = arith.mulf %9, %18 : vector<32x128xf32>
    %20 = vector.broadcast %2 : vector<32x1xf32> to vector<32x128xf32>
    %21 = arith.mulf %19, %20 : vector<32x128xf32>
    %22 = vector.broadcast %3 : vector<32x1xf32> to vector<32x128xf32>
    %23 = arith.addf %21, %22 : vector<32x128xf32>
    %c0_10 = arith.constant 0 : index
    %c0_11 = arith.constant 0 : index
    %c0_12 = arith.constant 0 : index
    %c0_13 = arith.constant 0 : index
    %24 = vector.load %arg3[%c0_10, %c0_11, %c0_12, %c0_13] : memref<1x1x32x1xf32, #tpu.memory_space<vmem>>, vector<1x1x32x1xf32>
    %25 = vector.shape_cast %24 : vector<1x1x32x1xf32> to vector<32x1xf32>
    %cst_14 = arith.constant dense<0.000000e+00> : vector<1xf32>
    %26 = vector.multi_reduction <add>, %25, %cst_14 [0] : vector<32x1xf32> to vector<1xf32>
    %27 = vector.shape_cast %26 : vector<1xf32> to vector<1x1xf32>
    %cst_15 = arith.constant 3.200000e+01 : f32
    %28 = vector.broadcast %cst_15 : f32 to vector<1x1xf32>
    %29 = arith.divf %27, %28 : vector<1x1xf32>
    %30 = vector.broadcast %29 : vector<1x1xf32> to vector<32x1xf32>
    %31 = arith.subf %25, %30 : vector<32x1xf32>
    %32 = arith.mulf %31, %31 : vector<32x1xf32>
    %cst_16 = arith.constant dense<0.000000e+00> : vector<1xf32>
    %33 = vector.multi_reduction <add>, %32, %cst_16 [0] : vector<32x1xf32> to vector<1xf32>
    %34 = vector.shape_cast %33 : vector<1xf32> to vector<1x1xf32>
    %cst_17 = arith.constant 3.200000e+01 : f32
    %35 = vector.broadcast %cst_17 : f32 to vector<1x1xf32>
    %36 = arith.divf %34, %35 : vector<1x1xf32>
    %cst_18 = arith.constant 9.99999974E-6 : f32
    %37 = vector.broadcast %cst_18 : f32 to vector<1x1xf32>
    %38 = arith.addf %36, %37 : vector<1x1xf32>
    %39 = math.rsqrt %38 : vector<1x1xf32>
    %40 = vector.broadcast %39 : vector<1x1xf32> to vector<32x1xf32>
    %41 = arith.mulf %31, %40 : vector<32x1xf32>
    %42 = arith.mulf %41, %2 : vector<32x1xf32>
    %43 = arith.addf %42, %3 : vector<32x1xf32>
    %c0_19 = arith.constant 0 : index
    %c0_20 = arith.constant 0 : index
    %c0_21 = arith.constant 0 : index
    %c0_22 = arith.constant 0 : index
    %44 = vector.load %arg4[%c0_19, %c0_20, %c0_21, %c0_22] : memref<1x1x32x1xf32, #tpu.memory_space<vmem>>, vector<1x1x32x1xf32>
    %45 = vector.shape_cast %44 : vector<1x1x32x1xf32> to vector<32x1xf32>
    %cst_23 = arith.constant dense<0.000000e+00> : vector<1xf32>
    %46 = vector.multi_reduction <add>, %45, %cst_23 [0] : vector<32x1xf32> to vector<1xf32>
    %47 = vector.shape_cast %46 : vector<1xf32> to vector<1x1xf32>
    %cst_24 = arith.constant 3.200000e+01 : f32
    %48 = vector.broadcast %cst_24 : f32 to vector<1x1xf32>
    %49 = arith.divf %47, %48 : vector<1x1xf32>
    %50 = vector.broadcast %49 : vector<1x1xf32> to vector<32x1xf32>
    %51 = arith.subf %45, %50 : vector<32x1xf32>
    %52 = arith.mulf %51, %51 : vector<32x1xf32>
    %cst_25 = arith.constant dense<0.000000e+00> : vector<1xf32>
    %53 = vector.multi_reduction <add>, %52, %cst_25 [0] : vector<32x1xf32> to vector<1xf32>
    %54 = vector.shape_cast %53 : vector<1xf32> to vector<1x1xf32>
    %cst_26 = arith.constant 3.200000e+01 : f32
    %55 = vector.broadcast %cst_26 : f32 to vector<1x1xf32>
    %56 = arith.divf %54, %55 : vector<1x1xf32>
    %cst_27 = arith.constant 9.99999974E-6 : f32
    %57 = vector.broadcast %cst_27 : f32 to vector<1x1xf32>
    %58 = arith.addf %56, %57 : vector<1x1xf32>
    %59 = math.rsqrt %58 : vector<1x1xf32>
    %60 = vector.broadcast %59 : vector<1x1xf32> to vector<32x1xf32>
    %61 = arith.mulf %51, %60 : vector<32x1xf32>
    %62 = arith.mulf %61, %2 : vector<32x1xf32>
    %63 = arith.addf %62, %3 : vector<32x1xf32>
    %c0_i32 = arith.constant 0 : i32
    %64 = arith.cmpi sgt, %arg1, %c0_i32 : i32
    %cst_28 = arith.constant 1.000000e+00 : f32
    %cst_29 = arith.constant 0.000000e+00 : f32
    %65 = arith.select %64, %cst_28, %cst_29 : f32
    %66 = vector.broadcast %65 : f32 to vector<32x1xf32>
    %67 = arith.mulf %43, %66 : vector<32x1xf32>
    %c1_i32 = arith.constant 1 : i32
    %68 = arith.cmpi slt, %arg1, %c1_i32 : i32
    %cst_30 = arith.constant 1.000000e+00 : f32
    %cst_31 = arith.constant 0.000000e+00 : f32
    %69 = arith.select %68, %cst_30, %cst_31 : f32
    %70 = vector.broadcast %69 : f32 to vector<32x1xf32>
    %71 = arith.mulf %63, %70 : vector<32x1xf32>
    %72 = tpu.iota {dimensions = array<i32: 1>} : vector<32x128xi32>
    %c0_i32_32 = arith.constant 0 : i32
    %73 = vector.broadcast %c0_i32_32 : i32 to vector<32x128xi32>
    %74 = arith.cmpi eq, %72, %73 : vector<32x128xi32>
    %c1_i32_33 = arith.constant 1 : i32
    %75 = tpu.dynamic_rotate %23 by %c1_i32_33 dim 1 : vector<32x128xf32>, i32 -> vector<32x128xf32>
    %76 = vector.shape_cast %67 : vector<32x1xf32> to vector<32x1xf32>
    %77 = vector.broadcast %76 : vector<32x1xf32> to vector<32x128xf32>
    %78 = arith.select %74, %77, %75 : vector<32x128xi1>, vector<32x128xf32>
    %c127_i32 = arith.constant 127 : i32
    %79 = vector.broadcast %c127_i32 : i32 to vector<32x128xi32>
    %80 = arith.cmpi eq, %72, %79 : vector<32x128xi32>
    %c127_i32_34 = arith.constant 127 : i32
    %81 = tpu.dynamic_rotate %23 by %c127_i32_34 dim 1 : vector<32x128xf32>, i32 -> vector<32x128xf32>
    %82 = vector.shape_cast %71 : vector<32x1xf32> to vector<32x1xf32>
    %83 = vector.broadcast %82 : vector<32x1xf32> to vector<32x128xf32>
    %84 = arith.select %80, %83, %81 : vector<32x128xi1>, vector<32x128xf32>
    %c0_35 = arith.constant 0 : index
    %c0_36 = arith.constant 0 : index
    %c0_37 = arith.constant 0 : index
    %85 = vector.load %arg5[%c0_35, %c0_36, %c0_37] : memref<1x1x128xf32, #tpu.memory_space<vmem>>, vector<1x1x128xf32>
    %86 = vector.shape_cast %85 : vector<1x1x128xf32> to vector<1x128xf32>
    %c0_38 = arith.constant 0 : index
    %c0_39 = arith.constant 0 : index
    %c0_40 = arith.constant 0 : index
    %87 = vector.load %arg8[%c0_38, %c0_39, %c0_40] : memref<3x32x3xf32, #tpu.memory_space<vmem>>, vector<1x32x3xf32>
    %88 = vector.shape_cast %87 : vector<1x32x3xf32> to vector<32x3xf32>
    %89 = vector.extract_strided_slice %88 {offsets = [0, 0], sizes = [32, 1], strides = [1, 1]} : vector<32x3xf32> to vector<32x1xf32>
    %90 = vector.broadcast %89 : vector<32x1xf32> to vector<32x128xf32>
    %91 = arith.mulf %78, %90 : vector<32x128xf32>
    %92 = vector.extract_strided_slice %88 {offsets = [0, 1], sizes = [32, 1], strides = [1, 1]} : vector<32x3xf32> to vector<32x1xf32>
    %93 = vector.broadcast %92 : vector<32x1xf32> to vector<32x128xf32>
    %94 = arith.mulf %23, %93 : vector<32x128xf32>
    %95 = arith.addf %91, %94 : vector<32x128xf32>
    %96 = vector.extract_strided_slice %88 {offsets = [0, 2], sizes = [32, 1], strides = [1, 1]} : vector<32x3xf32> to vector<32x1xf32>
    %97 = vector.broadcast %96 : vector<32x1xf32> to vector<32x128xf32>
    %98 = arith.mulf %84, %97 : vector<32x128xf32>
    %99 = arith.addf %95, %98 : vector<32x128xf32>
    %100 = vector.broadcast %86 : vector<1x128xf32> to vector<32x128xf32>
    %101 = arith.mulf %99, %100 : vector<32x128xf32>
    %c0_41 = arith.constant 0 : index
    %c0_42 = arith.constant 0 : index
    %c0_43 = arith.constant 0 : index
    %102 = vector.load %arg9[%c0_41, %c0_42, %c0_43] : memref<3x32x1xf32, #tpu.memory_space<vmem>>, vector<1x32x1xf32>
    %103 = vector.shape_cast %102 : vector<1x32x1xf32> to vector<32x1xf32>
    %c0_44 = arith.constant 0 : index
    %c0_45 = arith.constant 0 : index
    %c0_46 = arith.constant 0 : index
    %104 = vector.load %arg10[%c0_44, %c0_45, %c0_46] : memref<3x32x1xf32, #tpu.memory_space<vmem>>, vector<1x32x1xf32>
    %105 = vector.shape_cast %104 : vector<1x32x1xf32> to vector<32x1xf32>
    %cst_47 = arith.constant dense<0.000000e+00> : vector<128xf32>
    %106 = vector.multi_reduction <add>, %101, %cst_47 [0] : vector<32x128xf32> to vector<128xf32>
    %107 = vector.shape_cast %106 : vector<128xf32> to vector<1x128xf32>
    %cst_48 = arith.constant 3.200000e+01 : f32
    %108 = vector.broadcast %cst_48 : f32 to vector<1x128xf32>
    %109 = arith.divf %107, %108 : vector<1x128xf32>
    %110 = vector.broadcast %109 : vector<1x128xf32> to vector<32x128xf32>
    %111 = arith.subf %101, %110 : vector<32x128xf32>
    %112 = arith.mulf %111, %111 : vector<32x128xf32>
    %cst_49 = arith.constant dense<0.000000e+00> : vector<128xf32>
    %113 = vector.multi_reduction <add>, %112, %cst_49 [0] : vector<32x128xf32> to vector<128xf32>
    %114 = vector.shape_cast %113 : vector<128xf32> to vector<1x128xf32>
    %cst_50 = arith.constant 3.200000e+01 : f32
    %115 = vector.broadcast %cst_50 : f32 to vector<1x128xf32>
    %116 = arith.divf %114, %115 : vector<1x128xf32>
    %cst_51 = arith.constant 9.99999974E-6 : f32
    %117 = vector.broadcast %cst_51 : f32 to vector<1x128xf32>
    %118 = arith.addf %116, %117 : vector<1x128xf32>
    %119 = math.rsqrt %118 : vector<1x128xf32>
    %120 = vector.broadcast %119 : vector<1x128xf32> to vector<32x128xf32>
    %121 = arith.mulf %111, %120 : vector<32x128xf32>
    %122 = vector.broadcast %103 : vector<32x1xf32> to vector<32x128xf32>
    %123 = arith.mulf %121, %122 : vector<32x128xf32>
    %124 = vector.broadcast %105 : vector<32x1xf32> to vector<32x128xf32>
    %125 = arith.addf %123, %124 : vector<32x128xf32>
    %c0_52 = arith.constant 0 : index
    %c0_53 = arith.constant 0 : index
    %c0_54 = arith.constant 0 : index
    %126 = vector.load %arg11[%c0_52, %c0_53, %c0_54] : memref<3x32x32xf32, #tpu.memory_space<vmem>>, vector<1x32x32xf32>
    %127 = vector.shape_cast %126 : vector<1x32x32xf32> to vector<32x32xf32>
    %cst_55 = arith.constant dense<0.000000e+00> : vector<32x128xf32>
    %128 = tpu.matmul %127, %125, %cst_55 {dimension_numbers = #tpu.dot_dimension_numbers<[1], [0], [0], [1], [0, 0, 1, 1], [], []>} : vector<32x32xf32>, vector<32x128xf32>, vector<32x128xf32> -> vector<32x128xf32>
    %c0_56 = arith.constant 0 : index
    %c0_57 = arith.constant 0 : index
    %c0_58 = arith.constant 0 : index
    %129 = vector.load %arg12[%c0_56, %c0_57, %c0_58] : memref<3x32x1xf32, #tpu.memory_space<vmem>>, vector<1x32x1xf32>
    %130 = vector.shape_cast %129 : vector<1x32x1xf32> to vector<32x1xf32>
    %131 = vector.broadcast %130 : vector<32x1xf32> to vector<32x128xf32>
    %132 = arith.addf %128, %131 : vector<32x128xf32>
    %c0_59 = arith.constant 0 : index
    %c0_60 = arith.constant 0 : index
    %c0_61 = arith.constant 0 : index
    %133 = vector.load %arg13[%c0_59, %c0_60, %c0_61] : memref<1x32x128xf32, #tpu.memory_space<vmem>>, vector<1x32x128xf32>
    %134 = vector.shape_cast %133 : vector<1x32x128xf32> to vector<32x128xf32>
    %135 = vector.shape_cast %132 : vector<32x128xf32> to vector<1x32x128xf32>
    tpu.vector_store %arg13[%c0_59, %c0_60, %c0_61], %135 {strides = array<i32>} : memref<1x32x128xf32, #tpu.memory_space<vmem>>, vector<1x32x128xf32>,
    %c1 = arith.constant 1 : index
    %c0_62 = arith.constant 0 : index
    %c0_63 = arith.constant 0 : index
    %136 = vector.load %arg8[%c1, %c0_62, %c0_63] : memref<3x32x3xf32, #tpu.memory_space<vmem>>, vector<1x32x3xf32>
    %137 = vector.shape_cast %136 : vector<1x32x3xf32> to vector<32x3xf32>
    %138 = vector.extract_strided_slice %137 {offsets = [0, 0], sizes = [32, 1], strides = [1, 1]} : vector<32x3xf32> to vector<32x1xf32>
    %139 = vector.broadcast %138 : vector<32x1xf32> to vector<32x128xf32>
    %140 = arith.mulf %78, %139 : vector<32x128xf32>
    %141 = vector.extract_strided_slice %137 {offsets = [0, 1], sizes = [32, 1], strides = [1, 1]} : vector<32x3xf32> to vector<32x1xf32>
    %142 = vector.broadcast %141 : vector<32x1xf32> to vector<32x128xf32>
    %143 = arith.mulf %23, %142 : vector<32x128xf32>
    %144 = arith.addf %140, %143 : vector<32x128xf32>
    %145 = vector.extract_strided_slice %137 {offsets = [0, 2], sizes = [32, 1], strides = [1, 1]} : vector<32x3xf32> to vector<32x1xf32>
    %146 = vector.broadcast %145 : vector<32x1xf32> to vector<32x128xf32>
    %147 = arith.mulf %84, %146 : vector<32x128xf32>
    %148 = arith.addf %144, %147 : vector<32x128xf32>
    %149 = vector.broadcast %86 : vector<1x128xf32> to vector<32x128xf32>
    %150 = arith.mulf %148, %149 : vector<32x128xf32>
    %c1_64 = arith.constant 1 : index
    %c0_65 = arith.constant 0 : index
    %c0_66 = arith.constant 0 : index
    %151 = vector.load %arg9[%c1_64, %c0_65, %c0_66] : memref<3x32x1xf32, #tpu.memory_space<vmem>>, vector<1x32x1xf32>
    %152 = vector.shape_cast %151 : vector<1x32x1xf32> to vector<32x1xf32>
    %c1_67 = arith.constant 1 : index
    %c0_68 = arith.constant 0 : index
    %c0_69 = arith.constant 0 : index
    %153 = vector.load %arg10[%c1_67, %c0_68, %c0_69] : memref<3x32x1xf32, #tpu.memory_space<vmem>>, vector<1x32x1xf32>
    %154 = vector.shape_cast %153 : vector<1x32x1xf32> to vector<32x1xf32>
    %cst_70 = arith.constant dense<0.000000e+00> : vector<128xf32>
    %155 = vector.multi_reduction <add>, %150, %cst_70 [0] : vector<32x128xf32> to vector<128xf32>
    %156 = vector.shape_cast %155 : vector<128xf32> to vector<1x128xf32>
    %cst_71 = arith.constant 3.200000e+01 : f32
    %157 = vector.broadcast %cst_71 : f32 to vector<1x128xf32>
    %158 = arith.divf %156, %157 : vector<1x128xf32>
    %159 = vector.broadcast %158 : vector<1x128xf32> to vector<32x128xf32>
    %160 = arith.subf %150, %159 : vector<32x128xf32>
    %161 = arith.mulf %160, %160 : vector<32x128xf32>
    %cst_72 = arith.constant dense<0.000000e+00> : vector<128xf32>
    %162 = vector.multi_reduction <add>, %161, %cst_72 [0] : vector<32x128xf32> to vector<128xf32>
    %163 = vector.shape_cast %162 : vector<128xf32> to vector<1x128xf32>
    %cst_73 = arith.constant 3.200000e+01 : f32
    %164 = vector.broadcast %cst_73 : f32 to vector<1x128xf32>
    %165 = arith.divf %163, %164 : vector<1x128xf32>
    %cst_74 = arith.constant 9.99999974E-6 : f32
    %166 = vector.broadcast %cst_74 : f32 to vector<1x128xf32>
    %167 = arith.addf %165, %166 : vector<1x128xf32>
    %168 = math.rsqrt %167 : vector<1x128xf32>
    %169 = vector.broadcast %168 : vector<1x128xf32> to vector<32x128xf32>
    %170 = arith.mulf %160, %169 : vector<32x128xf32>
    %171 = vector.broadcast %152 : vector<32x1xf32> to vector<32x128xf32>
    %172 = arith.mulf %170, %171 : vector<32x128xf32>
    %173 = vector.broadcast %154 : vector<32x1xf32> to vector<32x128xf32>
    %174 = arith.addf %172, %173 : vector<32x128xf32>
    %c1_75 = arith.constant 1 : index
    %c0_76 = arith.constant 0 : index
    %c0_77 = arith.constant 0 : index
    %175 = vector.load %arg11[%c1_75, %c0_76, %c0_77] : memref<3x32x32xf32, #tpu.memory_space<vmem>>, vector<1x32x32xf32>
    %176 = vector.shape_cast %175 : vector<1x32x32xf32> to vector<32x32xf32>
    %cst_78 = arith.constant dense<0.000000e+00> : vector<32x128xf32>
    %177 = tpu.matmul %176, %174, %cst_78 {dimension_numbers = #tpu.dot_dimension_numbers<[1], [0], [0], [1], [0, 0, 1, 1], [], []>} : vector<32x32xf32>, vector<32x128xf32>, vector<32x128xf32> -> vector<32x128xf32>
    %c1_79 = arith.constant 1 : index
    %c0_80 = arith.constant 0 : index
    %c0_81 = arith.constant 0 : index
    %178 = vector.load %arg12[%c1_79, %c0_80, %c0_81] : memref<3x32x1xf32, #tpu.memory_space<vmem>>, vector<1x32x1xf32>
    %179 = vector.shape_cast %178 : vector<1x32x1xf32> to vector<32x1xf32>
    %180 = vector.broadcast %179 : vector<32x1xf32> to vector<32x128xf32>
    %181 = arith.addf %177, %180 : vector<32x128xf32>
    %c0_82 = arith.constant 0 : index
    %c0_83 = arith.constant 0 : index
    %c0_84 = arith.constant 0 : index
    %182 = vector.load %arg14[%c0_82, %c0_83, %c0_84] : memref<1x32x128xf32, #tpu.memory_space<vmem>>, vector<1x32x128xf32>
    %183 = vector.shape_cast %182 : vector<1x32x128xf32> to vector<32x128xf32>
    %184 = vector.shape_cast %181 : vector<32x128xf32> to vector<1x32x128xf32>
    tpu.vector_store %arg14[%c0_82, %c0_83, %c0_84], %184 {strides = array<i32>} : memref<1x32x128xf32, #tpu.memory_space<vmem>>, vector<1x32x128xf32>,
    %c2 = arith.constant 2 : index
    %c0_85 = arith.constant 0 : index
    %c0_86 = arith.constant 0 : index
    %185 = vector.load %arg8[%c2, %c0_85, %c0_86] : memref<3x32x3xf32, #tpu.memory_space<vmem>>, vector<1x32x3xf32>
    %186 = vector.shape_cast %185 : vector<1x32x3xf32> to vector<32x3xf32>
    %187 = vector.extract_strided_slice %186 {offsets = [0, 0], sizes = [32, 1], strides = [1, 1]} : vector<32x3xf32> to vector<32x1xf32>
    %188 = vector.broadcast %187 : vector<32x1xf32> to vector<32x128xf32>
    %189 = arith.mulf %78, %188 : vector<32x128xf32>
    %190 = vector.extract_strided_slice %186 {offsets = [0, 1], sizes = [32, 1], strides = [1, 1]} : vector<32x3xf32> to vector<32x1xf32>
    %191 = vector.broadcast %190 : vector<32x1xf32> to vector<32x128xf32>
    %192 = arith.mulf %23, %191 : vector<32x128xf32>
    %193 = arith.addf %189, %192 : vector<32x128xf32>
    %194 = vector.extract_strided_slice %186 {offsets = [0, 2], sizes = [32, 1], strides = [1, 1]} : vector<32x3xf32> to vector<32x1xf32>
    %195 = vector.broadcast %194 : vector<32x1xf32> to vector<32x128xf32>
    %196 = arith.mulf %84, %195 : vector<32x128xf32>
    %197 = arith.addf %193, %196 : vector<32x128xf32>
    %198 = vector.broadcast %86 : vector<1x128xf32> to vector<32x128xf32>
    %199 = arith.mulf %197, %198 : vector<32x128xf32>
    %c2_87 = arith.constant 2 : index
    %c0_88 = arith.constant 0 : index
    %c0_89 = arith.constant 0 : index
    %200 = vector.load %arg9[%c2_87, %c0_88, %c0_89] : memref<3x32x1xf32, #tpu.memory_space<vmem>>, vector<1x32x1xf32>
    %201 = vector.shape_cast %200 : vector<1x32x1xf32> to vector<32x1xf32>
    %c2_90 = arith.constant 2 : index
    %c0_91 = arith.constant 0 : index
    %c0_92 = arith.constant 0 : index
    %202 = vector.load %arg10[%c2_90, %c0_91, %c0_92] : memref<3x32x1xf32, #tpu.memory_space<vmem>>, vector<1x32x1xf32>
    %203 = vector.shape_cast %202 : vector<1x32x1xf32> to vector<32x1xf32>
    %cst_93 = arith.constant dense<0.000000e+00> : vector<128xf32>
    %204 = vector.multi_reduction <add>, %199, %cst_93 [0] : vector<32x128xf32> to vector<128xf32>
    %205 = vector.shape_cast %204 : vector<128xf32> to vector<1x128xf32>
    %cst_94 = arith.constant 3.200000e+01 : f32
    %206 = vector.broadcast %cst_94 : f32 to vector<1x128xf32>
    %207 = arith.divf %205, %206 : vector<1x128xf32>
    %208 = vector.broadcast %207 : vector<1x128xf32> to vector<32x128xf32>
    %209 = arith.subf %199, %208 : vector<32x128xf32>
    %210 = arith.mulf %209, %209 : vector<32x128xf32>
    %cst_95 = arith.constant dense<0.000000e+00> : vector<128xf32>
    %211 = vector.multi_reduction <add>, %210, %cst_95 [0] : vector<32x128xf32> to vector<128xf32>
    %212 = vector.shape_cast %211 : vector<128xf32> to vector<1x128xf32>
    %cst_96 = arith.constant 3.200000e+01 : f32
    %213 = vector.broadcast %cst_96 : f32 to vector<1x128xf32>
    %214 = arith.divf %212, %213 : vector<1x128xf32>
    %cst_97 = arith.constant 9.99999974E-6 : f32
    %215 = vector.broadcast %cst_97 : f32 to vector<1x128xf32>
    %216 = arith.addf %214, %215 : vector<1x128xf32>
    %217 = math.rsqrt %216 : vector<1x128xf32>
    %218 = vector.broadcast %217 : vector<1x128xf32> to vector<32x128xf32>
    %219 = arith.mulf %209, %218 : vector<32x128xf32>
    %220 = vector.broadcast %201 : vector<32x1xf32> to vector<32x128xf32>
    %221 = arith.mulf %219, %220 : vector<32x128xf32>
    %222 = vector.broadcast %203 : vector<32x1xf32> to vector<32x128xf32>
    %223 = arith.addf %221, %222 : vector<32x128xf32>
    %c2_98 = arith.constant 2 : index
    %c0_99 = arith.constant 0 : index
    %c0_100 = arith.constant 0 : index
    %224 = vector.load %arg11[%c2_98, %c0_99, %c0_100] : memref<3x32x32xf32, #tpu.memory_space<vmem>>, vector<1x32x32xf32>
    %225 = vector.shape_cast %224 : vector<1x32x32xf32> to vector<32x32xf32>
    %cst_101 = arith.constant dense<0.000000e+00> : vector<32x128xf32>
    %226 = tpu.matmul %225, %223, %cst_101 {dimension_numbers = #tpu.dot_dimension_numbers<[1], [0], [0], [1], [0, 0, 1, 1], [], []>} : vector<32x32xf32>, vector<32x128xf32>, vector<32x128xf32> -> vector<32x128xf32>
    %c2_102 = arith.constant 2 : index
    %c0_103 = arith.constant 0 : index
    %c0_104 = arith.constant 0 : index
    %227 = vector.load %arg12[%c2_102, %c0_103, %c0_104] : memref<3x32x1xf32, #tpu.memory_space<vmem>>, vector<1x32x1xf32>
    %228 = vector.shape_cast %227 : vector<1x32x1xf32> to vector<32x1xf32>
    %229 = vector.broadcast %228 : vector<32x1xf32> to vector<32x128xf32>
    %230 = arith.addf %226, %229 : vector<32x128xf32>
    %c0_105 = arith.constant 0 : index
    %c0_106 = arith.constant 0 : index
    %c0_107 = arith.constant 0 : index
    %231 = vector.load %arg15[%c0_105, %c0_106, %c0_107] : memref<1x32x128xf32, #tpu.memory_space<vmem>>, vector<1x32x128xf32>
    %232 = vector.shape_cast %231 : vector<1x32x128xf32> to vector<32x128xf32>
    %233 = vector.shape_cast %230 : vector<32x128xf32> to vector<1x32x128xf32>
    tpu.vector_store %arg15[%c0_105, %c0_106, %c0_107], %233 {strides = array<i32>} : memref<1x32x128xf32, #tpu.memory_space<vmem>>, vector<1x32x128xf32>,
    return
  }
  func.func @transform_0(%arg0: i32, %arg1: i32) -> (i32, i32, i32) {
    %c0_i32 = arith.constant 0 : i32
    %c0_i32_0 = arith.constant 0 : i32
    return %arg0, %c0_i32, %arg1 : i32, i32, i32
  }
  func.func @transform_1(%arg0: i32, %arg1: i32) -> (i32, i32, i32, i32) {
    %c0_i32 = arith.constant 0 : i32
    %c0_i32_0 = arith.constant 0 : i32
    %c0_i32_1 = arith.constant 0 : i32
    return %arg0, %arg1, %c0_i32, %c0_i32_0 : i32, i32, i32, i32
  }
  func.func @transform_2(%arg0: i32, %arg1: i32) -> (i32, i32, i32, i32) {
    %c0_i32 = arith.constant 0 : i32
    %c0_i32_0 = arith.constant 0 : i32
    %c0_i32_1 = arith.constant 0 : i32
    return %arg0, %arg1, %c0_i32, %c0_i32_0 : i32, i32, i32, i32
  }
  func.func @transform_3(%arg0: i32, %arg1: i32) -> (i32, i32, i32) {
    %c0_i32 = arith.constant 0 : i32
    %c0_i32_0 = arith.constant 0 : i32
    return %arg0, %c0_i32, %arg1 : i32, i32, i32
  }
  func.func @transform_4(%arg0: i32, %arg1: i32) -> (i32, i32) {
    %c0_i32 = arith.constant 0 : i32
    %c0_i32_0 = arith.constant 0 : i32
    %c0_i32_1 = arith.constant 0 : i32
    return %c0_i32, %c0_i32_0 : i32, i32
  }
  func.func @transform_5(%arg0: i32, %arg1: i32) -> (i32, i32) {
    %c0_i32 = arith.constant 0 : i32
    %c0_i32_0 = arith.constant 0 : i32
    %c0_i32_1 = arith.constant 0 : i32
    return %c0_i32, %c0_i32_0 : i32, i32
  }
  func.func @transform_6(%arg0: i32, %arg1: i32) -> (i32, i32, i32) {
    %c0_i32 = arith.constant 0 : i32
    %c0_i32_0 = arith.constant 0 : i32
    %c0_i32_1 = arith.constant 0 : i32
    %c0_i32_2 = arith.constant 0 : i32
    return %c0_i32, %c0_i32_0, %c0_i32_1 : i32, i32, i32
  }
  func.func @transform_7(%arg0: i32, %arg1: i32) -> (i32, i32, i32) {
    %c0_i32 = arith.constant 0 : i32
    %c0_i32_0 = arith.constant 0 : i32
    %c0_i32_1 = arith.constant 0 : i32
    %c0_i32_2 = arith.constant 0 : i32
    return %c0_i32, %c0_i32_0, %c0_i32_1 : i32, i32, i32
  }
  func.func @transform_8(%arg0: i32, %arg1: i32) -> (i32, i32, i32) {
    %c0_i32 = arith.constant 0 : i32
    %c0_i32_0 = arith.constant 0 : i32
    %c0_i32_1 = arith.constant 0 : i32
    %c0_i32_2 = arith.constant 0 : i32
    return %c0_i32, %c0_i32_0, %c0_i32_1 : i32, i32, i32
  }
  func.func @transform_9(%arg0: i32, %arg1: i32) -> (i32, i32, i32) {
    %c0_i32 = arith.constant 0 : i32
    %c0_i32_0 = arith.constant 0 : i32
    %c0_i32_1 = arith.constant 0 : i32
    %c0_i32_2 = arith.constant 0 : i32
    return %c0_i32, %c0_i32_0, %c0_i32_1 : i32, i32, i32
  }
  func.func @transform_10(%arg0: i32, %arg1: i32) -> (i32, i32, i32) {
    %c0_i32 = arith.constant 0 : i32
    %c0_i32_0 = arith.constant 0 : i32
    %c0_i32_1 = arith.constant 0 : i32
    %c0_i32_2 = arith.constant 0 : i32
    return %c0_i32, %c0_i32_0, %c0_i32_1 : i32, i32, i32
  }
  func.func @transform_11(%arg0: i32, %arg1: i32) -> (i32, i32, i32) {
    %c0_i32 = arith.constant 0 : i32
    %c0_i32_0 = arith.constant 0 : i32
    return %arg0, %c0_i32, %arg1 : i32, i32, i32
  }
  func.func @transform_12(%arg0: i32, %arg1: i32) -> (i32, i32, i32) {
    %c0_i32 = arith.constant 0 : i32
    %c0_i32_0 = arith.constant 0 : i32
    return %arg0, %c0_i32, %arg1 : i32, i32, i32
  }
  func.func @transform_13(%arg0: i32, %arg1: i32) -> (i32, i32, i32) {
    %c0_i32 = arith.constant 0 : i32
    %c0_i32_0 = arith.constant 0 : i32
    return %arg0, %c0_i32, %arg1 : i32, i32, i32
  }
}

module attributes {stable_mosaic.version = 11 : i64} {
  func.func @_ln_fc_gelu_kernel(%arg0: i32, %arg1: i32, %arg2: memref<1x32x128xf32, #tpu.memory_space<vmem>>, %arg3: memref<32x1xf32, #tpu.memory_space<vmem>>, %arg4: memref<32x1xf32, #tpu.memory_space<vmem>>, %arg5: memref<128x32xf32, #tpu.memory_space<vmem>>, %arg6: memref<128x1xf32, #tpu.memory_space<vmem>>, %arg7: memref<1x128x128xf32, #tpu.memory_space<vmem>>) attributes {dimension_semantics = [#tpu.dimension_semantics<parallel>, #tpu.dimension_semantics<parallel>], iteration_bounds = array<i64: 2, 2>, scalar_prefetch = 0 : i64, scratch_operands = 0 : i64, tpu.core_type = #tpu.core_type<tc>, window_params = [{transform_indices = @transform_0, window_bounds = array<i64: 1, 32, 128>}, {pipeline_mode = #tpu.pipeline_mode<synchronous>, transform_indices = @transform_1, window_bounds = array<i64: 32, 1>}, {pipeline_mode = #tpu.pipeline_mode<synchronous>, transform_indices = @transform_2, window_bounds = array<i64: 32, 1>}, {pipeline_mode = #tpu.pipeline_mode<synchronous>, transform_indices = @transform_3, window_bounds = array<i64: 128, 32>}, {pipeline_mode = #tpu.pipeline_mode<synchronous>, transform_indices = @transform_4, window_bounds = array<i64: 128, 1>}, {transform_indices = @transform_5, window_bounds = array<i64: 1, 128, 128>}]} {
    %c0 = arith.constant 0 : index
    %c0_0 = arith.constant 0 : index
    %c0_1 = arith.constant 0 : index
    %0 = vector.load %arg2[%c0, %c0_0, %c0_1] : memref<1x32x128xf32, #tpu.memory_space<vmem>>, vector<1x32x128xf32>
    %1 = vector.shape_cast %0 : vector<1x32x128xf32> to vector<32x128xf32>
    %c0_2 = arith.constant 0 : index
    %c0_3 = arith.constant 0 : index
    %2 = vector.load %arg3[%c0_2, %c0_3] : memref<32x1xf32, #tpu.memory_space<vmem>>, vector<32x1xf32>
    %c0_4 = arith.constant 0 : index
    %c0_5 = arith.constant 0 : index
    %3 = vector.load %arg4[%c0_4, %c0_5] : memref<32x1xf32, #tpu.memory_space<vmem>>, vector<32x1xf32>
    %cst = arith.constant dense<0.000000e+00> : vector<128xf32>
    %4 = vector.multi_reduction <add>, %1, %cst [0] : vector<32x128xf32> to vector<128xf32>
    %5 = vector.shape_cast %4 : vector<128xf32> to vector<1x128xf32>
    %cst_6 = arith.constant 3.200000e+01 : f32
    %6 = vector.broadcast %cst_6 : f32 to vector<1x128xf32>
    %7 = arith.divf %5, %6 : vector<1x128xf32>
    %8 = vector.broadcast %7 : vector<1x128xf32> to vector<32x128xf32>
    %9 = arith.subf %1, %8 : vector<32x128xf32>
    %10 = arith.mulf %9, %9 : vector<32x128xf32>
    %cst_7 = arith.constant dense<0.000000e+00> : vector<128xf32>
    %11 = vector.multi_reduction <add>, %10, %cst_7 [0] : vector<32x128xf32> to vector<128xf32>
    %12 = vector.shape_cast %11 : vector<128xf32> to vector<1x128xf32>
    %cst_8 = arith.constant 3.200000e+01 : f32
    %13 = vector.broadcast %cst_8 : f32 to vector<1x128xf32>
    %14 = arith.divf %12, %13 : vector<1x128xf32>
    %cst_9 = arith.constant 9.99999974E-6 : f32
    %15 = vector.broadcast %cst_9 : f32 to vector<1x128xf32>
    %16 = arith.addf %14, %15 : vector<1x128xf32>
    %17 = math.rsqrt %16 : vector<1x128xf32>
    %18 = vector.broadcast %17 : vector<1x128xf32> to vector<32x128xf32>
    %19 = arith.mulf %9, %18 : vector<32x128xf32>
    %20 = vector.broadcast %2 : vector<32x1xf32> to vector<32x128xf32>
    %21 = arith.mulf %19, %20 : vector<32x128xf32>
    %22 = vector.broadcast %3 : vector<32x1xf32> to vector<32x128xf32>
    %23 = arith.addf %21, %22 : vector<32x128xf32>
    %c0_10 = arith.constant 0 : index
    %c0_11 = arith.constant 0 : index
    %24 = vector.load %arg5[%c0_10, %c0_11] : memref<128x32xf32, #tpu.memory_space<vmem>>, vector<128x32xf32>
    %cst_12 = arith.constant dense<0.000000e+00> : vector<128x128xf32>
    %25 = tpu.matmul %24, %23, %cst_12 {dimension_numbers = #tpu.dot_dimension_numbers<[1], [0], [0], [1], [0, 0, 1, 1], [], []>} : vector<128x32xf32>, vector<32x128xf32>, vector<128x128xf32> -> vector<128x128xf32>
    %c0_13 = arith.constant 0 : index
    %c0_14 = arith.constant 0 : index
    %26 = vector.load %arg6[%c0_13, %c0_14] : memref<128x1xf32, #tpu.memory_space<vmem>>, vector<128x1xf32>
    %27 = vector.broadcast %26 : vector<128x1xf32> to vector<128x128xf32>
    %28 = arith.addf %25, %27 : vector<128x128xf32>
    %cst_15 = arith.constant 5.000000e-01 : f32
    %29 = vector.broadcast %cst_15 : f32 to vector<128x128xf32>
    %30 = arith.mulf %29, %28 : vector<128x128xf32>
    %cst_16 = arith.constant 0.707106769 : f32
    %31 = vector.broadcast %cst_16 : f32 to vector<128x128xf32>
    %32 = arith.mulf %28, %31 : vector<128x128xf32>
    %33 = math.absf %32 : vector<128x128xf32>
    %cst_17 = arith.constant 0.327591091 : f32
    %34 = vector.broadcast %cst_17 : f32 to vector<128x128xf32>
    %35 = arith.mulf %34, %33 : vector<128x128xf32>
    %cst_18 = arith.constant 1.000000e+00 : f32
    %36 = vector.broadcast %cst_18 : f32 to vector<128x128xf32>
    %37 = arith.addf %36, %35 : vector<128x128xf32>
    %cst_19 = arith.constant 1.000000e+00 : f32
    %38 = vector.broadcast %cst_19 : f32 to vector<128x128xf32>
    %39 = arith.divf %38, %37 : vector<128x128xf32>
    %cst_20 = arith.constant 1.06140542 : f32
    %40 = vector.broadcast %cst_20 : f32 to vector<128x128xf32>
    %41 = arith.mulf %40, %39 : vector<128x128xf32>
    %cst_21 = arith.constant -1.45315206 : f32
    %42 = vector.broadcast %cst_21 : f32 to vector<128x128xf32>
    %43 = arith.addf %41, %42 : vector<128x128xf32>
    %44 = arith.mulf %43, %39 : vector<128x128xf32>
    %cst_22 = arith.constant 1.42141378 : f32
    %45 = vector.broadcast %cst_22 : f32 to vector<128x128xf32>
    %46 = arith.addf %44, %45 : vector<128x128xf32>
    %47 = arith.mulf %46, %39 : vector<128x128xf32>
    %cst_23 = arith.constant -0.284496725 : f32
    %48 = vector.broadcast %cst_23 : f32 to vector<128x128xf32>
    %49 = arith.addf %47, %48 : vector<128x128xf32>
    %50 = arith.mulf %49, %39 : vector<128x128xf32>
    %cst_24 = arith.constant 0.254829586 : f32
    %51 = vector.broadcast %cst_24 : f32 to vector<128x128xf32>
    %52 = arith.addf %50, %51 : vector<128x128xf32>
    %53 = arith.mulf %52, %39 : vector<128x128xf32>
    %cst_25 = arith.constant 0.000000e+00 : f32
    %54 = vector.broadcast %cst_25 : f32 to vector<128x128xf32>
    %55 = arith.subf %54, %33 : vector<128x128xf32>
    %56 = arith.mulf %55, %33 : vector<128x128xf32>
    %57 = math.exp %56 : vector<128x128xf32>
    %58 = arith.mulf %53, %57 : vector<128x128xf32>
    %cst_26 = arith.constant 1.000000e+00 : f32
    %59 = vector.broadcast %cst_26 : f32 to vector<128x128xf32>
    %60 = arith.subf %59, %58 : vector<128x128xf32>
    %cst_27 = arith.constant 0.000000e+00 : f32
    %61 = vector.broadcast %cst_27 : f32 to vector<128x128xf32>
    %62 = arith.cmpf oge, %32, %61 : vector<128x128xf32>
    %cst_28 = arith.constant 0.000000e+00 : f32
    %63 = vector.broadcast %cst_28 : f32 to vector<128x128xf32>
    %64 = arith.subf %63, %60 : vector<128x128xf32>
    %65 = arith.select %62, %60, %64 : vector<128x128xi1>, vector<128x128xf32>
    %cst_29 = arith.constant 1.000000e+00 : f32
    %66 = vector.broadcast %cst_29 : f32 to vector<128x128xf32>
    %67 = arith.addf %66, %65 : vector<128x128xf32>
    %68 = arith.mulf %30, %67 : vector<128x128xf32>
    %c0_30 = arith.constant 0 : index
    %c0_31 = arith.constant 0 : index
    %c0_32 = arith.constant 0 : index
    %69 = vector.load %arg7[%c0_30, %c0_31, %c0_32] : memref<1x128x128xf32, #tpu.memory_space<vmem>>, vector<1x128x128xf32>
    %70 = vector.shape_cast %69 : vector<1x128x128xf32> to vector<128x128xf32>
    %71 = vector.shape_cast %68 : vector<128x128xf32> to vector<1x128x128xf32>
    tpu.vector_store %arg7[%c0_30, %c0_31, %c0_32], %71 {strides = array<i32>} : memref<1x128x128xf32, #tpu.memory_space<vmem>>, vector<1x128x128xf32>,
    return
  }
  func.func @transform_0(%arg0: i32, %arg1: i32) -> (i32, i32, i32) {
    %c0_i32 = arith.constant 0 : i32
    %c0_i32_0 = arith.constant 0 : i32
    return %arg0, %c0_i32, %arg1 : i32, i32, i32
  }
  func.func @transform_1(%arg0: i32, %arg1: i32) -> (i32, i32) {
    %c0_i32 = arith.constant 0 : i32
    %c0_i32_0 = arith.constant 0 : i32
    %c0_i32_1 = arith.constant 0 : i32
    return %c0_i32, %c0_i32_0 : i32, i32
  }
  func.func @transform_2(%arg0: i32, %arg1: i32) -> (i32, i32) {
    %c0_i32 = arith.constant 0 : i32
    %c0_i32_0 = arith.constant 0 : i32
    %c0_i32_1 = arith.constant 0 : i32
    return %c0_i32, %c0_i32_0 : i32, i32
  }
  func.func @transform_3(%arg0: i32, %arg1: i32) -> (i32, i32) {
    %c0_i32 = arith.constant 0 : i32
    %c0_i32_0 = arith.constant 0 : i32
    %c0_i32_1 = arith.constant 0 : i32
    return %c0_i32, %c0_i32_0 : i32, i32
  }
  func.func @transform_4(%arg0: i32, %arg1: i32) -> (i32, i32) {
    %c0_i32 = arith.constant 0 : i32
    %c0_i32_0 = arith.constant 0 : i32
    %c0_i32_1 = arith.constant 0 : i32
    return %c0_i32, %c0_i32_0 : i32, i32
  }
  func.func @transform_5(%arg0: i32, %arg1: i32) -> (i32, i32, i32) {
    %c0_i32 = arith.constant 0 : i32
    %c0_i32_0 = arith.constant 0 : i32
    return %arg0, %c0_i32, %arg1 : i32, i32, i32
  }
}

module attributes {stable_mosaic.version = 11 : i64} {
  func.func @_pointwise_res_kernel(%arg0: i32, %arg1: i32, %arg2: memref<1x128x128xf32, #tpu.memory_space<vmem>>, %arg3: memref<32x128xf32, #tpu.memory_space<vmem>>, %arg4: memref<32x1xf32, #tpu.memory_space<vmem>>, %arg5: memref<1x1x128xf32, #tpu.memory_space<vmem>>, %arg6: memref<1x32x128xf32, #tpu.memory_space<vmem>>, %arg7: memref<1x32x128xf32, #tpu.memory_space<vmem>>) attributes {dimension_semantics = [#tpu.dimension_semantics<parallel>, #tpu.dimension_semantics<parallel>], iteration_bounds = array<i64: 2, 2>, scalar_prefetch = 0 : i64, scratch_operands = 0 : i64, tpu.core_type = #tpu.core_type<tc>, window_params = [{transform_indices = @transform_0, window_bounds = array<i64: 1, 128, 128>}, {pipeline_mode = #tpu.pipeline_mode<synchronous>, transform_indices = @transform_1, window_bounds = array<i64: 32, 128>}, {pipeline_mode = #tpu.pipeline_mode<synchronous>, transform_indices = @transform_2, window_bounds = array<i64: 32, 1>}, {transform_indices = @transform_3, window_bounds = array<i64: 1, 1, 128>}, {transform_indices = @transform_4, window_bounds = array<i64: 1, 32, 128>}, {transform_indices = @transform_5, window_bounds = array<i64: 1, 32, 128>}]} {
    %c0 = arith.constant 0 : index
    %c0_0 = arith.constant 0 : index
    %c0_1 = arith.constant 0 : index
    %0 = vector.load %arg2[%c0, %c0_0, %c0_1] : memref<1x128x128xf32, #tpu.memory_space<vmem>>, vector<1x128x128xf32>
    %1 = vector.shape_cast %0 : vector<1x128x128xf32> to vector<128x128xf32>
    %c0_2 = arith.constant 0 : index
    %c0_3 = arith.constant 0 : index
    %c0_4 = arith.constant 0 : index
    %2 = vector.load %arg5[%c0_2, %c0_3, %c0_4] : memref<1x1x128xf32, #tpu.memory_space<vmem>>, vector<1x1x128xf32>
    %3 = vector.shape_cast %2 : vector<1x1x128xf32> to vector<1x128xf32>
    %c0_5 = arith.constant 0 : index
    %c0_6 = arith.constant 0 : index
    %4 = vector.load %arg3[%c0_5, %c0_6] : memref<32x128xf32, #tpu.memory_space<vmem>>, vector<32x128xf32>
    %cst = arith.constant dense<0.000000e+00> : vector<32x128xf32>
    %5 = tpu.matmul %4, %1, %cst {dimension_numbers = #tpu.dot_dimension_numbers<[1], [0], [0], [1], [0, 0, 1, 1], [], []>} : vector<32x128xf32>, vector<128x128xf32>, vector<32x128xf32> -> vector<32x128xf32>
    %c0_7 = arith.constant 0 : index
    %c0_8 = arith.constant 0 : index
    %6 = vector.load %arg4[%c0_7, %c0_8] : memref<32x1xf32, #tpu.memory_space<vmem>>, vector<32x1xf32>
    %7 = vector.broadcast %6 : vector<32x1xf32> to vector<32x128xf32>
    %8 = arith.addf %5, %7 : vector<32x128xf32>
    %9 = vector.broadcast %3 : vector<1x128xf32> to vector<32x128xf32>
    %10 = arith.mulf %8, %9 : vector<32x128xf32>
    %c0_9 = arith.constant 0 : index
    %c0_10 = arith.constant 0 : index
    %c0_11 = arith.constant 0 : index
    %11 = vector.load %arg6[%c0_9, %c0_10, %c0_11] : memref<1x32x128xf32, #tpu.memory_space<vmem>>, vector<1x32x128xf32>
    %12 = vector.shape_cast %11 : vector<1x32x128xf32> to vector<32x128xf32>
    %13 = arith.addf %10, %12 : vector<32x128xf32>
    %c0_12 = arith.constant 0 : index
    %c0_13 = arith.constant 0 : index
    %c0_14 = arith.constant 0 : index
    %14 = vector.load %arg7[%c0_12, %c0_13, %c0_14] : memref<1x32x128xf32, #tpu.memory_space<vmem>>, vector<1x32x128xf32>
    %15 = vector.shape_cast %14 : vector<1x32x128xf32> to vector<32x128xf32>
    %16 = vector.shape_cast %13 : vector<32x128xf32> to vector<1x32x128xf32>
    tpu.vector_store %arg7[%c0_12, %c0_13, %c0_14], %16 {strides = array<i32>} : memref<1x32x128xf32, #tpu.memory_space<vmem>>, vector<1x32x128xf32>,
    return
  }
  func.func @transform_0(%arg0: i32, %arg1: i32) -> (i32, i32, i32) {
    %c0_i32 = arith.constant 0 : i32
    %c0_i32_0 = arith.constant 0 : i32
    return %arg0, %c0_i32, %arg1 : i32, i32, i32
  }
  func.func @transform_1(%arg0: i32, %arg1: i32) -> (i32, i32) {
    %c0_i32 = arith.constant 0 : i32
    %c0_i32_0 = arith.constant 0 : i32
    %c0_i32_1 = arith.constant 0 : i32
    return %c0_i32, %c0_i32_0 : i32, i32
  }
  func.func @transform_2(%arg0: i32, %arg1: i32) -> (i32, i32) {
    %c0_i32 = arith.constant 0 : i32
    %c0_i32_0 = arith.constant 0 : i32
    %c0_i32_1 = arith.constant 0 : i32
    return %c0_i32, %c0_i32_0 : i32, i32
  }
  func.func @transform_3(%arg0: i32, %arg1: i32) -> (i32, i32, i32) {
    %c0_i32 = arith.constant 0 : i32
    %c0_i32_0 = arith.constant 0 : i32
    return %arg0, %c0_i32, %arg1 : i32, i32, i32
  }
  func.func @transform_4(%arg0: i32, %arg1: i32) -> (i32, i32, i32) {
    %c0_i32 = arith.constant 0 : i32
    %c0_i32_0 = arith.constant 0 : i32
    return %arg0, %c0_i32, %arg1 : i32, i32, i32
  }
  func.func @transform_5(%arg0: i32, %arg1: i32) -> (i32, i32, i32) {
    %c0_i32 = arith.constant 0 : i32
    %c0_i32_0 = arith.constant 0 : i32
    return %arg0, %c0_i32, %arg1 : i32, i32, i32
  }
}

</mosaic_0001>

<bundles_post_ra>
// kernel: transformer_block.7
= control target key start
LH: loop header
LB: loop body
LE: loop exit
PB: predicated region body
PF: predicated region fallthrough
CT: control target
= control target key end

     0   :  { %s905_s18 = smov 0   ;;  %s907_s19 = smov 0   ;;  %s1055_s0 = inlined_call_operand.vmem [shape: f32[2,32,256], index: 0, kind: input, shape index: {}]   ;;  %s1056_s1 = inlined_call_operand.vmem [shape: f32[32,32], index: 1, kind: input, shape index: {}]   ;;  %s1057_s2 = inlined_call_operand.vmem [shape: f32[32,1], index: 2, kind: input, shape index: {}]   ;;  %s1058_s3 = inlined_call_operand.vmem [shape: f32[2,1,256], index: 3, kind: input, shape index: {}]   ;;  %s1059_s4 = inlined_call_operand.vmem [shape: f32[2,32,256], index: 4, kind: input, shape index: {}]   ;;  %s1060_s5 = inlined_call_operand.vmem [shape: f32[2,32,256], index: 5, kind: output, shape index: {}]  }
   0x1   :  { %s909_s20 = smov 0   ;;  %s911_s21 = smov 0  }
   0x2   :  { %s913_s22 = smov 0   ;;  %s915_s23 = smov 0  }
   0x3   :  { %s917_s24 = smov 0  }
   0x4 LB: > { %s24_s25 = sadd.s32 1, %s864_s22  ;;  %s27_s26 = sadd.s32 1, %s868_s23  ;;  %s872_s24 = sphi %s917_s24, %s15_s24   ;;  %s868_s23 = sphi %s915_s23, %s1068_s23   ;;  %s864_s22 = sphi %s913_s22, %s1067_s22   ;;  %s860_s21 = sphi %s911_s21, %s1066_s21   ;;  %s856_s20 = sphi %s909_s20, %s1065_s20   ;;  %s852_s19 = sphi %s907_s19, %s1064_s19   ;;  %s848_s18 = sphi %s905_s18, %s1063_s18  }
   0x5   : > { %p25_p0 = scmp.ge.s32.totalorder %s24_s25, 2  ;;  %s700_s27 = sadd.s32 4294967295, %s872_s24  }
   0x6   : > { %p43_p1 = scmp.ne.s32.totalorder %s852_s19, %s848_s18  ;;  %p44_p2 = scmp.eq.s32.totalorder %s872_s24, 0 }
   0x7   : > { %s1070_s25 = smov (%p25_p0, %s24_s25), 0  ;;  %s1072_s26 = smov (!%p25_p0, %s27_s26), %s868_s23 }
   0x8   : > { %p29_p3 = scmp.ge.s32.totalorder %s1072_s26, 2  ;;  %p173_p4 = scmp.eq.s32.totalorder %s700_s27, 3 }
   0x9   : > { %s32_s28 = ssub.s32 %s864_s22, %s1070_s25  ;;  %p951_p5 = por %p44_p2, %p43_p1 }
   0xa   : > { %s1074_s26 = smov (%p29_p3, %s1072_s26), 0  ;;  %p957_p6 = por %p173_p4, %p43_p1 }
   0xb   : > { %s31_s6 = ssub.s32 %s868_s23, %s1074_s26  ;;  %s36_s8 = sadd.s32 1, %s852_s19 }
   0xc   : > { %s33_s7 = sor.u32 %s32_s28, %s31_s6  ;;  %p703_p8 = scmp.ge.s32.totalorder %s872_s24, 4 }
   0xd   : > { %p34_p7 = scmp.eq.s32.totalorder %s33_s7, 0 }
   0xe   : > { %201 = sbr.rel (%p703_p8) target bundleno = 37 (0x25), region = 24 }
   0xf   : > { %s965_s9 = scalar_select %p34_p7, %s852_s19, %s36_s8  }
  0x15   : > { %204 = sbr.rel (!%p951_p5) target bundleno = 29 (0x1d), region = 28  ;;  %s206_s10 = sand.u32 (%p951_p5), 1, %s852_s19  }
  0x16   : > { %s705_s11 = sshll.u32 (%p951_p5), %s868_s23, 3  ;;  %s704_s12 = sshll.u32 (%p951_p5), %s206_s10, 5 }
  0x17   : > { %s210_s13 = sadd.s32 (%p951_p5), %s864_s22, %s705_s11  ;;  %s208_s27 = scalar_lea.vmem (%p951_p5), [#allocation2], %s704_s12 }
  0x18   : > { %s706_s14 = sshll.u32 (%p951_p5), %s210_s13, 3 }
  0x19   : > { %s212_s17 = scalar_lea.vmem (%p951_p5), %s1055_s0, %s706_s14 }
  0x1a   : > { %v246_v0 = vld [vmem:[%s212_s17] sm:$0xff] (%p951_p5)  ;;  %v248_v1 = vld [vmem:[%s212_s17 + $0x10] sm:$0xff] (%p951_p5) }
  0x1b   : > { %v250_v2 = vld [vmem:[%s212_s17 + $0x20] sm:$0xff] (%p951_p5)  ;;  %247 = vst [vmem:[%s208_s27] sm:$0xff] (%p951_p5), %v246_v0  ;;  %249 = vst [vmem:[%s208_s27 + $0x8] sm:$0xff] (%p951_p5), %v248_v1  ;;  %v252_v3 = vld [vmem:[%s212_s17 + $0x30] sm:$0xff] (%p951_p5) }
  0x1c   : > { %251 = vst [vmem:[%s208_s27 + $0x10] sm:$0xff] %v250_v2  ;;  %253 = vst [vmem:[%s208_s27 + $0x18] sm:$0xff] %v252_v3 }
  0x1d PF: > { %269 = sbr.rel (!%p951_p5) target bundleno = 37 (0x25), region = 70  ;;  %s271_s28 = sand.u32 (%p951_p5), 1, %s852_s19  }
  0x1e   : > { %s708_s6 = sshll.u32 (%p951_p5), %s868_s23, 3  ;;  %s707_s7 = sshll.u32 (%p951_p5), %s271_s28, 5 }
  0x1f   : > { %s275_s8 = sadd.s32 (%p951_p5), %s864_s22, %s708_s6  ;;  %s273_s14 = scalar_lea.vmem (%p951_p5), [#allocation3], %s707_s7 }
  0x20   : > { %s709_s10 = sshll.u32 (%p951_p5), %s275_s8, 3 }
  0x21   : > { %s277_s12 = scalar_lea.vmem (%p951_p5), %s1059_s4, %s709_s10 }
  0x22   : > { %v311_v4 = vld [vmem:[%s277_s12] sm:$0xff] (%p951_p5)  ;;  %v313_v5 = vld [vmem:[%s277_s12 + $0x10] sm:$0xff] (%p951_p5) }
  0x23   : > { %v315_v6 = vld [vmem:[%s277_s12 + $0x20] sm:$0xff] (%p951_p5)  ;;  %312 = vst [vmem:[%s273_s14] sm:$0xff] (%p951_p5), %v311_v4  ;;  %314 = vst [vmem:[%s273_s14 + $0x8] sm:$0xff] (%p951_p5), %v313_v5  ;;  %v317_v7 = vld [vmem:[%s277_s12 + $0x30] sm:$0xff] (%p951_p5) }
  0x24   : > { %316 = vst [vmem:[%s273_s14 + $0x10] sm:$0xff] %v315_v6  ;;  %318 = vst [vmem:[%s273_s14 + $0x18] sm:$0xff] %v317_v7 }
  0x25 PF: > { %p710_p9 = scmp.ge.s32.totalorder %s872_s24, 1  ;;  %p323_p10 = scmp.lt.s32.totalorder %s872_s24, 5 }
  0x27   : > { %p324_p11 = pnand %p710_p9, %p323_p10 }
  0x28   : > { %s330_s29 = sand.u32 (!%p324_p11), 1, %s848_s18   ;;  %v386_v8 = vld [vmem:[%s1056_s1] sm:$0xff] (!%p324_p11)  ;;  %vm414_vm0 = vcmask (!%p324_p11), 261120   ;;  %v388_v9 = vld [vmem:[%s1056_s1 + $0x10] sm:$0xff] (!%p324_p11)  ;;  %v874_v12 = vmov (!%p324_p11), 0   ;;  %v393_v19 = vld [vmem:[%s1057_s2 + $0x18] sm:$0xff] (!%p324_p11) }
  0x29   : > { %327 = sbr.rel (%p324_p11) target bundleno = 282 (0x11a), region = 108  ;;  %s993_s28 = sshll.u32 (!%p324_p11), %s330_s29, 5  ;;  %741 = vmatprep.mubr.msk.f32.mxu0 (!%p324_p11), %vm414_vm0, %v386_v8  ;;  %744 = vmatprep.mubr.msk.f32.mxu1 (!%p324_p11), %vm414_vm0, %v388_v9  ;;  %v392_v10 = vld [vmem:[%s1057_s2 + $0x10] sm:$0xff] (!%p324_p11)  ;;  %v390_v11 = vld [vmem:[%s1057_s2] sm:$0xff] (!%p324_p11)  ;;  %v391_v20 = vld [vmem:[%s1057_s2 + $0x8] sm:$0xff] (!%p324_p11) }
  0x2a   : > { %817 = vset.pattern.permute.xlu1 (!%p324_p11), %v874_v12  ;;  %816 = vset.pattern.permute.xlu0 (!%p324_p11), %v874_v12  ;;  %s332_s10 = scalar_lea.vmem (!%p324_p11), [#allocation2], %s993_s28  ;;  %v387_v21 = vld [vmem:[%s1056_s1 + $0x8] sm:$0xff] (!%p324_p11)  ;;  %v389_v22 = vld [vmem:[%s1056_s1 + $0x18] sm:$0xff] (!%p324_p11)  ;;  %p374_p12 = scmp.lt.s32.totalorder (!%p324_p11), %s860_s21, 1 }
  0x2b   : > { %v381_v13 = vld [vmem:[%s332_s10] sm:$0xff] (!%p324_p11)  ;;  %v382_v14 = vld [vmem:[%s332_s10 + $0x8] sm:$0xff] (!%p324_p11)  ;;  %v383_v15 = vld [vmem:[%s332_s10 + $0x10] sm:$0xff] (!%p324_p11)  ;;  %406 = vperm.xlu1 (!%p324_p11), %817, %v392_v10   ;;  %396 = vperm.xlu0 (!%p324_p11), %816, %v390_v11   ;;  %p376_p13 = scmp.lt.s32.totalorder (!%p324_p11), %s856_s20, 1  ;;  %s339_s13 = scalar_lea.vmem (!%p324_p11), [#allocation3], %s993_s28 }
  0x2c   : > { %v747_v16 = vpack.c.bf16 (!%p324_p11), %v382_v14, %v381_v13  ;;  %v384_v17 = vld [vmem:[%s332_s10 + $0x18] sm:$0xff] (!%p324_p11)  ;;  %v523_v26 = vld [vmem:[%s339_s13 + $0x8] sm:$0xff] (!%p324_p11)  ;;  %v522_v30 = vld [vmem:[%s339_s13] sm:$0xff] (!%p324_p11)  ;;  %s373_s12 = scalar_lea.vmem (!%p324_p11), [#allocation4], %s993_s28 }
  0x2d   : > { %v751_v18 = vpack.c.bf16 (!%p324_p11), %v384_v17, %v383_v15  ;;  %v525_v27 = vld [vmem:[%s339_s13 + $0x18] sm:$0xff] (!%p324_p11)  ;;  %v524_v31 = vld [vmem:[%s339_s13 + $0x10] sm:$0xff] (!%p324_p11) }
  0x2e   : > { %748 = vmatprep.subr.bf16.mxu0 (!%p324_p11), %v747_v16  ;;  %755 = vmatprep.subr.bf16.mxu1 (!%p324_p11), %v747_v16 }
  0x2f   : > { %750 = vmatpush3.bf16.msra.mxu0 (!%p324_p11), %v747_v16  ;;  %757 = vmatpush3.bf16.msra.mxu1 (!%p324_p11), %v747_v16 }
  0x30   : > { %752 = vmatprep.subr.bf16.mxu0 %v751_v18  ;;  %756 = vmatprep.subr.bf16.mxu1 %v751_v18  ;;  %s375_s27 = scalar_select %p374_p12, %s860_s21, 1 }
  0x31   : > { %411 = vperm.xlu1 %817, %v393_v19   ;;  %401 = vperm.xlu0 %816, %v391_v20   ;;  %s377_s6 = scalar_select %p376_p13, %s856_s20, 1 }
  0x32   : > { %s714_s7 = sshll.u32 %s375_s27, 1  ;;  %s721_s14 = sshll.u32 (%p957_p6), %s860_s21, 3 }
  0x33   : > { %754 = vmatpush3.bf16.msra.mxu0 %v751_v18  ;;  %758 = vmatpush3.bf16.msra.mxu1 %v751_v18  ;;  %s379_s18 = sadd.s32 %s714_s7, %s377_s6  ;;  %s546_s29 = sadd.s32 (%p957_p6), %s856_s20, %s721_s14 }
  0x34   : > { %s380_s11 = scalar_lea.vmem %s1058_s3, %s379_s18  ;;  %s722_s15 = sshll.u32 (%p957_p6), %s546_s29, 3 }
  0x35   : > { %v719_v25 = vld [vmem:[%s380_s11] ss:$0 sm:$0xff]  ;;  %s548_s28 = scalar_lea.vmem (%p957_p6), %s1060_s5, %s722_s15 }
  0x36   : > { %742 = vmatmul.mubr.msk.f32.vlgmr.msra.gmra.mrb[0].mxu0 %vm414_vm0, %v387_v21  ;;  %745 = vmatmul.mubr.msk.f32.vlgmr.msra.gmra.mrb[0].mxu1 %vm414_vm0, %v389_v22  ;;  %v527_v35 = vmul.f32 %v719_v25, %v523_v26  ;;  %v529_v37 = vmul.f32 %v719_v25, %v525_v27  ;;  %v526_v41 = vmul.f32 %v719_v25, %v522_v30 }
  0x37   : > { %v528_v43 = vmul.f32 %v719_v25, %v524_v31 }
  0xaa   : > { %v407_v23 = vpop.permute.xlu1 %406  ;;  %v397_v24 = vpop.permute.xlu0 %396 }
  0xb0   : > { %v412_v28 = vpop.permute.xlu1 %411  ;;  %v402_v29 = vpop.permute.xlu0 %401 }
 0x109   : > { %v743_v32 = vpop.f32.mrb[0].mxu0  ;;  %v746_v33 = vpop.f32.mrb[0].mxu1 }
 0x10a   : > { %v499_v34 = vadd.f32 %v743_v32, %v402_v29  ;;  %v509_v36 = vadd.f32 %v746_v33, %v412_v28  ;;  %v493_v38 = vpop.f32.mrb[1].mxu0  ;;  %v503_v39 = vpop.f32.mrb[1].mxu1 }
 0x10b   : > { %v494_v40 = vadd.f32 %v493_v38, %v397_v24  ;;  %v504_v42 = vadd.f32 %v503_v39, %v407_v23  ;;  %544 = sbr.rel (!%p957_p6) target bundleno = 282 (0x11a), region = 120 }
 0x10c   : > { %v519_v44 = vmul.f32 %v719_v25, %v499_v34  ;;  %v521_v45 = vmul.f32 %v719_v25, %v509_v36 }
 0x10d   : > { %v518_v46 = vmul.f32 %v719_v25, %v494_v40  ;;  %v520_v47 = vmul.f32 %v719_v25, %v504_v42 }
 0x10e   : > { %v531_v48 = vadd.f32 %v527_v35, %v519_v44  ;;  %v533_v49 = vadd.f32 %v529_v37, %v521_v45 }
 0x10f   : > { %v530_v50 = vadd.f32 %v526_v41, %v518_v46  ;;  %v532_v51 = vadd.f32 %v528_v43, %v520_v47 }
 0x110   : > { %535 = vst [vmem:[%s373_s12 + $0x8] sm:$0xff] %v531_v48  ;;  %537 = vst [vmem:[%s373_s12 + $0x18] sm:$0xff] %v533_v49 }
 0x111   : > { %534 = vst [vmem:[%s373_s12] sm:$0xff] %v530_v50  ;;  %536 = vst [vmem:[%s373_s12 + $0x10] sm:$0xff] %v532_v51 }
 0x117   : > { %v584_v53 = vld [vmem:[%s373_s12 + $0x8] sm:$0xff]  ;;  %v588_v55 = vld [vmem:[%s373_s12 + $0x18] sm:$0xff] }
 0x118   : > { %v582_v52 = vld [vmem:[%s373_s12] sm:$0xff]  ;;  %v586_v54 = vld [vmem:[%s373_s12 + $0x10] sm:$0xff]  ;;  %585 = vst [vmem:[%s548_s28 + $0x10] sm:$0xff] %v584_v53  ;;  %589 = vst [vmem:[%s548_s28 + $0x30] sm:$0xff] %v588_v55 }
 0x119   : > { %583 = vst [vmem:[%s548_s28] sm:$0xff] %v582_v52  ;;  %587 = vst [vmem:[%s548_s28 + $0x20] sm:$0xff] %v586_v54 }
 0x11a PF: > { %s15_s24 = sadd.s32 1, %s872_s24   ;;  %s1063_s18 = smov %s852_s19 }
 0x11b   : > { %p12_p0 = scmp.ge.s32.totalorder %s15_s24, 6   ;;  %s1064_s19 = smov %s965_s9 }
 0x11c   : > { %s1065_s20 = smov %s864_s22  ;;  %s1066_s21 = smov %s868_s23 }
 0x11d   : > { %s1067_s22 = smov %s1070_s25  ;;  %s1068_s23 = smov %s1074_s26 }
 0x11e   :  { %14 = sbr.rel (!%p12_p0) target bundleno = 4 (0x4), region = 200 }

// kernel: transformer_block.6
= control target key start
LH: loop header
LB: loop body
LE: loop exit
PB: predicated region body
PF: predicated region fallthrough
CT: control target
= control target key end

     0   :  { %s1435_s15 = smov 0   ;;  %s1437_s16 = smov 0   ;;  %s1910_s0 = inlined_call_operand.vmem [shape: f32[2,32,256], index: 0, kind: input, shape index: {}]   ;;  %s1911_s1 = inlined_call_operand.vmem [shape: f32[2,32,256], index: 1, kind: input, shape index: {}]   ;;  %s1912_s2 = inlined_call_operand.vmem [shape: f32[2,32,256], index: 2, kind: input, shape index: {}]   ;;  %s1913_s3 = inlined_call_operand.vmem [shape: f32[2,1,256], index: 3, kind: input, shape index: {}]   ;;  %s1914_s4 = inlined_call_operand.vmem [shape: f32[2,32,256], index: 4, kind: output, shape index: {}]  }
   0x1   :  { %s1439_s17 = smov 0   ;;  %s1441_s18 = smov 0  }
   0x2   :  { %s1443_s19 = smov 0   ;;  %s1445_s20 = smov 0  }
   0x3   :  { %s1447_s21 = smov 0  }
   0x4 LB: > { %s26_s22 = sadd.s32 1, %s1394_s18  ;;  %s29_s23 = sadd.s32 1, %s1398_s19  ;;  %s1406_s21 = sphi %s1447_s21, %s14_s21   ;;  %s1402_s20 = sphi %s1445_s20, %s1920_s20   ;;  %s1398_s19 = sphi %s1443_s19, %s1919_s19   ;;  %s1394_s18 = sphi %s1441_s18, %s1918_s18   ;;  %s1390_s17 = sphi %s1439_s17, %s1917_s17   ;;  %s1386_s16 = sphi %s1437_s16, %s1916_s16   ;;  %s1382_s15 = sphi %s1435_s15, %s1915_s15  }
   0x5   : > { %p27_p0 = scmp.ge.s32.totalorder %s26_s22, 2  ;;  %p1134_p1 = scmp.ge.s32.totalorder %s1406_s21, 1 }
   0x6   : > { %p237_p2 = scmp.lt.s32.totalorder %s1406_s21, 17  ;;  %s33_s24 = sadd.s32 1, %s1402_s20 }
   0x7   : > { %s1922_s22 = smov (%p27_p0, %s26_s22), 0  ;;  %s1924_s23 = smov (!%p27_p0, %s29_s23), %s1398_s19 }
   0x8   : > { %p238_p3 = pnand %p1134_p1, %p237_p2  ;;  %p31_p4 = scmp.ge.s32.totalorder %s1924_s23, 4 }
   0x9   : > { %p299_p6 = scmp.lt.s32.totalorder (!%p238_p3), %s1390_s17, 1  ;;  %p301_p7 = scmp.lt.s32.totalorder (!%p238_p3), %s1386_s16, 3  ;;  %v1408_v0 = vmov (!%p238_p3), 0.0   ;;  %vm384_vm0 = vcmask (!%p238_p3), 64512   ;;  %v596_v21 = vlaneseq (!%p238_p3)  ;;  %v1409_v25 = vmov (!%p238_p3), 0  }
   0xa   : > { %s1926_s23 = smov (%p31_p4, %s1924_s23), 0  ;;  %s1928_s24 = smov (!%p31_p4, %s33_s24), %s1402_s20 }
   0xb   : > { %p35_p5 = scmp.ge.s32.totalorder %s1928_s24, 2  ;;  %241 = sbr.rel (%p238_p3) target bundleno = 970 (0x3ca), region = 36  ;;  %497 = vmatprep.mubr.f32.mxu0 (!%p238_p3), %v1408_v0  ;;  %v1534_v23 = vshrl.u32 (!%p238_p3), %v596_v21, 7 }
   0xc   : > { %p303_p8 = scmp.lt.s32.totalorder (!%p238_p3), %s1382_s15, 1 }
   0xd   : > { %s1930_s24 = smov (%p35_p5, %s1928_s24), 0  ;;  %v598_v24 = vsub.s32 (!%p238_p3), 0, %v1534_v23  ;;  %v602_v27 = vsub.s32 (!%p238_p3), 1, %v1534_v23 }
  0x12   : > { %s1932_s17 = smov (!%p299_p6, %s1390_s17), 1  ;;  %s1934_s16 = smov (!%p301_p7, %s1386_s16), 3 }
  0x13   : > { %s1936_s15 = smov (!%p303_p8, %s1382_s15), 1  ;;  %s1135_s25 = sshll.u32 %s1934_s16, 1 }
  0x14   : > { %s1136_s26 = sshll.u32 %s1932_s17, 3  ;;  %s306_s27 = sadd.s32 %s1135_s25, %s1936_s15 }
  0x15   : > { %s1481_s28 = sadd.s32 %s1136_s26, %s306_s27  ;;  %s1484_s30 = sadd.s32 %s1136_s26, %s1135_s25 }
  0x16   : > { %s1137_s29 = sshll.u32 %s1481_s28, 3  ;;  %s1140_s8 = sshll.u32 %s1484_s30, 3 }
  0x17   : > { %s310_s7 = scalar_lea.vmem %s1910_s0, %s1137_s29  ;;  %s319_s11 = scalar_lea.vmem %s1911_s1, %s1140_s8 }
  0x18   : > { %v345_v1 = vld [vmem:[%s310_s7] sm:$0xff]  ;;  %v348_v3 = vld [vmem:[%s319_s11 + $0x8] sm:$0xff]  ;;  %s1144_s12 = sshll.u32 %s1932_s17, 1  ;;  %s1842_s25 = scalar_lea.vmem %s1912_s2, %s1140_s8 }
  0x19   : > { %v346_v2 = vmul.f32 0.35355338, %v345_v1  ;;  %v347_v4 = vld [vmem:[%s319_s11] sm:$0xff]  ;;  %433 = vmatprep.subr.mxu0 %v348_v3  ;;  %s332_s15 = scalar_lea.vmem %s1913_s3, %s1144_s12  ;;  %s344_s30 = scalar_lea.vmem %s1914_s4, %s1137_s29 }
  0x1a   : > { %434 = vmatpush1.msra.mxu0 %v347_v4  ;;  %v1532_v22 = vld [vmem:[%s332_s15] sm:$0x3] }
  0x1b   : > { %352 = vxpose.xlu0.b32.start.end [1/1] (short) %v346_v2, 128  ;;  %vm594_vm1 = vcmp.gt.f32.partialorder %v1532_v22, 0.0 }
  0x1c   : > { %v595_v26 = vsel %vm594_vm1, 1, %v1409_v25 }
  0x1d   : > { %v1541_v28 = vrot.slane %v595_v26, %v598_v24  ;;  %v1545_v29 = vrot.slane %v595_v26, %v602_v27 }
  0x1f   : > { %vm604_vm2 = vcmp.eq.s32.totalorder %v1541_v28, 1  ;;  %vm605_vm3 = vcmp.eq.s32.totalorder %v1545_v29, 1 }
  0x9b   : > { %v368_v5 = vpop.trf.xlu0 }
  0x9c   : > { %1148 = vmatmul.mubr.msk.f32.vlgmr.msra.gmra.mrb[0].mxu0 %vm384_vm0, %v368_v5 }
  0x9d   : > { %503 = vmatprep.mubr.f32.mxu0 %v1408_v0 }
  0x9f   : > { %v369_v6 = vpop.trf.xlu0 }
  0xa0   : > { %1149 = vmatmul.mubr.msk.f32.gmra.mrb[2].mxu0 %vm384_vm0, %v369_v6 }
  0xa1   : > { %509 = vmatprep.mubr.f32.mxu0 %v1408_v0 }
  0xa3   : > { %v370_v7 = vpop.trf.xlu0 }
  0xa4   : > { %1150 = vmatmul.mubr.msk.f32.gmra.mrb[4].mxu0 %vm384_vm0, %v370_v7 }
  0xa5   : > { %515 = vmatprep.mubr.f32.mxu0 %v1408_v0 }
  0xa7   : > { %v371_v8 = vpop.trf.xlu0 }
  0xa8   : > { %1151 = vmatmul.mubr.msk.f32.gmra.mrb[6].mxu0 %vm384_vm0, %v371_v8 }
  0xa9   : > { %521 = vmatprep.mubr.f32.mxu0 %v1408_v0 }
  0xab   : > { %v372_v9 = vpop.trf.xlu0 }
  0xac   : > { %1152 = vmatmul.mubr.msk.f32.gmra.mrb[8].mxu0 %vm384_vm0, %v372_v9 }
  0xad   : > { %527 = vmatprep.mubr.f32.mxu0 %v1408_v0 }
  0xaf   : > { %v373_v10 = vpop.trf.xlu0 }
  0xb0   : > { %1153 = vmatmul.mubr.msk.f32.gmra.mrb[10].mxu0 %vm384_vm0, %v373_v10 }
  0xb1   : > { %533 = vmatprep.mubr.f32.mxu0 %v1408_v0 }
  0xb3   : > { %v374_v11 = vpop.trf.xlu0 }
  0xb4   : > { %1154 = vmatmul.mubr.msk.f32.gmra.mrb[12].mxu0 %vm384_vm0, %v374_v11 }
  0xb5   : > { %539 = vmatprep.mubr.f32.mxu0 %v1408_v0 }
  0xb7   : > { %v375_v12 = vpop.trf.xlu0 }
  0xb8   : > { %1155 = vmatmul.mubr.msk.f32.gmra.mrb[14].mxu0 %vm384_vm0, %v375_v12 }
  0xb9   : > { %545 = vmatprep.mubr.f32.mxu0 %v1408_v0 }
  0xbb   : > { %v376_v13 = vpop.trf.xlu0 }
  0xbc   : > { %1156 = vmatmul.mubr.msk.f32.gmra.mrb[16].mxu0 %vm384_vm0, %v376_v13 }
  0xbd   : > { %551 = vmatprep.mubr.f32.mxu0 %v1408_v0 }
  0xbf   : > { %v377_v14 = vpop.trf.xlu0 }
  0xc0   : > { %1157 = vmatmul.mubr.msk.f32.gmra.mrb[18].mxu0 %vm384_vm0, %v377_v14 }
  0xc1   : > { %557 = vmatprep.mubr.f32.mxu0 %v1408_v0 }
  0xc3   : > { %v378_v15 = vpop.trf.xlu0 }
  0xc4   : > { %1158 = vmatmul.mubr.msk.f32.gmra.mrb[20].mxu0 %vm384_vm0, %v378_v15 }
  0xc5   : > { %563 = vmatprep.mubr.f32.mxu0 %v1408_v0 }
  0xc7   : > { %v379_v16 = vpop.trf.xlu0 }
  0xc8   : > { %1159 = vmatmul.mubr.msk.f32.gmra.mrb[22].mxu0 %vm384_vm0, %v379_v16 }
  0xc9   : > { %569 = vmatprep.mubr.f32.mxu0 %v1408_v0 }
  0xcb   : > { %v380_v17 = vpop.trf.xlu0 }
  0xcc   : > { %1160 = vmatmul.mubr.msk.f32.gmra.mrb[24].mxu0 %vm384_vm0, %v380_v17 }
  0xcd   : > { %575 = vmatprep.mubr.f32.mxu0 %v1408_v0 }
  0xcf   : > { %v381_v18 = vpop.trf.xlu0 }
  0xd0   : > { %1161 = vmatmul.mubr.msk.f32.gmra.mrb[26].mxu0 %vm384_vm0, %v381_v18 }
  0xd1   : > { %581 = vmatprep.mubr.f32.mxu0 %v1408_v0 }
  0xd3   : > { %v382_v19 = vpop.trf.xlu0 }
  0xd4   : > { %1162 = vmatmul.mubr.msk.f32.gmra.mrb[28].mxu0 %vm384_vm0, %v382_v19 }
  0xd5   : > { %587 = vmatprep.mubr.f32.mxu0 %v1408_v0 }
  0xd7   : > { %v383_v20 = vpop.trf.xlu0 }
  0xd8   : > { %1163 = vmatmul.mubr.msk.f32.gmra.mrb[30].mxu0 %vm384_vm0, %v383_v20 }
 0x16f   : > { %v499_v30 = vpop.f32.mrb[0].mxu0 }
 0x170   : > { %v1551_v31 = vsel %vm604_vm2, %v499_v30, -1e+30  ;;  %v501_v32 = vpop.f32.mrb[1].mxu0 }
 0x171   : > { %v1555_v33 = vsel %vm605_vm3, %v501_v32, -1e+30 }
 0x172   : > { %v638_v34 = vmax.f32 %v1551_v31, %v1555_v33 }
 0x173   : > { %v505_v35 = vpop.f32.mrb[2].mxu0 }
 0x174   : > { %v1561_v36 = vsel %vm604_vm2, %v505_v35, -1e+30  ;;  %639 = vmax.xlane.f32.xlu0 %v638_v34  ;;  %v507_v37 = vpop.f32.mrb[3].mxu0 }
 0x175   : > { %v1565_v38 = vsel %vm605_vm3, %v507_v37, -1e+30 }
 0x176   : > { %v641_v39 = vmax.f32 %v1561_v36, %v1565_v38 }
 0x177   : > { %v511_v40 = vpop.f32.mrb[4].mxu0 }
 0x178   : > { %v1571_v41 = vsel %vm604_vm2, %v511_v40, -1e+30  ;;  %642 = vmax.xlane.f32.xlu1 %v641_v39  ;;  %v513_v42 = vpop.f32.mrb[5].mxu0 }
 0x179   : > { %v1575_v43 = vsel %vm605_vm3, %v513_v42, -1e+30 }
 0x17a   : > { %v644_v44 = vmax.f32 %v1571_v41, %v1575_v43 }
 0x17b   : > { %v517_v45 = vpop.f32.mrb[6].mxu0 }
 0x17c   : > { %v1581_v46 = vsel %vm604_vm2, %v517_v45, -1e+30  ;;  %645 = vmax.xlane.f32.xlu1 %v644_v44  ;;  %v519_v47 = vpop.f32.mrb[7].mxu0 }
 0x17d   : > { %v1585_v48 = vsel %vm605_vm3, %v519_v47, -1e+30 }
 0x17e   : > { %v647_v49 = vmax.f32 %v1581_v46, %v1585_v48 }
 0x17f   : > { %v523_v50 = vpop.f32.mrb[8].mxu0 }
 0x180   : > { %v1591_v51 = vsel %vm604_vm2, %v523_v50, -1e+30  ;;  %648 = vmax.xlane.f32.xlu1 %v647_v49  ;;  %v525_v52 = vpop.f32.mrb[9].mxu0 }
 0x181   : > { %v1595_v53 = vsel %vm605_vm3, %v525_v52, -1e+30 }
 0x182   : > { %v650_v54 = vmax.f32 %v1591_v51, %v1595_v53 }
 0x183   : > { %v529_v55 = vpop.f32.mrb[10].mxu0 }
 0x184   : > { %v1601_v56 = vsel %vm604_vm2, %v529_v55, -1e+30  ;;  %651 = vmax.xlane.f32.xlu1 %v650_v54  ;;  %v531_v57 = vpop.f32.mrb[11].mxu0 }
 0x185   : > { %v1605_v58 = vsel %vm605_vm3, %v531_v57, -1e+30 }
 0x186   : > { %v653_v59 = vmax.f32 %v1601_v56, %v1605_v58 }
 0x187   : > { %v535_v60 = vpop.f32.mrb[12].mxu0 }
 0x188   : > { %v1611_v61 = vsel %vm604_vm2, %v535_v60, -1e+30  ;;  %654 = vmax.xlane.f32.xlu1 %v653_v59  ;;  %v537_v62 = vpop.f32.mrb[13].mxu0 }
 0x189   : > { %v1615_v63 = vsel %vm605_vm3, %v537_v62, -1e+30 }
 0x18a   : > { %v656_v0 = vmax.f32 %v1611_v61, %v1615_v63 }
 0x18b   : > { %v541_v1 = vpop.f32.mrb[14].mxu0 }
 0x18c   : > { %v1621_v2 = vsel %vm604_vm2, %v541_v1, -1e+30  ;;  %657 = vmax.xlane.f32.xlu1 %v656_v0  ;;  %v543_v3 = vpop.f32.mrb[15].mxu0 }
 0x18d   : > { %v1625_v4 = vsel %vm605_vm3, %v543_v3, -1e+30 }
 0x18e   : > { %v659_v5 = vmax.f32 %v1621_v2, %v1625_v4 }
 0x18f   : > { %v547_v6 = vpop.f32.mrb[16].mxu0 }
 0x190   : > { %v1631_v7 = vsel %vm604_vm2, %v547_v6, -1e+30  ;;  %660 = vmax.xlane.f32.xlu1 %v659_v5  ;;  %v549_v8 = vpop.f32.mrb[17].mxu0 }
 0x191   : > { %v1635_v9 = vsel %vm605_vm3, %v549_v8, -1e+30 }
 0x192   : > { %v662_v10 = vmax.f32 %v1631_v7, %v1635_v9 }
 0x193   : > { %v553_v11 = vpop.f32.mrb[18].mxu0 }
 0x194   : > { %v1641_v12 = vsel %vm604_vm2, %v553_v11, -1e+30  ;;  %663 = vmax.xlane.f32.xlu1 %v662_v10  ;;  %v555_v13 = vpop.f32.mrb[19].mxu0 }
 0x195   : > { %v1645_v14 = vsel %vm605_vm3, %v555_v13, -1e+30 }
 0x196   : > { %v665_v15 = vmax.f32 %v1641_v12, %v1645_v14 }
 0x197   : > { %v559_v16 = vpop.f32.mrb[20].mxu0 }
 0x198   : > { %v1651_v17 = vsel %vm604_vm2, %v559_v16, -1e+30  ;;  %666 = vmax.xlane.f32.xlu1 %v665_v15  ;;  %v561_v18 = vpop.f32.mrb[21].mxu0 }
 0x199   : > { %v1655_v19 = vsel %vm605_vm3, %v561_v18, -1e+30 }
 0x19a   : > { %v668_v20 = vmax.f32 %v1651_v17, %v1655_v19 }
 0x19b   : > { %v565_v21 = vpop.f32.mrb[22].mxu0 }
 0x19c   : > { %v1661_v25 = vsel %vm604_vm2, %v565_v21, -1e+30  ;;  %669 = vmax.xlane.f32.xlu1 %v668_v20  ;;  %v567_v26 = vpop.f32.mrb[23].mxu0 }
 0x19d   : > { %v1665_v30 = vsel %vm605_vm3, %v567_v26, -1e+30 }
 0x19e   : > { %v671_v32 = vmax.f32 %v1661_v25, %v1665_v30 }
 0x19f   : > { %v571_v34 = vpop.f32.mrb[24].mxu0 }
 0x1a0   : > { %v1671_v35 = vsel %vm604_vm2, %v571_v34, -1e+30  ;;  %672 = vmax.xlane.f32.xlu1 %v671_v32  ;;  %v573_v37 = vpop.f32.mrb[25].mxu0 }
 0x1a1   : > { %v1675_v39 = vsel %vm605_vm3, %v573_v37, -1e+30 }
 0x1a2   : > { %v674_v40 = vmax.f32 %v1671_v35, %v1675_v39 }
 0x1a3   : > { %v577_v42 = vpop.f32.mrb[26].mxu0 }
 0x1a4   : > { %v1681_v44 = vsel %vm604_vm2, %v577_v42, -1e+30  ;;  %675 = vmax.xlane.f32.xlu1 %v674_v40  ;;  %v579_v45 = vpop.f32.mrb[27].mxu0 }
 0x1a5   : > { %v1685_v47 = vsel %vm605_vm3, %v579_v45, -1e+30 }
 0x1a6   : > { %v677_v49 = vmax.f32 %v1681_v44, %v1685_v47 }
 0x1a7   : > { %v583_v50 = vpop.f32.mrb[28].mxu0 }
 0x1a8   : > { %v1691_v52 = vsel %vm604_vm2, %v583_v50, -1e+30  ;;  %678 = vmax.xlane.f32.xlu1 %v677_v49  ;;  %v585_v54 = vpop.f32.mrb[29].mxu0 }
 0x1a9   : > { %v1695_v55 = vsel %vm605_vm3, %v585_v54, -1e+30 }
 0x1aa   : > { %v680_v57 = vmax.f32 %v1691_v52, %v1695_v55 }
 0x1ab   : > { %v589_v59 = vpop.f32.mrb[30].mxu0 }
 0x1ac   : > { %v1701_v60 = vsel %vm604_vm2, %v589_v59, -1e+30  ;;  %681 = vmax.xlane.f32.xlu1 %v680_v57  ;;  %v591_v62 = vpop.f32.mrb[31].mxu0 }
 0x1ad   : > { %v1705_v0 = vsel %vm605_vm3, %v591_v62, -1e+30 }
 0x1ae   : > { %v683_v1 = vmax.f32 %v1701_v60, %v1705_v0 }
 0x1b0   : > { %684 = vmax.xlane.f32.xlu1 %v683_v1 }
 0x201   : > { %v640_v3 = vpop.xlane.xlu0 %639 }
 0x202   : > { %v686_v5 = vsub.f32 %v1551_v31, %v640_v3  ;;  %v687_v6 = vsub.f32 %v1555_v33, %v640_v3 }
 0x204   : > { %v718_v8 = vmul.f32 1.442695, %v686_v5  ;;  %v720_v10 = vmul.f32 1.442695, %v687_v6 }
 0x205   : > { %v643_v28 = vpop.xlane.xlu1 %642 }
 0x206   : > { %1256 = vpow2.f32 %v718_v8  ;;  %v688_v11 = vsub.f32 %v1561_v36, %v643_v28  ;;  %v689_v13 = vsub.f32 %v1565_v38, %v643_v28 }
 0x207   : > { %1258 = vpow2.f32 %v720_v10 }
 0x208   : > { %v722_v29 = vmul.f32 1.442695, %v688_v11  ;;  %v724_v15 = vmul.f32 1.442695, %v689_v13 }
 0x209   : > { %v646_v16 = vpop.xlane.xlu1 %645 }
 0x20a   : > { %1260 = vpow2.f32 %v722_v29  ;;  %v690_v18 = vsub.f32 %v1571_v41, %v646_v16  ;;  %v691_v20 = vsub.f32 %v1575_v43, %v646_v16 }
 0x20b   : > { %1262 = vpow2.f32 %v724_v15 }
 0x20c   : > { %v726_v31 = vmul.f32 1.442695, %v690_v18  ;;  %v728_v33 = vmul.f32 1.442695, %v691_v20 }
 0x20d   : > { %v649_v21 = vpop.xlane.xlu1 %648 }
 0x20e   : > { %1264 = vpow2.f32 %v726_v31  ;;  %v692_v26 = vsub.f32 %v1581_v46, %v649_v21  ;;  %v693_v36 = vsub.f32 %v1585_v48, %v649_v21 }
 0x20f   : > { %1266 = vpow2.f32 %v728_v33 }
 0x210   : > { %v1717_v38 = vpop.eup %1256  ;;  %v730_v32 = vmul.f32 1.442695, %v692_v26  ;;  %v732_v34 = vmul.f32 1.442695, %v693_v36 }
 0x211   : > { %v1719_v37 = vpop.eup %1258  ;;  %v652_v40 = vpop.xlane.xlu1 %651 }
 0x212   : > { %1268 = vpow2.f32 %v730_v32  ;;  %v694_v41 = vsub.f32 %v1591_v51, %v652_v40  ;;  %v695_v43 = vsub.f32 %v1595_v53, %v652_v40  ;;  %v782_v42 = vadd.f32 %v1719_v37, %v1717_v38 }
 0x213   : > { %1270 = vpow2.f32 %v732_v34 }
 0x214   : > { %v1725_v46 = vpop.eup %1260  ;;  %v734_v48 = vmul.f32 1.442695, %v694_v41  ;;  %v736_v45 = vmul.f32 1.442695, %v695_v43  ;;  %783 = vadd.xlane.f32.xlu1 %v782_v42 }
 0x215   : > { %v1727_v49 = vpop.eup %1262  ;;  %v655_v50 = vpop.xlane.xlu1 %654 }
 0x216   : > { %1272 = vpow2.f32 %v734_v48  ;;  %v696_v54 = vsub.f32 %v1601_v56, %v655_v50  ;;  %v697_v57 = vsub.f32 %v1605_v58, %v655_v50  ;;  %v785_v51 = vadd.f32 %v1727_v49, %v1725_v46 }
 0x217   : > { %1274 = vpow2.f32 %v736_v45 }
 0x218   : > { %v1733_v53 = vpop.eup %1264  ;;  %v738_v59 = vmul.f32 1.442695, %v696_v54  ;;  %v740_v62 = vmul.f32 1.442695, %v697_v57  ;;  %786 = vadd.xlane.f32.xlu1 %v785_v51 }
 0x219   : > { %v1735_v1 = vpop.eup %1266  ;;  %v658_v3 = vpop.xlane.xlu1 %657 }
 0x21a   : > { %1276 = vpow2.f32 %v738_v59  ;;  %v698_v5 = vsub.f32 %v1611_v61, %v658_v3  ;;  %v699_v6 = vsub.f32 %v1615_v63, %v658_v3  ;;  %v788_v56 = vadd.f32 %v1735_v1, %v1733_v53 }
 0x21b   : > { %1278 = vpow2.f32 %v740_v62 }
 0x21c   : > { %v1741_v58 = vpop.eup %1268  ;;  %v742_v8 = vmul.f32 1.442695, %v698_v5  ;;  %v744_v10 = vmul.f32 1.442695, %v699_v6  ;;  %789 = vadd.xlane.f32.xlu1 %v788_v56 }
 0x21d   : > { %v1743_v28 = vpop.eup %1270  ;;  %v661_v11 = vpop.xlane.xlu1 %660 }
 0x21e   : > { %1280 = vpow2.f32 %v742_v8  ;;  %v700_v13 = vsub.f32 %v1621_v2, %v661_v11  ;;  %v701_v29 = vsub.f32 %v1625_v4, %v661_v11  ;;  %v791_v61 = vadd.f32 %v1743_v28, %v1741_v58 }
 0x21f   : > { %1282 = vpow2.f32 %v744_v10 }
 0x220   : > { %v1749_v63 = vpop.eup %1272  ;;  %v746_v15 = vmul.f32 1.442695, %v700_v13  ;;  %v748_v16 = vmul.f32 1.442695, %v701_v29  ;;  %792 = vadd.xlane.f32.xlu1 %v791_v61 }
 0x221   : > { %v1751_v18 = vpop.eup %1274  ;;  %v664_v20 = vpop.xlane.xlu1 %663 }
 0x222   : > { %1284 = vpow2.f32 %v746_v15  ;;  %v702_v31 = vsub.f32 %v1631_v7, %v664_v20  ;;  %v703_v33 = vsub.f32 %v1635_v9, %v664_v20  ;;  %v794_v2 = vadd.f32 %v1751_v18, %v1749_v63 }
 0x223   : > { %1286 = vpow2.f32 %v748_v16 }
 0x224   : > { %v1757_v4 = vpop.eup %1276  ;;  %v750_v21 = vmul.f32 1.442695, %v702_v31  ;;  %v752_v26 = vmul.f32 1.442695, %v703_v33  ;;  %795 = vadd.xlane.f32.xlu1 %v794_v2 }
 0x225   : > { %v1759_v36 = vpop.eup %1278  ;;  %v667_v32 = vpop.xlane.xlu1 %666 }
 0x226   : > { %1288 = vpow2.f32 %v750_v21  ;;  %v704_v34 = vsub.f32 %v1641_v12, %v667_v32  ;;  %v705_v40 = vsub.f32 %v1645_v14, %v667_v32  ;;  %v797_v7 = vadd.f32 %v1759_v36, %v1757_v4 }
 0x227   : > { %1290 = vpow2.f32 %v752_v26 }
 0x228   : > { %v1765_v9 = vpop.eup %1280  ;;  %v754_v41 = vmul.f32 1.442695, %v704_v34  ;;  %v756_v43 = vmul.f32 1.442695, %v705_v40  ;;  %798 = vadd.xlane.f32.xlu1 %v797_v7 }
 0x229   : > { %v1767_v42 = vpop.eup %1282  ;;  %v670_v48 = vpop.xlane.xlu1 %669 }
 0x22a   : > { %1292 = vpow2.f32 %v754_v41  ;;  %v706_v45 = vsub.f32 %v1651_v17, %v670_v48  ;;  %v707_v50 = vsub.f32 %v1655_v19, %v670_v48  ;;  %v800_v12 = vadd.f32 %v1767_v42, %v1765_v9 }
 0x22b   : > { %1294 = vpow2.f32 %v756_v43 }
 0x22c   : > { %v1773_v14 = vpop.eup %1284  ;;  %v758_v54 = vmul.f32 1.442695, %v706_v45  ;;  %v760_v57 = vmul.f32 1.442695, %v707_v50  ;;  %801 = vadd.xlane.f32.xlu1 %v800_v12 }
 0x22d   : > { %v1775_v51 = vpop.eup %1286  ;;  %v673_v59 = vpop.xlane.xlu1 %672 }
 0x22e   : > { %1296 = vpow2.f32 %v758_v54  ;;  %v708_v62 = vsub.f32 %v1661_v25, %v673_v59  ;;  %v709_v3 = vsub.f32 %v1665_v30, %v673_v59  ;;  %v803_v17 = vadd.f32 %v1775_v51, %v1773_v14 }
 0x22f   : > { %1298 = vpow2.f32 %v760_v57 }
 0x230   : > { %v1781_v19 = vpop.eup %1288  ;;  %v762_v5 = vmul.f32 1.442695, %v708_v62  ;;  %v764_v6 = vmul.f32 1.442695, %v709_v3  ;;  %804 = vadd.xlane.f32.xlu1 %v803_v17 }
 0x231   : > { %v1783_v56 = vpop.eup %1290  ;;  %v676_v8 = vpop.xlane.xlu1 %675 }
 0x232   : > { %1300 = vpow2.f32 %v762_v5  ;;  %v710_v10 = vsub.f32 %v1671_v35, %v676_v8  ;;  %v711_v11 = vsub.f32 %v1675_v39, %v676_v8  ;;  %v806_v25 = vadd.f32 %v1783_v56, %v1781_v19 }
 0x233   : > { %1302 = vpow2.f32 %v764_v6  ;;  %v886_v8 = vrot.slane %v1532_v22, %v602_v27 }
 0x234   : > { %v1789_v30 = vpop.eup %1292  ;;  %v766_v13 = vmul.f32 1.442695, %v710_v10  ;;  %v768_v29 = vmul.f32 1.442695, %v711_v11  ;;  %807 = vadd.xlane.f32.xlu1 %v806_v25  ;;  %v350_v10 = vld [vmem:[%s1842_s25 + $0x8] sm:$0xff] }
 0x235   : > { %v1791_v61 = vpop.eup %1294  ;;  %v679_v15 = vpop.xlane.xlu1 %678  ;;  %v890_v11 = vmul.f32 %v886_v8, %v350_v10 }
 0x236   : > { %1304 = vpow2.f32 %v766_v13  ;;  %v712_v16 = vsub.f32 %v1681_v44, %v679_v15  ;;  %v713_v20 = vsub.f32 %v1685_v47, %v679_v15  ;;  %v809_v35 = vadd.f32 %v1791_v61, %v1789_v30 }
 0x237   : > { %1306 = vpow2.f32 %v768_v29  ;;  %955 = vmatprep.mubr.f32.mxu1 %v890_v11 }
 0x238   : > { %v1797_v39 = vpop.eup %1296  ;;  %v770_v31 = vmul.f32 1.442695, %v712_v16  ;;  %v772_v33 = vmul.f32 1.442695, %v713_v20  ;;  %810 = vadd.xlane.f32.xlu1 %v809_v35 }
 0x239   : > { %v1799_v2 = vpop.eup %1298  ;;  %v682_v21 = vpop.xlane.xlu1 %681 }
 0x23a   : > { %1308 = vpow2.f32 %v770_v31  ;;  %v714_v26 = vsub.f32 %v1691_v52, %v682_v21  ;;  %v715_v32 = vsub.f32 %v1695_v55, %v682_v21  ;;  %v812_v44 = vadd.f32 %v1799_v2, %v1797_v39 }
 0x23b   : > { %1310 = vpow2.f32 %v772_v33 }
 0x23c   : > { %v1805_v47 = vpop.eup %1300  ;;  %v774_v34 = vmul.f32 1.442695, %v714_v26  ;;  %v776_v40 = vmul.f32 1.442695, %v715_v32  ;;  %813 = vadd.xlane.f32.xlu1 %v812_v44 }
 0x23d   : > { %v1807_v7 = vpop.eup %1302  ;;  %v685_v41 = vpop.xlane.xlu1 %684 }
 0x23e   : > { %1312 = vpow2.f32 %v774_v34  ;;  %v716_v43 = vsub.f32 %v1701_v60, %v685_v41  ;;  %v717_v48 = vsub.f32 %v1705_v0, %v685_v41  ;;  %v815_v52 = vadd.f32 %v1807_v7, %v1805_v47 }
 0x23f   : > { %1314 = vpow2.f32 %v776_v40 }
 0x240   : > { %v1813_v55 = vpop.eup %1304  ;;  %v778_v45 = vmul.f32 1.442695, %v716_v43  ;;  %v780_v50 = vmul.f32 1.442695, %v717_v48  ;;  %816 = vadd.xlane.f32.xlu1 %v815_v52 }
 0x241   : > { %v1815_v12 = vpop.eup %1306 }
 0x242   : > { %1316 = vpow2.f32 %v778_v45  ;;  %v818_v54 = vadd.f32 %v1815_v12, %v1813_v55 }
 0x243   : > { %1318 = vpow2.f32 %v780_v50 }
 0x244   : > { %v1819_v60 = vpop.eup %1308  ;;  %819 = vadd.xlane.f32.xlu1 %v818_v54 }
 0x245   : > { %v1821_v0 = vpop.eup %1310 }
 0x246   : > { %v821_v57 = vadd.f32 %v1821_v0, %v1819_v60 }
 0x248   : > { %v1825_v59 = vpop.eup %1312  ;;  %822 = vadd.xlane.f32.xlu0 %v821_v57 }
 0x249   : > { %v1827_v62 = vpop.eup %1314 }
 0x24a   : > { %v824_v3 = vadd.f32 %v1827_v62, %v1825_v59 }
 0x24c   : > { %v1831_v17 = vpop.eup %1316  ;;  %825 = vadd.xlane.f32.xlu1 %v824_v3 }
 0x24d   : > { %v1833_v5 = vpop.eup %1318 }
 0x24e   : > { %v827_v6 = vadd.f32 %v1833_v5, %v1831_v17 }
 0x250   : > { %828 = vadd.xlane.f32.xlu0 %v827_v6 }
 0x2a1   : > { %v784_v25 = vpop.xlane.xlu1 %783 }
 0x2a2   : > { %1320 = vrcp.f32 %v784_v25 }
 0x2a5   : > { %v787_v13 = vpop.xlane.xlu1 %786 }
 0x2a6   : > { %1322 = vrcp.f32 %v787_v13 }
 0x2a9   : > { %v790_v29 = vpop.xlane.xlu1 %789 }
 0x2aa   : > { %1324 = vrcp.f32 %v790_v29 }
 0x2ac   : > { %v1321_v16 = vpop.eup %1320 }
 0x2ad   : > { %v793_v15 = vpop.xlane.xlu1 %792  ;;  %v832_v31 = vmul.f32 %v1321_v16, %v1719_v37  ;;  %v831_v27 = vmul.f32 %v1321_v16, %v1717_v38 }
 0x2ae   : > { %1326 = vrcp.f32 %v793_v15 }
 0x2b0   : > { %v1323_v20 = vpop.eup %1322 }
 0x2b1   : > { %v796_v35 = vpop.xlane.xlu1 %795  ;;  %v835_v33 = vmul.f32 %v1323_v20, %v1727_v49  ;;  %v834_v21 = vmul.f32 %v1323_v20, %v1725_v46 }
 0x2b2   : > { %1328 = vrcp.f32 %v796_v35 }
 0x2b3   : > { %v1166_v26 = vpack.c.bf16 %v835_v33, %v832_v31  ;;  %v1168_v32 = vpack.c.bf16 %v834_v21, %v831_v27 }
 0x2b4   : > { %v1325_v34 = vpop.eup %1324 }
 0x2b5   : > { %1167 = vmatprep.subr.bf16.mxu1 %v1166_v26  ;;  %v799_v44 = vpop.xlane.xlu1 %798  ;;  %v838_v43 = vmul.f32 %v1325_v34, %v1735_v1  ;;  %v837_v49 = vmul.f32 %v1325_v34, %v1733_v53 }
 0x2b6   : > { %1330 = vrcp.f32 %v799_v44  ;;  %1169 = vmatpush1.bf16.xpose.msra.mxu1 %v1168_v32 }
 0x2b8   : > { %v1327_v40 = vpop.eup %1326 }
 0x2b9   : > { %v802_v41 = vpop.xlane.xlu1 %801  ;;  %v841_v37 = vmul.f32 %v1327_v40, %v1743_v28  ;;  %v840_v38 = vmul.f32 %v1327_v40, %v1741_v58 }
 0x2ba   : > { %1332 = vrcp.f32 %v802_v41 }
 0x2bb   : > { %v1170_v48 = vpack.c.bf16 %v841_v37, %v838_v43  ;;  %v1172_v46 = vpack.c.bf16 %v840_v38, %v837_v49 }
 0x2bc   : > { %v1329_v45 = vpop.eup %1328 }
 0x2bd   : > { %1171 = vmatprep.subr.bf16.mxu1 %v1170_v48  ;;  %v805_v52 = vpop.xlane.xlu1 %804  ;;  %v844_v57 = vmul.f32 %v1329_v45, %v1751_v18  ;;  %v843_v28 = vmul.f32 %v1329_v45, %v1749_v63  ;;  %v349_v45 = vld [vmem:[%s1842_s25] sm:$0xff] }
 0x2be   : > { %1334 = vrcp.f32 %v805_v52  ;;  %1173 = vmatpush1.bf16.xpose.msra.mxu1 %v1172_v46 }
 0x2c0   : > { %v1331_v50 = vpop.eup %1330 }
 0x2c1   : > { %v808_v54 = vpop.xlane.xlu1 %807  ;;  %v847_v1 = vmul.f32 %v1331_v50, %v1759_v36  ;;  %v846_v53 = vmul.f32 %v1331_v50, %v1757_v4 }
 0x2c2   : > { %1336 = vrcp.f32 %v808_v54 }
 0x2c3   : > { %v1174_v3 = vpack.c.bf16 %v847_v1, %v844_v57  ;;  %v1176_v58 = vpack.c.bf16 %v846_v53, %v843_v28 }
 0x2c4   : > { %v1333_v8 = vpop.eup %1332 }
 0x2c5   : > { %1175 = vmatprep.subr.bf16.mxu1 %v1174_v3  ;;  %v811_v6 = vpop.xlane.xlu1 %810  ;;  %v850_v25 = vmul.f32 %v1333_v8, %v1767_v42  ;;  %v849_v36 = vmul.f32 %v1333_v8, %v1765_v9 }
 0x2c6   : > { %1338 = vrcp.f32 %v811_v6  ;;  %1177 = vmatpush1.bf16.xpose.msra.mxu1 %v1176_v58 }
 0x2c8   : > { %v1335_v10 = vpop.eup %1334 }
 0x2c9   : > { %v814_v11 = vpop.xlane.xlu1 %813  ;;  %v853_v18 = vmul.f32 %v1335_v10, %v1775_v51  ;;  %v852_v63 = vmul.f32 %v1335_v10, %v1773_v14 }
 0x2ca   : > { %1340 = vrcp.f32 %v814_v11 }
 0x2cb   : > { %v1178_v13 = vpack.c.bf16 %v853_v18, %v850_v25  ;;  %v1180_v4 = vpack.c.bf16 %v852_v63, %v849_v36 }
 0x2cc   : > { %v1337_v15 = vpop.eup %1336 }
 0x2cd   : > { %1179 = vmatprep.subr.bf16.mxu1 %v1178_v13  ;;  %v817_v29 = vpop.xlane.xlu1 %816  ;;  %v856_v35 = vmul.f32 %v1337_v15, %v1783_v56  ;;  %v855_v51 = vmul.f32 %v1337_v15, %v1781_v19 }
 0x2ce   : > { %1342 = vrcp.f32 %v817_v29  ;;  %1181 = vmatpush1.bf16.xpose.msra.mxu1 %v1180_v4 }
 0x2d0   : > { %v1339_v16 = vpop.eup %1338 }
 0x2d1   : > { %v820_v20 = vpop.xlane.xlu1 %819  ;;  %v859_v42 = vmul.f32 %v1339_v16, %v1791_v61  ;;  %v858_v9 = vmul.f32 %v1339_v16, %v1789_v30 }
 0x2d2   : > { %1344 = vrcp.f32 %v820_v20 }
 0x2d3   : > { %v1182_v31 = vpack.c.bf16 %v859_v42, %v856_v35  ;;  %v1184_v14 = vpack.c.bf16 %v858_v9, %v855_v51 }
 0x2d4   : > { %v1341_v27 = vpop.eup %1340 }
 0x2d5   : > { %1183 = vmatprep.subr.bf16.mxu1 %v1182_v31  ;;  %v823_v33 = vpop.xlane.xlu0 %822  ;;  %v862_v32 = vmul.f32 %v1341_v27, %v1799_v2  ;;  %v861_v61 = vmul.f32 %v1341_v27, %v1797_v39 }
 0x2d6   : > { %1346 = vrcp.f32 %v823_v33  ;;  %1185 = vmatpush1.bf16.xpose.msra.mxu1 %v1184_v14 }
 0x2d8   : > { %v1343_v21 = vpop.eup %1342 }
 0x2d9   : > { %v826_v26 = vpop.xlane.xlu1 %825  ;;  %v865_v56 = vmul.f32 %v1343_v21, %v1807_v7  ;;  %v864_v19 = vmul.f32 %v1343_v21, %v1805_v47 }
 0x2da   : > { %1348 = vrcp.f32 %v826_v26 }
 0x2db   : > { %v1186_v44 = vpack.c.bf16 %v865_v56, %v862_v32  ;;  %v1188_v30 = vpack.c.bf16 %v864_v19, %v861_v61 }
 0x2dc   : > { %v1345_v40 = vpop.eup %1344 }
 0x2dd   : > { %1187 = vmatprep.subr.bf16.mxu1 %v1186_v44  ;;  %v829_v34 = vpop.xlane.xlu0 %828  ;;  %v868_v43 = vmul.f32 %v1345_v40, %v1815_v12  ;;  %v867_v2 = vmul.f32 %v1345_v40, %v1813_v55 }
 0x2de   : > { %1350 = vrcp.f32 %v829_v34  ;;  %1189 = vmatpush1.bf16.xpose.msra.mxu1 %v1188_v30 }
 0x2e0   : > { %v1347_v41 = vpop.eup %1346 }
 0x2e1   : > { %v871_v37 = vmul.f32 %v1347_v41, %v1821_v0  ;;  %v870_v7 = vmul.f32 %v1347_v41, %v1819_v60  ;;  %v882_v60 = vrot.slane %v1532_v22, %v598_v24 }
 0x2e3   : > { %v1190_v39 = vpack.c.bf16 %v871_v37, %v868_v43  ;;  %v1192_v47 = vpack.c.bf16 %v870_v7, %v867_v2  ;;  %v889_v50 = vmul.f32 %v882_v60, %v349_v45 }
 0x2e4   : > { %v1349_v49 = vpop.eup %1348 }
 0x2e5   : > { %1191 = vmatprep.subr.bf16.mxu1 %v1190_v39  ;;  %v874_v48 = vmul.f32 %v1349_v49, %v1827_v62  ;;  %v873_v12 = vmul.f32 %v1349_v49, %v1825_v59 }
 0x2e6   : > { %1193 = vmatpush1.bf16.xpose.msra.mxu1 %v1192_v47 }
 0x2e8   : > { %v1351_v38 = vpop.eup %1350 }
 0x2e9   : > { %v877_v46 = vmul.f32 %v1351_v38, %v1833_v5  ;;  %v876_v0 = vmul.f32 %v1351_v38, %v1831_v17 }
 0x2eb   : > { %v1194_v52 = vpack.c.bf16 %v877_v46, %v874_v48  ;;  %v1196_v55 = vpack.c.bf16 %v876_v0, %v873_v12 }
 0x2ed   : > { %1195 = vmatprep.subr.bf16.mxu1 %v1194_v52 }
 0x2ee   : > { %1197 = vmatpush1.bf16.xpose.msra.mxu1 %v1196_v55 }
 0x2f5   : > { %956 = vmatmul.mubr.f32.vlgmr.msra.gmra.mrb[0].mxu1 %v889_v50 }
 0x3c8   : > { %v957_v62 = vpop.f32.mrb[0].mxu1 }
 0x3c9   : > { %961 = vst [vmem:[%s344_s30] sm:$0xff] %v957_v62  ;;  %v959_v59 = vpop.f32.mrb[1].mxu1 }
 0x3ca PF: > { %s14_s21 = sadd.s32 1, %s1406_s21   ;;  %s1915_s15 = smov %s1394_s18 }
 0x3cb   : > { %p11_p9 = scmp.ge.s32.totalorder %s14_s21, 18   ;;  %s1916_s16 = smov %s1398_s19 }
 0x3cc   : > { %s1917_s17 = smov %s1402_s20  ;;  %s1918_s18 = smov %s1922_s22 }
 0x3cd   : > { %s1919_s19 = smov %s1926_s23  ;;  %s1920_s20 = smov %s1930_s24 }
 0x3ce   :  { %13 = sbr.rel (!%p11_p9) target bundleno = 4 (0x4), region = 75 }

// kernel: transformer_block.8
= control target key start
LH: loop header
LB: loop body
LE: loop exit
PB: predicated region body
PF: predicated region fallthrough
CT: control target
= control target key end

     0   :  { %s1614_s18 = smov 0   ;;  %s1616_s19 = smov 0   ;;  %s2179_s0 = inlined_call_operand.vmem [shape: f32[2,32,256], index: 0, kind: input, shape index: {}]   ;;  %s2180_s1 = inlined_call_operand.vmem [shape: f32[32,1], index: 1, kind: input, shape index: {}]   ;;  %s2181_s2 = inlined_call_operand.vmem [shape: f32[32,1], index: 2, kind: input, shape index: {}]   ;;  %s2182_s3 = inlined_call_operand.vmem [shape: f32[128,32], index: 3, kind: input, shape index: {}]   ;;  %s2183_s4 = inlined_call_operand.vmem [shape: f32[128,1], index: 4, kind: input, shape index: {}]   ;;  %s2184_s5 = inlined_call_operand.vmem [shape: f32[2,128,256], index: 5, kind: output, shape index: {}]  }
   0x1   :  { %s1618_s20 = smov 0   ;;  %s1620_s21 = smov 0  }
   0x2   :  { %s1622_s22 = smov 0   ;;  %s1624_s23 = smov 0  }
   0x3   :  { %s1626_s24 = smov 0  }
   0x4 LB: > { %s24_s25 = sadd.s32 1, %s1573_s22  ;;  %s27_s26 = sadd.s32 1, %s1577_s23  ;;  %s1581_s24 = sphi %s1626_s24, %s15_s24   ;;  %s1577_s23 = sphi %s1624_s23, %s2191_s23   ;;  %s1573_s22 = sphi %s1622_s22, %s2190_s22   ;;  %s1569_s21 = sphi %s1620_s21, %s2189_s21   ;;  %s1565_s20 = sphi %s1618_s20, %s2188_s20   ;;  %s1561_s19 = sphi %s1616_s19, %s2187_s19   ;;  %s1557_s18 = sphi %s1614_s18, %s2186_s18  }
   0x5   : > { %p25_p0 = scmp.ge.s32.totalorder %s24_s25, 2  ;;  %s1307_s27 = sadd.s32 4294967295, %s1581_s24  }
   0x6   : > { %p43_p1 = scmp.ne.s32.totalorder %s1561_s19, %s1557_s18  ;;  %p44_p2 = scmp.eq.s32.totalorder %s1581_s24, 0 }
   0x7   : > { %s2193_s25 = smov (%p25_p0, %s24_s25), 0  ;;  %s2195_s26 = smov (!%p25_p0, %s27_s26), %s1577_s23 }
   0x8   : > { %p29_p3 = scmp.ge.s32.totalorder %s2195_s26, 2  ;;  %p159_p4 = scmp.eq.s32.totalorder %s1307_s27, 3 }
   0x9   : > { %s32_s28 = ssub.s32 %s1573_s22, %s2193_s25  ;;  %p45_p5 = por %p44_p2, %p43_p1 }
   0xa   : > { %s2197_s26 = smov (%p29_p3, %s2195_s26), 0  ;;  %p1662_p6 = por %p159_p4, %p43_p1 }
   0xb   : > { %s31_s30 = ssub.s32 %s1577_s23, %s2197_s26  ;;  %s36_s7 = sadd.s32 1, %s1561_s19 }
   0xc   : > { %s33_s6 = sor.u32 %s32_s28, %s31_s30  ;;  %p1310_p8 = scmp.ge.s32.totalorder %s1581_s24, 4 }
   0xd   : > { %p34_p7 = scmp.eq.s32.totalorder %s33_s6, 0 }
   0xe   : > { %193 = sbr.rel (%p1310_p8) target bundleno = 29 (0x1d), region = 32 }
   0xf   : > { %s1670_s8 = scalar_select %p34_p7, %s1561_s19, %s36_s7  }
  0x15   : > { %196 = sbr.rel (!%p45_p5) target bundleno = 29 (0x1d), region = 36  ;;  %s198_s9 = sand.u32 (%p45_p5), 1, %s1561_s19  }
  0x16   : > { %s1312_s10 = sshll.u32 (%p45_p5), %s1577_s23, 3  ;;  %s1311_s11 = sshll.u32 (%p45_p5), %s198_s9, 5 }
  0x17   : > { %s202_s12 = sadd.s32 (%p45_p5), %s1573_s22, %s1312_s10  ;;  %s200_s17 = scalar_lea.vmem (%p45_p5), [#allocation2], %s1311_s11 }
  0x18   : > { %s1313_s13 = sshll.u32 (%p45_p5), %s202_s12, 3 }
  0x19   : > { %s204_s16 = scalar_lea.vmem (%p45_p5), %s2179_s0, %s1313_s13 }
  0x1a   : > { %v238_v0 = vld [vmem:[%s204_s16] sm:$0xff] (%p45_p5)  ;;  %v240_v1 = vld [vmem:[%s204_s16 + $0x10] sm:$0xff] (%p45_p5) }
  0x1b   : > { %v242_v2 = vld [vmem:[%s204_s16 + $0x20] sm:$0xff] (%p45_p5)  ;;  %239 = vst [vmem:[%s200_s17] sm:$0xff] (%p45_p5), %v238_v0  ;;  %241 = vst [vmem:[%s200_s17 + $0x8] sm:$0xff] (%p45_p5), %v240_v1  ;;  %v244_v3 = vld [vmem:[%s204_s16 + $0x30] sm:$0xff] (%p45_p5) }
  0x1c   : > { %243 = vst [vmem:[%s200_s17 + $0x10] sm:$0xff] %v242_v2  ;;  %245 = vst [vmem:[%s200_s17 + $0x18] sm:$0xff] %v244_v3 }
  0x1d PF: > { %p1314_p9 = scmp.ge.s32.totalorder %s1581_s24, 1  ;;  %p250_p10 = scmp.lt.s32.totalorder %s1581_s24, 5 }
  0x1f   : > { %p251_p11 = pnand %p1314_p9, %p250_p10 }
  0x20   : > { %v291_v4 = vld [vmem:[%s2181_s2] sm:$0xff] (!%p251_p11)  ;;  %v1583_v6 = vmov (!%p251_p11), 0   ;;  %v292_v7 = vld [vmem:[%s2181_s2 + $0x8] sm:$0xff] (!%p251_p11)  ;;  %v290_v9 = vld [vmem:[%s2180_s1 + $0x18] sm:$0xff] (!%p251_p11)  ;;  %s257_s30 = sand.u32 (!%p251_p11), 1, %s1557_s18   ;;  %vm490_vm0 = vcmask (!%p251_p11), 261120  }
  0x21   : > { %254 = sbr.rel (%p251_p11) target bundleno = 523 (0x20b), region = 74  ;;  %v287_v5 = vld [vmem:[%s2180_s1] sm:$0xff] (!%p251_p11)  ;;  %1460 = vset.pattern.permute.xlu1 (!%p251_p11), %v1583_v6  ;;  %1459 = vset.pattern.permute.xlu0 (!%p251_p11), %v1583_v6  ;;  %v288_v8 = vld [vmem:[%s2180_s1 + $0x8] sm:$0xff] (!%p251_p11)  ;;  %v289_v10 = vld [vmem:[%s2180_s1 + $0x10] sm:$0xff] (!%p251_p11)  ;;  %s1315_s6 = sshll.u32 (!%p251_p11), %s257_s30, 5 }
  0x22   : > { %356 = vperm.xlu1 (!%p251_p11), %1460, %v291_v4   ;;  %332 = vperm.xlu0 (!%p251_p11), %1459, %v287_v5   ;;  %v294_v11 = vld [vmem:[%s2181_s2 + $0x18] sm:$0xff] (!%p251_p11)  ;;  %v293_v12 = vld [vmem:[%s2181_s2 + $0x10] sm:$0xff] (!%p251_p11)  ;;  %v395_v13 = vld [vmem:[%s2183_s4 + $0x8] sm:$0xff] (!%p251_p11)  ;;  %s259_s7 = scalar_lea.vmem (!%p251_p11), [#allocation2], %s1315_s6  ;;  %s1316_s10 = sshll.u32 (!%p251_p11), %s257_s30, 7 }
  0x23   : > { %v394_v14 = vld [vmem:[%s2183_s4] sm:$0xff] (!%p251_p11)  ;;  %v397_v15 = vld [vmem:[%s2183_s4 + $0x18] sm:$0xff] (!%p251_p11)  ;;  %v396_v16 = vld [vmem:[%s2183_s4 + $0x10] sm:$0xff] (!%p251_p11)  ;;  %s1978_s18 = scalar_lea.vmem (!%p251_p11), [#allocation3], %s1316_s10 }
  0x24   : > { %v378_v17 = vld [vmem:[%s2182_s3] sm:$0xff] (!%p251_p11)  ;;  %v284_v20 = vld [vmem:[%s259_s7 + $0x8] sm:$0xff] (!%p251_p11)  ;;  %v285_v24 = vld [vmem:[%s259_s7 + $0x10] sm:$0xff] (!%p251_p11) }
  0x25   : > { %v386_v18 = vld [vmem:[%s2182_s3 + $0x40] sm:$0xff] (!%p251_p11)  ;;  %1366 = vmatprep.mubr.msk.f32.mxu0 (!%p251_p11), %vm490_vm0, %v378_v17  ;;  %v399_v21 = vld [vmem:[%s2183_s4 + $0x28] sm:$0xff] (!%p251_p11)  ;;  %v401_v25 = vld [vmem:[%s2183_s4 + $0x38] sm:$0xff] (!%p251_p11) }
  0x26   : > { %361 = vperm.xlu1 (!%p251_p11), %1460, %v292_v7   ;;  %337 = vperm.xlu0 (!%p251_p11), %1459, %v288_v8   ;;  %v283_v19 = vld [vmem:[%s259_s7] sm:$0xff] (!%p251_p11)  ;;  %v400_v26 = vld [vmem:[%s2183_s4 + $0x30] sm:$0xff] (!%p251_p11)  ;;  %v286_v28 = vld [vmem:[%s259_s7 + $0x18] sm:$0xff] (!%p251_p11) }
  0x27   : > { %1378 = vmatprep.mubr.msk.f32.mxu1 (!%p251_p11), %vm490_vm0, %v386_v18  ;;  %v398_v22 = vld [vmem:[%s2183_s4 + $0x20] sm:$0xff] (!%p251_p11)  ;;  %v295_v23 = vadd.f32 (!%p251_p11), %v284_v20, %v283_v19  ;;  %v403_v29 = vld [vmem:[%s2183_s4 + $0x48] sm:$0xff] (!%p251_p11)  ;;  %v405_v32 = vld [vmem:[%s2183_s4 + $0x58] sm:$0xff] (!%p251_p11) }
  0x28   : > { %v402_v30 = vld [vmem:[%s2183_s4 + $0x40] sm:$0xff]  ;;  %v404_v33 = vld [vmem:[%s2183_s4 + $0x50] sm:$0xff]  ;;  %v407_v35 = vld [vmem:[%s2183_s4 + $0x68] sm:$0xff]  ;;  %s1334_s30 = sshll.u32 (%p1662_p6), %s1569_s21, 5 }
  0x29   : > { %v296_v27 = vadd.f32 %v295_v23, %v285_v24  ;;  %v406_v36 = vld [vmem:[%s2183_s4 + $0x60] sm:$0xff]  ;;  %v409_v38 = vld [vmem:[%s2183_s4 + $0x78] sm:$0xff]  ;;  %v408_v39 = vld [vmem:[%s2183_s4 + $0x70] sm:$0xff]  ;;  %s1140_s29 = sadd.s32 (%p1662_p6), %s1565_s20, %s1334_s30 }
  0x2a   : > { %347 = vperm.xlu1 %1460, %v290_v9   ;;  %342 = vperm.xlu0 %1459, %v289_v10   ;;  %v379_v23 = vld [vmem:[%s2182_s3 + $0x8] sm:$0xff]  ;;  %s1335_s11 = sshll.u32 (%p1662_p6), %s1140_s29, 3 }
  0x2b   : > { %v297_v31 = vadd.f32 %v296_v27, %v286_v28  ;;  %v381_v27 = vld [vmem:[%s2182_s3 + $0x18] sm:$0xff]  ;;  %s1142_s6 = scalar_lea.vmem (%p1662_p6), %s2184_s5, %s1335_s11 }
  0x2d   : > { %v298_v34 = vrot.slane %v297_v31, 4 }
  0x2e   : > { %371 = vperm.xlu1 %1460, %v294_v11   ;;  %366 = vperm.xlu0 %1459, %v293_v12  }
  0x2f   : > { %v299_v37 = vadd.f32 %v298_v34, %v297_v31  ;;  %v383_v31 = vld [vmem:[%s2182_s3 + $0x28] sm:$0xff]  ;;  %v392_v34 = vld [vmem:[%s2182_s3 + $0x70] sm:$0xff] }
  0x31   : > { %v300_v40 = vrot.slane %v299_v37, 2 }
  0x32   : > { %417 = vperm.xlu1 %1460, %v395_v13   ;;  %412 = vperm.xlu0 %1459, %v394_v14  }
  0x33   : > { %v301_v41 = vadd.f32 %v300_v40, %v299_v37 }
  0x35   : > { %v302_v42 = vrot.slane %v301_v41, 1 }
  0x36   : > { %427 = vperm.xlu1 %1460, %v397_v15   ;;  %422 = vperm.xlu0 %1459, %v396_v16  }
  0x37   : > { %v303_v43 = vadd.f32 %v302_v42, %v301_v41 }
  0x39   : > { %v305_v44 = vmul.f32 0.03125, %v303_v43 }
  0x3a   : > { %437 = vperm.xlu1 %1460, %v399_v21   ;;  %432 = vperm.xlu0 %1459, %v398_v22  }
  0x3b   : > { %v306_v45 = vsub.f32 %v283_v19, %v305_v44  ;;  %v307_v46 = vsub.f32 %v284_v20, %v305_v44  ;;  %v308_v47 = vsub.f32 %v285_v24, %v305_v44  ;;  %v309_v50 = vsub.f32 %v286_v28, %v305_v44  ;;  %v387_v24 = vld [vmem:[%s2182_s3 + $0x48] sm:$0xff]  ;;  %v389_v28 = vld [vmem:[%s2182_s3 + $0x58] sm:$0xff] }
  0x3d   : > { %v310_v48 = vmul.f32 %v306_v45, %v306_v45  ;;  %v311_v49 = vmul.f32 %v307_v46, %v307_v46  ;;  %v312_v51 = vmul.f32 %v308_v47, %v308_v47  ;;  %v313_v53 = vmul.f32 %v309_v50, %v309_v50 }
  0x3e   : > { %447 = vperm.xlu1 %1460, %v401_v25   ;;  %442 = vperm.xlu0 %1459, %v400_v26   ;;  %v380_v25 = vld [vmem:[%s2182_s3 + $0x10] sm:$0xff] }
  0x3f   : > { %v314_v52 = vadd.f32 %v311_v49, %v310_v48  ;;  %v388_v26 = vld [vmem:[%s2182_s3 + $0x50] sm:$0xff] }
  0x41   : > { %v315_v54 = vadd.f32 %v314_v52, %v312_v51 }
  0x42   : > { %457 = vperm.xlu1 %1460, %v403_v29   ;;  %452 = vperm.xlu0 %1459, %v402_v30   ;;  %v382_v29 = vld [vmem:[%s2182_s3 + $0x20] sm:$0xff] }
  0x43   : > { %v316_v55 = vadd.f32 %v315_v54, %v313_v53  ;;  %v390_v30 = vld [vmem:[%s2182_s3 + $0x60] sm:$0xff] }
  0x45   : > { %v317_v56 = vrot.slane %v316_v55, 4 }
  0x46   : > { %467 = vperm.xlu1 %1460, %v405_v32   ;;  %462 = vperm.xlu0 %1459, %v404_v33   ;;  %v391_v32 = vld [vmem:[%s2182_s3 + $0x68] sm:$0xff]  ;;  %v384_v33 = vld [vmem:[%s2182_s3 + $0x30] sm:$0xff] }
  0x47   : > { %v318_v57 = vadd.f32 %v317_v56, %v316_v55 }
  0x49   : > { %v319_v58 = vrot.slane %v318_v57, 2 }
  0x4a   : > { %477 = vperm.xlu1 %1460, %v407_v35   ;;  %472 = vperm.xlu0 %1459, %v406_v36   ;;  %v385_v35 = vld [vmem:[%s2182_s3 + $0x38] sm:$0xff] }
  0x4b   : > { %v320_v59 = vadd.f32 %v319_v58, %v318_v57  ;;  %v393_v36 = vld [vmem:[%s2182_s3 + $0x78] sm:$0xff] }
  0x4d   : > { %v321_v60 = vrot.slane %v320_v59, 1 }
  0x4e   : > { %487 = vperm.xlu1 %1460, %v409_v38   ;;  %482 = vperm.xlu0 %1459, %v408_v39  }
  0x4f   : > { %v322_v61 = vadd.f32 %v321_v60, %v320_v59 }
  0x51   : > { %v323_v62 = vmul.f32 0.03125, %v322_v61 }
  0x53   : > { %v324_v63 = vadd.f32 1e-05, %v323_v62 }
  0x55   : > { %1461 = vrsqrt.f32 %v324_v63 }
  0x5f   : > { %v1462_v0 = vpop.eup %1461 }
  0x60   : > { %v326_v1 = vmul.f32 %v1462_v0, %v306_v45  ;;  %v327_v4 = vmul.f32 %v1462_v0, %v307_v46  ;;  %v329_v11 = vmul.f32 %v1462_v0, %v309_v50  ;;  %v328_v12 = vmul.f32 %v1462_v0, %v308_v47 }
  0xa1   : > { %v357_v2 = vpop.permute.xlu1 %356  ;;  %v333_v3 = vpop.permute.xlu0 %332 }
  0xa2   : > { %v350_v5 = vmul.f32 %v333_v3, %v326_v1 }
  0xa4   : > { %v374_v9 = vadd.f32 %v357_v2, %v350_v5 }
  0xa5   : > { %v362_v6 = vpop.permute.xlu1 %361  ;;  %v338_v7 = vpop.permute.xlu0 %337 }
  0xa6   : > { %v351_v8 = vmul.f32 %v338_v7, %v327_v4 }
  0xa8   : > { %v375_v10 = vadd.f32 %v362_v6, %v351_v8 }
  0xa9   : > { %v348_v13 = vpop.permute.xlu1 %347  ;;  %v343_v14 = vpop.permute.xlu0 %342 }
  0xaa   : > { %v1390_v15 = vpack.c.bf16 %v375_v10, %v374_v9  ;;  %v353_v16 = vmul.f32 %v348_v13, %v329_v11  ;;  %v352_v17 = vmul.f32 %v343_v14, %v328_v12 }
  0xac   : > { %1391 = vmatprep.subr.bf16.mxu0 %v1390_v15  ;;  %1398 = vmatprep.subr.bf16.mxu1 %v1390_v15 }
  0xad   : > { %v372_v18 = vpop.permute.xlu1 %371  ;;  %v367_v19 = vpop.permute.xlu0 %366  ;;  %1393 = vmatpush3.bf16.msra.mxu0 %v1390_v15  ;;  %1400 = vmatpush3.bf16.msra.mxu1 %v1390_v15 }
  0xae   : > { %v377_v20 = vadd.f32 %v372_v18, %v353_v16  ;;  %v376_v21 = vadd.f32 %v367_v19, %v352_v17 }
  0xb0   : > { %v1394_v22 = vpack.c.bf16 %v377_v20, %v376_v21 }
  0xb1   : > { %v418_v37 = vpop.permute.xlu1 %417  ;;  %v413_v38 = vpop.permute.xlu0 %412 }
  0xb2   : > { %1395 = vmatprep.subr.bf16.mxu0 %v1394_v22  ;;  %1399 = vmatprep.subr.bf16.mxu1 %v1394_v22 }
  0xb3   : > { %1397 = vmatpush3.bf16.msra.mxu0 %v1394_v22  ;;  %1401 = vmatpush3.bf16.msra.mxu1 %v1394_v22 }
  0xb5   : > { %v428_v39 = vpop.permute.xlu1 %427  ;;  %v423_v40 = vpop.permute.xlu0 %422 }
  0xb6   : > { %1367 = vmatmul.mubr.msk.f32.vlgmr.msra.gmra.mrb[0].mxu0 %vm490_vm0, %v379_v23  ;;  %1379 = vmatmul.mubr.msk.f32.vlgmr.msra.gmra.mrb[0].mxu1 %vm490_vm0, %v387_v24 }
  0xb7   : > { %1369 = vmatprep.mubr.msk.f32.mxu0 %vm490_vm0, %v380_v25  ;;  %1381 = vmatprep.mubr.msk.f32.mxu1 %vm490_vm0, %v388_v26 }
  0xb9   : > { %v1820_v41 = vpop.permute.xlu1 %437  ;;  %v1822_v42 = vpop.permute.xlu0 %432 }
  0xba   : > { %1370 = vmatmul.mubr.msk.f32.gmra.mrb[2].mxu0 %vm490_vm0, %v381_v27  ;;  %1382 = vmatmul.mubr.msk.f32.gmra.mrb[2].mxu1 %vm490_vm0, %v389_v28 }
  0xbb   : > { %1372 = vmatprep.mubr.msk.f32.mxu0 %vm490_vm0, %v382_v29  ;;  %1384 = vmatprep.mubr.msk.f32.mxu1 %vm490_vm0, %v390_v30 }
  0xbd   : > { %v1824_v43 = vpop.permute.xlu1 %447  ;;  %v1826_v44 = vpop.permute.xlu0 %442 }
  0xbe   : > { %1373 = vmatmul.mubr.msk.f32.gmra.mrb[4].mxu0 %vm490_vm0, %v383_v31  ;;  %1385 = vmatmul.mubr.msk.f32.gmra.mrb[4].mxu1 %vm490_vm0, %v391_v32 }
  0xbf   : > { %1375 = vmatprep.mubr.msk.f32.mxu0 %vm490_vm0, %v384_v33  ;;  %1387 = vmatprep.mubr.msk.f32.mxu1 %vm490_vm0, %v392_v34 }
  0xc1   : > { %v458_v45 = vpop.permute.xlu1 %457  ;;  %v453_v46 = vpop.permute.xlu0 %452 }
  0xc2   : > { %1376 = vmatmul.mubr.msk.f32.gmra.mrb[6].mxu0 %vm490_vm0, %v385_v35  ;;  %1388 = vmatmul.mubr.msk.f32.gmra.mrb[6].mxu1 %vm490_vm0, %v393_v36 }
  0xc5   : > { %v468_v2 = vpop.permute.xlu1 %467  ;;  %v463_v3 = vpop.permute.xlu0 %462 }
 0x189   : > { %v1368_v47 = vpop.f32.mrb[0].mxu0  ;;  %v1380_v48 = vpop.f32.mrb[0].mxu1 }
 0x18a   : > { %v611_v49 = vadd.f32 %v1368_v47, %v418_v37  ;;  %v651_v50 = vadd.f32 %v1380_v48, %v458_v45  ;;  %v605_v51 = vpop.f32.mrb[1].mxu0  ;;  %v645_v52 = vpop.f32.mrb[1].mxu1 }
 0x18b   : > { %v606_v53 = vadd.f32 %v605_v51, %v413_v38  ;;  %v646_v54 = vadd.f32 %v645_v52, %v453_v46 }
 0x18c   : > { %v1828_v55 = vmul.f32 0.70710677, %v611_v49  ;;  %v1830_v56 = vmul.f32 0.70710677, %v651_v50  ;;  %v1840_v12 = vmul.f32 0.5, %v611_v49  ;;  %v1858_v31 = vmul.f32 0.5, %v651_v50 }
 0x18d   : > { %v1832_v57 = vmul.f32 0.70710677, %v606_v53  ;;  %v1834_v58 = vmul.f32 0.70710677, %v646_v54  ;;  %v1371_v10 = vpop.f32.mrb[2].mxu0  ;;  %v1383_v11 = vpop.f32.mrb[2].mxu1 }
 0x18e   : > { %v717_v59 = vand.u32 2147483647, %v1828_v55  ;;  %v725_v60 = vand.u32 2147483647, %v1830_v56  ;;  %v615_v13 = vpop.f32.mrb[3].mxu0  ;;  %v655_v14 = vpop.f32.mrb[3].mxu1  ;;  %v621_v17 = vadd.f32 %v1371_v10, %v428_v39  ;;  %v1844_v22 = vadd.f32 %v1383_v11, %v468_v2 }
 0x18f   : > { %v716_v61 = vand.u32 2147483647, %v1832_v57  ;;  %v724_v62 = vand.u32 2147483647, %v1834_v58  ;;  %v1852_v28 = vadd.f32 %v615_v13, %v423_v40  ;;  %v1860_v32 = vmul.f32 0.5, %v606_v53 }
 0x190   : > { %v733_v63 = vmul.f32 0.3275911, %v717_v59  ;;  %v941_v0 = vsub.f32 0.0, %v717_v59  ;;  %v741_v1 = vmul.f32 0.3275911, %v725_v60  ;;  %v949_v4 = vsub.f32 0.0, %v725_v60 }
 0x191   : > { %v732_v5 = vmul.f32 0.3275911, %v716_v61  ;;  %v940_v6 = vsub.f32 0.0, %v716_v61  ;;  %v740_v9 = vmul.f32 0.3275911, %v724_v62  ;;  %v1374_v18 = vpop.f32.mrb[4].mxu0  ;;  %v1870_v38 = vadd.f32 %v655_v14, %v463_v3 }
 0x192   : > { %v749_v7 = vadd.f32 1.0, %v733_v63  ;;  %v757_v8 = vadd.f32 1.0, %v741_v1  ;;  %v957_v15 = vmul.f32 %v941_v0, %v717_v59  ;;  %v1842_v19 = vpop.f32.mrb[4].mxu1  ;;  %v965_v20 = vmul.f32 %v949_v4, %v725_v60  ;;  %v1846_v23 = vpop.f32.mrb[5].mxu0 }
 0x193   : > { %v748_v16 = vadd.f32 1.0, %v732_v5  ;;  %v948_v21 = vsub.f32 0.0, %v724_v62  ;;  %v1848_v24 = vpop.f32.mrb[5].mxu1  ;;  %v956_v25 = vmul.f32 %v940_v6, %v716_v61  ;;  %v756_v26 = vadd.f32 1.0, %v740_v9 }
 0x194   : > { %1463 = vrcp.f32 %v749_v7  ;;  %v1850_v27 = vmul.f32 0.70710677, %v621_v17  ;;  %v1863_v33 = vmul.f32 0.70710677, %v1844_v22  ;;  %v974_v36 = vmul.f32 1.442695, %v957_v15 }
 0x195   : > { %1465 = vrcp.f32 %v757_v8  ;;  %v1854_v29 = vpop.f32.mrb[6].mxu0  ;;  %v1856_v30 = vpop.f32.mrb[6].mxu1  ;;  %v990_v39 = vmul.f32 1.442695, %v965_v20  ;;  %v964_v40 = vmul.f32 %v948_v21, %v724_v62  ;;  %v1874_v46 = vmul.f32 0.70710677, %v1852_v28 }
 0x196   : > { %v1865_v34 = vpop.f32.mrb[7].mxu0  ;;  %v1867_v35 = vpop.f32.mrb[7].mxu1  ;;  %1467 = vrcp.f32 %v748_v16  ;;  %v719_v37 = vand.u32 2147483647, %v1850_v27  ;;  %v727_v45 = vand.u32 2147483647, %v1863_v33  ;;  %v1892_v15 = vadd.f32 %v1374_v18, %v1820_v41 }
 0x197   : > { %v972_v47 = vmul.f32 1.442695, %v956_v25  ;;  %1469 = vrcp.f32 %v756_v26  ;;  %v1876_v50 = vmul.f32 0.5, %v646_v54  ;;  %v718_v53 = vand.u32 2147483647, %v1874_v46 }
 0x198   : > { %v735_v48 = vmul.f32 0.3275911, %v719_v37  ;;  %v943_v49 = vsub.f32 0.0, %v719_v37  ;;  %v743_v51 = vmul.f32 0.3275911, %v727_v45  ;;  %v951_v52 = vsub.f32 0.0, %v727_v45 }
 0x199   : > { %1471 = vpow2.f32 %v974_v36  ;;  %v1880_v61 = vmul.f32 0.70710677, %v1870_v38  ;;  %v734_v63 = vmul.f32 0.3275911, %v718_v53  ;;  %v942_v0 = vsub.f32 0.0, %v718_v53 }
 0x19a   : > { %v751_v59 = vadd.f32 1.0, %v735_v48  ;;  %v959_v60 = vmul.f32 %v943_v49, %v719_v37  ;;  %1473 = vpow2.f32 %v990_v39  ;;  %v759_v62 = vadd.f32 1.0, %v743_v51 }
 0x19b   : > { %v988_v2 = vmul.f32 1.442695, %v964_v40  ;;  %v967_v54 = vmul.f32 %v951_v52, %v727_v45  ;;  %v726_v3 = vand.u32 2147483647, %v1880_v61  ;;  %v1888_v6 = vmul.f32 0.5, %v621_v17 }
 0x19c   : > { %1475 = vrcp.f32 %v751_v59  ;;  %v750_v7 = vadd.f32 1.0, %v734_v63  ;;  %v978_v9 = vmul.f32 1.442695, %v959_v60  ;;  %v958_v10 = vmul.f32 %v942_v0, %v718_v53 }
 0x19d   : > { %1477 = vrcp.f32 %v759_v62  ;;  %v742_v11 = vmul.f32 0.3275911, %v726_v3  ;;  %v950_v14 = vsub.f32 0.0, %v726_v3  ;;  %v994_v21 = vmul.f32 1.442695, %v967_v54 }
 0x19e   : > { %v1882_v1 = vpop.eup %1463  ;;  %1479 = vpow2.f32 %v972_v47  ;;  %v976_v36 = vmul.f32 1.442695, %v958_v10  ;;  %v1902_v41 = vmul.f32 0.70710677, %v1892_v15  ;;  %v1906_v51 = vmul.f32 0.5, %v1844_v22  ;;  %v478_v22 = vpop.permute.xlu1 %477 }
 0x19f   : > { %v1885_v4 = vpop.eup %1465  ;;  %v797_v5 = vmul.f32 1.0614054, %v1882_v1  ;;  %1481 = vrcp.f32 %v750_v7  ;;  %v758_v17 = vadd.f32 1.0, %v742_v11  ;;  %v966_v40 = vmul.f32 %v950_v14, %v726_v3 }
 0x1a0   : > { %v805_v8 = vmul.f32 1.0614054, %v1885_v4  ;;  %v1894_v16 = vpop.eup %1467  ;;  %1483 = vpow2.f32 %v988_v2  ;;  %v721_v52 = vand.u32 2147483647, %v1902_v41  ;;  %vm1037_vm1 = vcmp.ge.f32.partialorder %v1828_v55, 0.0 }
 0x1a1   : > { %v813_v13 = vadd.f32 -1.4531521, %v797_v5  ;;  %v796_v26 = vmul.f32 1.0614054, %v1894_v16  ;;  %v1898_v37 = vpop.eup %1469  ;;  %1485 = vpow2.f32 %v978_v9  ;;  %v992_v2 = vmul.f32 1.442695, %v966_v40 }
 0x1a2   : > { %v821_v20 = vadd.f32 -1.4531521, %v805_v8  ;;  %v804_v47 = vmul.f32 1.0614054, %v1898_v37  ;;  %1487 = vrcp.f32 %v758_v17  ;;  %v737_v54 = vmul.f32 0.3275911, %v721_v52 }
 0x1a3   : > { %v829_v25 = vmul.f32 %v1882_v1, %v813_v13  ;;  %v812_v45 = vadd.f32 -1.4531521, %v796_v26  ;;  %v1472_v48 = vpop.eup %1471  ;;  %1489 = vpow2.f32 %v994_v21  ;;  %v945_v3 = vsub.f32 0.0, %v721_v52 }
 0x1a4   : > { %v837_v39 = vmul.f32 %v1885_v4, %v821_v20  ;;  %v1474_v53 = vpop.eup %1473  ;;  %v820_v62 = vadd.f32 -1.4531521, %v804_v47  ;;  %1491 = vpow2.f32 %v976_v36  ;;  %v753_v14 = vadd.f32 1.0, %v737_v54 }
 0x1a5   : > { %v845_v18 = vadd.f32 1.4214138, %v829_v25  ;;  %v828_v60 = vmul.f32 %v1894_v16, %v812_v45  ;;  %v1920_v20 = vadd.f32 %v1842_v19, %v478_v22  ;;  %1493 = vpow2.f32 %v992_v2 }
 0x1a6   : > { %v853_v49 = vadd.f32 1.4214138, %v837_v39  ;;  %v1911_v63 = vpop.eup %1475  ;;  %v836_v9 = vmul.f32 %v1898_v37, %v820_v62  ;;  %v1927_v45 = vmul.f32 %v945_v3, %v721_v52  ;;  %1495 = vrcp.f32 %v753_v14 }
 0x1a7   : > { %v861_v59 = vmul.f32 %v1882_v1, %v845_v18  ;;  %v1914_v5 = vpop.eup %1477  ;;  %v844_v8 = vadd.f32 1.4214138, %v828_v60  ;;  %v799_v10 = vmul.f32 1.0614054, %v1911_v63  ;;  %vm1045_vm2 = vcmp.ge.f32.partialorder %v1830_v56, 0.0 }
 0x1a8   : > { %v869_v0 = vmul.f32 %v1885_v4, %v853_v49  ;;  %v807_v13 = vmul.f32 1.0614054, %v1914_v5  ;;  %v1480_v21 = vpop.eup %1479  ;;  %v852_v26 = vadd.f32 1.4214138, %v836_v9  ;;  %vm1036_vm3 = vcmp.ge.f32.partialorder %v1832_v57, 0.0 }
 0x1a9   : > { %v877_v7 = vadd.f32 -0.28449672, %v861_v59  ;;  %v860_v25 = vmul.f32 %v1894_v16, %v844_v8  ;;  %v815_v36 = vadd.f32 -1.4531521, %v799_v10  ;;  %v1924_v39 = vpop.eup %1481  ;;  %vm1044_vm4 = vcmp.ge.f32.partialorder %v1834_v58, 0.0 }
 0x1aa   : > { %v885_v11 = vadd.f32 -0.28449672, %v869_v0  ;;  %v823_v18 = vadd.f32 -1.4531521, %v807_v13  ;;  %v1484_v47 = vpop.eup %1483  ;;  %v868_v19 = vmul.f32 %v1898_v37, %v852_v26  ;;  %v798_v22 = vmul.f32 1.0614054, %v1924_v39 }
 0x1ab   : > { %v893_v17 = vmul.f32 %v1882_v1, %v877_v7  ;;  %v876_v59 = vadd.f32 -0.28449672, %v860_v25  ;;  %v831_v60 = vmul.f32 %v1911_v63, %v815_v36  ;;  %v1931_v62 = vpop.eup %1485  ;;  %vm1039_vm5 = vcmp.ge.f32.partialorder %v1850_v27, 0.0 }
 0x1ac   : > { %v901_v40 = vmul.f32 %v1885_v4, %v885_v11  ;;  %v839_v54 = vmul.f32 %v1914_v5, %v823_v18  ;;  %v1936_v2 = vpop.eup %1487  ;;  %v884_v7 = vadd.f32 -0.28449672, %v868_v19  ;;  %v814_v13 = vadd.f32 -1.4531521, %v798_v22 }
 0x1ad   : > { %v909_v49 = vadd.f32 0.2548296, %v893_v17  ;;  %v892_v3 = vmul.f32 %v1894_v16, %v876_v59  ;;  %v847_v8 = vadd.f32 1.4214138, %v831_v60  ;;  %v1490_v9 = vpop.eup %1489  ;;  %v806_v17 = vmul.f32 1.0614054, %v1936_v2 }
 0x1ae   : > { %v917_v0 = vadd.f32 0.2548296, %v901_v40  ;;  %v855_v11 = vadd.f32 1.4214138, %v839_v54  ;;  %v1943_v25 = vpop.eup %1491  ;;  %v900_v36 = vmul.f32 %v1898_v37, %v884_v7  ;;  %vm1047_vm6 = vcmp.ge.f32.partialorder %v1863_v33, 0.0 }
 0x1af   : > { %v925_v52 = vmul.f32 %v1882_v1, %v909_v49  ;;  %v908_v26 = vadd.f32 0.2548296, %v892_v3  ;;  %v863_v1 = vmul.f32 %v1911_v63, %v847_v8  ;;  %v830_v49 = vmul.f32 %v1924_v39, %v814_v13 }
 0x1b0   : > { %v933_v10 = vmul.f32 %v1885_v4, %v917_v0  ;;  %v871_v18 = vmul.f32 %v1914_v5, %v855_v11  ;;  %v822_v4 = vadd.f32 -1.4531521, %v806_v17  ;;  %v916_v60 = vadd.f32 0.2548296, %v900_v36 }
 0x1b1   : > { %v1005_v14 = vmul.f32 %v1472_v48, %v925_v52  ;;  %v924_v19 = vmul.f32 %v1894_v16, %v908_v26  ;;  %v879_v0 = vadd.f32 -0.28449672, %v863_v1  ;;  %v846_v22 = vadd.f32 1.4214138, %v830_v49 }
 0x1b2   : > { %v1013_v40 = vmul.f32 %v1474_v53, %v933_v10  ;;  %v887_v54 = vadd.f32 -0.28449672, %v871_v18  ;;  %v838_v53 = vmul.f32 %v1936_v2, %v822_v4  ;;  %v932_v7 = vmul.f32 %v1898_v37, %v916_v60  ;;  %v1955_v10 = vpop.eup %1493 }
 0x1b3   : > { %v1021_v59 = vsub.f32 1.0, %v1005_v14  ;;  %v1004_v3 = vmul.f32 %v1480_v21, %v924_v19  ;;  %v895_v8 = vmul.f32 %v1911_v63, %v879_v0  ;;  %v862_v13 = vmul.f32 %v1924_v39, %v846_v22  ;;  %v1963_v1 = vpop.eup %1495 }
 0x1b4   : > { %v1029_v48 = vsub.f32 1.0, %v1013_v40  ;;  %v903_v11 = vmul.f32 %v1914_v5, %v887_v54  ;;  %v854_v17 = vadd.f32 1.4214138, %v838_v53  ;;  %v1012_v36 = vmul.f32 %v1484_v47, %v932_v7 }
 0x1b5   : > { %v1053_v52 = vsub.f32 0.0, %v1021_v59  ;;  %v1020_v26 = vsub.f32 1.0, %v1004_v3  ;;  %v911_v21 = vadd.f32 0.2548296, %v895_v8  ;;  %v878_v49 = vadd.f32 -0.28449672, %v862_v13 }
 0x1b6   : > { %v1061_v16 = vsub.f32 0.0, %v1029_v48  ;;  %v919_v18 = vadd.f32 0.2548296, %v903_v11  ;;  %v1028_v60 = vsub.f32 1.0, %v1012_v36  ;;  %v870_v56 = vmul.f32 %v1936_v2, %v854_v17 }
 0x1b7   : > { %v1069_v14 = vsel %vm1037_vm1, %v1021_v59, %v1053_v52  ;;  %v1052_v19 = vsub.f32 0.0, %v1020_v26  ;;  %v927_v0 = vmul.f32 %v1911_v63, %v911_v21  ;;  %v894_v59 = vmul.f32 %v1924_v39, %v878_v49 }
 0x1b8   : > { %v1085_v37 = vadd.f32 1.0, %v1069_v14  ;;  %v1077_v40 = vsel %vm1045_vm2, %v1029_v48, %v1061_v16  ;;  %v935_v47 = vmul.f32 %v1914_v5, %v919_v18  ;;  %v1060_v22 = vsub.f32 0.0, %v1028_v60 }
 0x1b9   : > { %v1093_v4 = vadd.f32 1.0, %v1077_v40  ;;  %v1068_v54 = vsel %vm1036_vm3, %v1020_v26, %v1052_v19  ;;  %v1007_v53 = vmul.f32 %v1931_v62, %v927_v0  ;;  %v910_v5 = vadd.f32 0.2548296, %v894_v59 }
 0x1ba   : > { %v1101_v55 = vmul.f32 %v1085_v37, %v1840_v12  ;;  %v1084_v12 = vadd.f32 1.0, %v1068_v54  ;;  %v1015_v63 = vmul.f32 %v1490_v9, %v935_v47  ;;  %v886_v52 = vadd.f32 -0.28449672, %v870_v56 }
 0x1bb   : > { %v1109_v48 = vmul.f32 %v1093_v4, %v1858_v31  ;;  %v1076_v31 = vsel %vm1044_vm4, %v1028_v60, %v1060_v22  ;;  %v1023_v3 = vsub.f32 1.0, %v1007_v53  ;;  %v801_v57 = vmul.f32 1.0614054, %v1963_v1 }
 0x1bc   : > { %1117 = vst [vmem:[%s1978_s18 + $0x8] sm:$0xff] %v1101_v55  ;;  %v1987_v62 = vadd.f32 %v1846_v23, %v1822_v42  ;;  %v1100_v7 = vmul.f32 %v1084_v12, %v1860_v32  ;;  %v1092_v8 = vadd.f32 1.0, %v1076_v31  ;;  %v1031_v16 = vsub.f32 1.0, %v1015_v63 }
 0x1bd   : > { %1125 = vst [vmem:[%s1978_s18 + $0x48] sm:$0xff] %v1109_v48  ;;  %v926_v9 = vmul.f32 %v1924_v39, %v910_v5  ;;  %v1055_v11 = vsub.f32 0.0, %v1023_v3  ;;  %v902_v13 = vmul.f32 %v1936_v2, %v886_v52  ;;  %v817_v17 = vadd.f32 -1.4531521, %v801_v57 }
 0x1be   : > { %v1993_v58 = vmul.f32 0.70710677, %v1920_v20  ;;  %1116 = vst [vmem:[%s1978_s18] sm:$0xff] %v1100_v7  ;;  %v1108_v14 = vmul.f32 %v1092_v8, %v1876_v50  ;;  %v1063_v26 = vsub.f32 0.0, %v1031_v16  ;;  %v982_v23 = vmul.f32 1.442695, %v1927_v45 }
 0x1bf   : > { %v1006_v42 = vmul.f32 %v1943_v25, %v926_v9  ;;  %v1071_v32 = vsel %vm1039_vm5, %v1023_v3, %v1055_v11  ;;  %v918_v36 = vadd.f32 0.2548296, %v902_v13  ;;  %v833_v39 = vmul.f32 %v1963_v1, %v817_v17 }
 0x1c0   : > { %v729_v21 = vand.u32 2147483647, %v1993_v58  ;;  %1124 = vst [vmem:[%s1978_s18 + $0x40] sm:$0xff] %v1108_v14  ;;  %v1087_v37 = vadd.f32 1.0, %v1071_v32  ;;  %v1079_v40 = vsel %vm1047_vm6, %v1031_v16, %v1063_v26  ;;  %vm1038_vm7 = vcmp.ge.f32.partialorder %v1874_v46, 0.0 }
 0x1c1   : > { %v1022_v50 = vsub.f32 1.0, %v1006_v42  ;;  %v1095_v25 = vadd.f32 1.0, %v1079_v40  ;;  %v934_v45 = vmul.f32 %v1936_v2, %v918_v36  ;;  %v849_v27 = vadd.f32 1.4214138, %v833_v39 }
 0x1c2   : > { %v745_v18 = vmul.f32 0.3275911, %v729_v21  ;;  %v1103_v49 = vmul.f32 %v1087_v37, %v1888_v6  ;;  %1497 = vpow2.f32 %v982_v23  ;;  %v2010_v19 = vmul.f32 0.70710677, %v1987_v62  ;;  %v473_v6 = vpop.permute.xlu0 %472 }
 0x1c3   : > { %v1054_v4 = vsub.f32 0.0, %v1022_v50  ;;  %v1111_v33 = vmul.f32 %v1095_v25, %v1906_v51  ;;  %v1014_v60 = vmul.f32 %v1955_v10, %v934_v45  ;;  %v865_v0 = vmul.f32 %v1963_v1, %v849_v27 }
 0x1c4   : > { %v761_v46 = vadd.f32 1.0, %v745_v18  ;;  %1119 = vst [vmem:[%s1978_s18 + $0x18] sm:$0xff] %v1103_v49  ;;  %v686_v2 = vmul.f32 0.5, %v1852_v28  ;;  %v720_v47 = vand.u32 2147483647, %v2010_v19  ;;  %v2020_v51 = vadd.f32 %v1848_v24, %v473_v6  ;;  %v488_v24 = vpop.permute.xlu1 %487 }
 0x1c5   : > { %v1070_v55 = vsel %vm1038_vm7, %v1022_v50, %v1054_v4  ;;  %1127 = vst [vmem:[%s1978_s18 + $0x58] sm:$0xff] %v1111_v33  ;;  %v1030_v56 = vsub.f32 1.0, %v1014_v60  ;;  %v881_v48 = vadd.f32 -0.28449672, %v865_v0  ;;  %v2025_v28 = vadd.f32 %v1854_v29, %v1824_v43 }
 0x1c6   : > { %v1086_v59 = vadd.f32 1.0, %v1070_v55  ;;  %1499 = vrcp.f32 %v761_v46  ;;  %v736_v54 = vmul.f32 0.3275911, %v720_v47  ;;  %vm1046_vm8 = vcmp.ge.f32.partialorder %v1880_v61, 0.0  ;;  %v483_v39 = vpop.permute.xlu0 %482 }
 0x1c7   : > { %v1062_v22 = vsub.f32 0.0, %v1030_v56  ;;  %v897_v53 = vmul.f32 %v1963_v1, %v881_v48  ;;  %v2030_v52 = vmul.f32 0.70710677, %v2020_v51  ;;  %v694_v31 = vmul.f32 0.5, %v1870_v38 }
 0x1c8   : > { %v1102_v10 = vmul.f32 %v1086_v59, %v686_v2  ;;  %v752_v12 = vadd.f32 1.0, %v736_v54  ;;  %v2034_v57 = vmul.f32 0.70710677, %v2025_v28  ;;  %v953_v29 = vsub.f32 0.0, %v729_v21 }
 0x1c9   : > { %v1078_v63 = vsel %vm1046_vm8, %v1030_v56, %v1062_v22  ;;  %v913_v5 = vadd.f32 0.2548296, %v897_v53  ;;  %v728_v61 = vand.u32 2147483647, %v2030_v52  ;;  %v2039_v7 = vadd.f32 %v1856_v30, %v488_v24 }
 0x1ca   : > { %1118 = vst [vmem:[%s1978_s18 + $0x10] sm:$0xff] %v1102_v10  ;;  %v1094_v3 = vadd.f32 1.0, %v1078_v63  ;;  %1501 = vrcp.f32 %v752_v12  ;;  %v723_v9 = vand.u32 2147483647, %v2034_v57  ;;  %v944_v13 = vsub.f32 0.0, %v720_v47 }
 0x1cb   : > { %v929_v43 = vmul.f32 %v1963_v1, %v913_v5  ;;  %v744_v38 = vmul.f32 0.3275911, %v728_v61  ;;  %v2044_v14 = vmul.f32 0.70710677, %v2039_v7  ;;  %v969_v42 = vmul.f32 %v953_v29, %v729_v21 }
 0x1cc   : > { %v1498_v8 = vpop.eup %1497  ;;  %v1110_v16 = vmul.f32 %v1094_v3, %v694_v31  ;;  %v739_v17 = vmul.f32 0.3275911, %v723_v9  ;;  %vm1041_vm9 = vcmp.ge.f32.partialorder %v1902_v41, 0.0  ;;  %v960_v40 = vmul.f32 %v944_v13, %v720_v47 }
 0x1cd   : > { %v1009_v11 = vmul.f32 %v1498_v8, %v929_v43  ;;  %v760_v23 = vadd.f32 1.0, %v744_v38  ;;  %v731_v36 = vand.u32 2147483647, %v2044_v14  ;;  %v2053_v50 = vadd.f32 %v1865_v34, %v1826_v44 }
 0x1ce   : > { %1126 = vst [vmem:[%s1978_s18 + $0x50] sm:$0xff] %v1110_v16  ;;  %v755_v32 = vadd.f32 1.0, %v739_v17  ;;  %v2056_v21 = vadd.f32 %v1867_v35, %v483_v39  ;;  %v998_v27 = vmul.f32 1.442695, %v969_v42  ;;  %v689_v49 = vmul.f32 0.5, %v1892_v15 }
 0x1cf   : > { %v1025_v1 = vsub.f32 1.0, %v1009_v11  ;;  %1503 = vrcp.f32 %v760_v23  ;;  %v747_v45 = vmul.f32 0.3275911, %v731_v36  ;;  %v980_v34 = vmul.f32 1.442695, %v960_v40 }
 0x1d0   : > { %v2046_v26 = vpop.eup %1499  ;;  %1505 = vrcp.f32 %v755_v32  ;;  %v2064_v0 = vmul.f32 0.70710677, %v2053_v50  ;;  %v2067_v2 = vmul.f32 0.70710677, %v2056_v21  ;;  %v952_v47 = vsub.f32 0.0, %v728_v61 }
 0x1d1   : > { %v809_v30 = vmul.f32 1.0614054, %v2046_v26  ;;  %v1057_v37 = vsub.f32 0.0, %v1025_v1  ;;  %v763_v60 = vadd.f32 1.0, %v747_v45  ;;  %v947_v59 = vsub.f32 0.0, %v723_v9 }
 0x1d2   : > { %v722_v15 = vand.u32 2147483647, %v2064_v0  ;;  %v730_v56 = vand.u32 2147483647, %v2067_v2  ;;  %v955_v22 = vsub.f32 0.0, %v731_v36  ;;  %v968_v5 = vmul.f32 %v952_v47, %v728_v61 }
 0x1d3   : > { %v825_v25 = vadd.f32 -1.4531521, %v809_v30  ;;  %v1073_v41 = vsel %vm1041_vm9, %v1025_v1, %v1057_v37  ;;  %1507 = vrcp.f32 %v763_v60  ;;  %v963_v29 = vmul.f32 %v947_v59, %v723_v9 }
 0x1d4   : > { %v2058_v18 = vpop.eup %1501  ;;  %v1089_v4 = vadd.f32 1.0, %v1073_v41  ;;  %1509 = vpow2.f32 %v998_v27  ;;  %v738_v54 = vmul.f32 0.3275911, %v722_v15  ;;  %v746_v53 = vmul.f32 0.3275911, %v730_v56 }
 0x1d5   : > { %v841_v33 = vmul.f32 %v2046_v26, %v825_v25  ;;  %v800_v44 = vmul.f32 1.0614054, %v2058_v18  ;;  %1511 = vpow2.f32 %v980_v34  ;;  %v971_v17 = vmul.f32 %v955_v22, %v731_v36 }
 0x1d6   : > { %v1105_v46 = vmul.f32 %v1089_v4, %v689_v49  ;;  %v754_v24 = vadd.f32 1.0, %v738_v54  ;;  %v762_v8 = vadd.f32 1.0, %v746_v53  ;;  %v996_v61 = vmul.f32 1.442695, %v968_v5 }
 0x1d7   : > { %v857_v35 = vadd.f32 1.4214138, %v841_v33  ;;  %v816_v55 = vadd.f32 -1.4531521, %v800_v44  ;;  %v986_v9 = vmul.f32 1.442695, %v963_v29 }
 0x1d8   : > { %1121 = vst [vmem:[%s1978_s18 + $0x28] sm:$0xff] %v1105_v46  ;;  %1513 = vrcp.f32 %v754_v24  ;;  %v946_v39 = vsub.f32 0.0, %v722_v15  ;;  %v697_v40 = vmul.f32 0.5, %v1920_v20  ;;  %v1002_v49 = vmul.f32 1.442695, %v971_v17 }
 0x1d9   : > { %v873_v6 = vmul.f32 %v2046_v26, %v857_v35  ;;  %v832_v48 = vmul.f32 %v2058_v18, %v816_v55  ;;  %v2074_v12 = vpop.eup %1503  ;;  %1515 = vrcp.f32 %v762_v8  ;;  %v954_v4 = vsub.f32 0.0, %v730_v56 }
 0x1da   : > { %v2076_v31 = vpop.eup %1505  ;;  %v808_v43 = vmul.f32 1.0614054, %v2074_v12  ;;  %1517 = vpow2.f32 %v996_v61  ;;  %v962_v46 = vmul.f32 %v946_v39, %v722_v15  ;;  %v688_v35 = vmul.f32 0.5, %v1987_v62 }
 0x1db   : > { %v889_v10 = vadd.f32 -0.28449672, %v873_v6  ;;  %v848_v63 = vadd.f32 1.4214138, %v832_v48  ;;  %v803_v11 = vmul.f32 1.0614054, %v2076_v31  ;;  %1519 = vpow2.f32 %v986_v9 }
 0x1dc   : > { %v824_v38 = vadd.f32 -1.4531521, %v808_v43  ;;  %vm1049_vm10 = vcmp.ge.f32.partialorder %v1993_v58, 0.0  ;;  %1521 = vpow2.f32 %v1002_v49  ;;  %v970_v15 = vmul.f32 %v954_v4, %v730_v56 }
 0x1dd   : > { %v905_v3 = vmul.f32 %v2046_v26, %v889_v10  ;;  %v864_v16 = vmul.f32 %v2058_v18, %v848_v63  ;;  %v819_v42 = vadd.f32 -1.4531521, %v803_v11  ;;  %v2082_v23 = vpop.eup %1507  ;;  %v984_v24 = vmul.f32 1.442695, %v962_v46 }
 0x1de   : > { %v840_v32 = vmul.f32 %v2074_v12, %v824_v38  ;;  %v1510_v37 = vpop.eup %1509  ;;  %v811_v36 = vmul.f32 1.0614054, %v2082_v23  ;;  %vm1040_vm11 = vcmp.ge.f32.partialorder %v2010_v19, 0.0  ;;  %vm1048_vm12 = vcmp.ge.f32.partialorder %v2030_v52, 0.0 }
 0x1df   : > { %v921_v13 = vadd.f32 0.2548296, %v905_v3  ;;  %v880_v1 = vadd.f32 -0.28449672, %v864_v16  ;;  %v835_v45 = vmul.f32 %v2076_v31, %v819_v42  ;;  %v1512_v20 = vpop.eup %1511  ;;  %1523 = vpow2.f32 %v984_v24 }
 0x1e0   : > { %v856_v27 = vadd.f32 1.4214138, %v840_v32  ;;  %v827_v60 = vadd.f32 -1.4531521, %v811_v36  ;;  %vm1043_vm13 = vcmp.ge.f32.partialorder %v2034_v57, 0.0  ;;  %vm1051_vm14 = vcmp.ge.f32.partialorder %v2044_v14, 0.0 }
 0x1e1   : > { %v937_v30 = vmul.f32 %v2046_v26, %v921_v13  ;;  %v896_v25 = vmul.f32 %v2058_v18, %v880_v1  ;;  %v851_v26 = vadd.f32 1.4214138, %v835_v45  ;;  %vm1042_vm15 = vcmp.ge.f32.partialorder %v2064_v0, 0.0  ;;  %v1204_v0 = vld [vmem:[%s1978_s18 + $0x10] sm:$0xff] (%p1662_p6) }
 0x1e2   : > { %v872_v34 = vmul.f32 %v2074_v12, %v856_v27  ;;  %v843_v6 = vmul.f32 %v2082_v23, %v827_v60  ;;  %v2096_v54 = vpop.eup %1513  ;;  %vm1050_vm0 = vcmp.ge.f32.partialorder %v2067_v2, 0.0  ;;  %v1206_v2 = vld [vmem:[%s1978_s18 + $0x18] sm:$0xff] (%p1662_p6)  ;;  %1205 = vst [vmem:[%s1142_s6 + $0x20] sm:$0xff] (%p1662_p6), %v1204_v0 }
 0x1e3   : > { %v1017_v41 = vmul.f32 %v1510_v37, %v937_v30  ;;  %v912_v33 = vadd.f32 0.2548296, %v896_v25  ;;  %v867_v47 = vmul.f32 %v2076_v31, %v851_v26  ;;  %v2098_v63 = vpop.eup %1515  ;;  %v802_v5 = vmul.f32 1.0614054, %v2096_v54  ;;  %1207 = vst [vmem:[%s1142_s6 + $0x30] sm:$0xff] (%p1662_p6), %v1206_v2 }
 0x1e4   : > { %v888_v48 = vadd.f32 -0.28449672, %v872_v34  ;;  %v859_v53 = vadd.f32 1.4214138, %v843_v6  ;;  %v810_v11 = vmul.f32 1.0614054, %v2098_v63  ;;  %v1518_v30 = vpop.eup %1517 }
 0x1e5   : > { %v1033_v44 = vsub.f32 1.0, %v1017_v41  ;;  %v928_v55 = vmul.f32 %v2058_v18, %v912_v33  ;;  %v883_v22 = vadd.f32 -0.28449672, %v867_v47  ;;  %v818_v16 = vadd.f32 -1.4531521, %v802_v5  ;;  %v1520_v25 = vpop.eup %1519 }
 0x1e6   : > { %v904_v18 = vmul.f32 %v2074_v12, %v888_v48  ;;  %v875_v29 = vmul.f32 %v2082_v23, %v859_v53  ;;  %v826_v42 = vadd.f32 -1.4531521, %v810_v11  ;;  %v1000_v37 = vmul.f32 1.442695, %v970_v15  ;;  %v1522_v27 = vpop.eup %1521 }
 0x1e7   : > { %v1065_v59 = vsub.f32 0.0, %v1033_v44  ;;  %v1008_v10 = vmul.f32 %v1512_v20, %v928_v55  ;;  %v899_v43 = vmul.f32 %v2076_v31, %v883_v22  ;;  %v834_v61 = vmul.f32 %v2096_v54, %v818_v16 }
 0x1e8   : > { %v920_v8 = vadd.f32 0.2548296, %v904_v18  ;;  %v891_v17 = vadd.f32 -0.28449672, %v875_v29  ;;  %v842_v19 = vmul.f32 %v2098_v63, %v826_v42  ;;  %1525 = vpow2.f32 %v1000_v37 }
 0x1e9   : > { %v1081_v62 = vsel %vm1049_vm10, %v1033_v44, %v1065_v59  ;;  %v1024_v58 = vsub.f32 1.0, %v1008_v10  ;;  %v915_v38 = vadd.f32 0.2548296, %v899_v43  ;;  %v850_v36 = vadd.f32 1.4214138, %v834_v61 }
 0x1ea   : > { %v1097_v3 = vadd.f32 1.0, %v1081_v62  ;;  %v936_v1 = vmul.f32 %v2074_v12, %v920_v8  ;;  %v907_v39 = vmul.f32 %v2082_v23, %v891_v17  ;;  %v858_v26 = vadd.f32 1.4214138, %v842_v19 }
 0x1eb   : > { %v1056_v13 = vsub.f32 0.0, %v1024_v58  ;;  %v931_v9 = vmul.f32 %v2076_v31, %v915_v38  ;;  %v866_v33 = vmul.f32 %v2096_v54, %v850_v36  ;;  %v696_v59 = vmul.f32 0.5, %v2020_v51  ;;  %v1524_v51 = vpop.eup %1523  ;;  %v1222_v36 = vld [vmem:[%s1978_s18 + $0x58] sm:$0xff] (%p1662_p6) }
 0x1ec   : > { %v1113_v56 = vmul.f32 %v1097_v3, %v697_v40  ;;  %v1016_v45 = vmul.f32 %v1518_v30, %v936_v1  ;;  %v923_v12 = vadd.f32 0.2548296, %v907_v39  ;;  %v874_v46 = vmul.f32 %v2098_v63, %v858_v26  ;;  %1223 = vst [vmem:[%s1142_s6 + $0xb0] sm:$0xff] (%p1662_p6), %v1222_v36 }
 0x1ed   : > { %v1072_v32 = vsel %vm1040_vm11, %v1024_v58, %v1056_v13  ;;  %v1011_v41 = vmul.f32 %v1520_v25, %v931_v9  ;;  %v882_v34 = vadd.f32 -0.28449672, %v866_v33  ;;  %v691_v22 = vmul.f32 0.5, %v2025_v28  ;;  %v1210_v9 = vld [vmem:[%s1978_s18 + $0x28] sm:$0xff] (%p1662_p6)  ;;  %v1216_v25 = vld [vmem:[%s1978_s18 + $0x40] sm:$0xff] (%p1662_p6) }
 0x1ee   : > { %1129 = vst [vmem:[%s1978_s18 + $0x68] sm:$0xff] %v1113_v56  ;;  %v1088_v40 = vadd.f32 1.0, %v1072_v32  ;;  %v1032_v4 = vsub.f32 1.0, %v1016_v45  ;;  %v939_v60 = vmul.f32 %v2082_v23, %v923_v12  ;;  %v890_v6 = vadd.f32 -0.28449672, %v874_v46  ;;  %v1220_v45 = vld [vmem:[%s1978_s18 + $0x50] sm:$0xff] (%p1662_p6) }
 0x1ef   : > { %v1027_v31 = vsub.f32 1.0, %v1011_v41  ;;  %v699_v58 = vmul.f32 0.5, %v2039_v7  ;;  %v690_v17 = vmul.f32 0.5, %v2053_v50  ;;  %v698_v61 = vmul.f32 0.5, %v2056_v21  ;;  %v1200_v50 = vld [vmem:[%s1978_s18] sm:$0xff] (%p1662_p6)  ;;  %v1202_v21 = vld [vmem:[%s1978_s18 + $0x8] sm:$0xff] (%p1662_p6) }
 0x1f0   : > { %v1104_v49 = vmul.f32 %v1088_v40, %v688_v35  ;;  %v1064_v44 = vsub.f32 0.0, %v1032_v4  ;;  %v1019_v55 = vmul.f32 %v1522_v27, %v939_v60  ;;  %v898_v35 = vmul.f32 %v2096_v54, %v882_v34  ;;  %v1218_v40 = vld [vmem:[%s1978_s18 + $0x48] sm:$0xff] (%p1662_p6)  ;;  %1201 = vst [vmem:[%s1142_s6] sm:$0xff] (%p1662_p6), %v1200_v50  ;;  %1203 = vst [vmem:[%s1142_s6 + $0x10] sm:$0xff] (%p1662_p6), %v1202_v21 }
 0x1f1   : > { %v1059_v20 = vsub.f32 0.0, %v1027_v31  ;;  %v906_v52 = vmul.f32 %v2098_v63, %v890_v6  ;;  %1211 = vst [vmem:[%s1142_s6 + $0x50] sm:$0xff] (%p1662_p6), %v1210_v9  ;;  %1217 = vst [vmem:[%s1142_s6 + $0x80] sm:$0xff] (%p1662_p6), %v1216_v25 }
 0x1f2   : > { %1120 = vst [vmem:[%s1978_s18 + $0x20] sm:$0xff] %v1104_v49  ;;  %v1080_v47 = vsel %vm1048_vm12, %v1032_v4, %v1064_v44  ;;  %v1035_v10 = vsub.f32 1.0, %v1019_v55  ;;  %v914_v15 = vadd.f32 0.2548296, %v898_v35  ;;  %v1526_v8 = vpop.eup %1525  ;;  %1219 = vst [vmem:[%s1142_s6 + $0x90] sm:$0xff] (%p1662_p6), %v1218_v40 }
 0x1f3   : > { %v1096_v23 = vadd.f32 1.0, %v1080_v47  ;;  %v1075_v48 = vsel %vm1043_vm13, %v1027_v31, %v1059_v20  ;;  %v922_v24 = vadd.f32 0.2548296, %v906_v52  ;;  %1221 = vst [vmem:[%s1142_s6 + $0xa0] sm:$0xff] (%p1662_p6), %v1220_v45 }
 0x1f4   : > { %v1091_v53 = vadd.f32 1.0, %v1075_v48  ;;  %v1067_v18 = vsub.f32 0.0, %v1035_v10  ;;  %v930_v57 = vmul.f32 %v2096_v54, %v914_v15 }
 0x1f5   : > { %v1112_v62 = vmul.f32 %v1096_v23, %v696_v59  ;;  %v938_v29 = vmul.f32 %v2098_v63, %v922_v24  ;;  %v1226_v41 = vld [vmem:[%s1978_s18 + $0x68] sm:$0xff] (%p1662_p6) }
 0x1f6   : > { %v1107_v5 = vmul.f32 %v1091_v53, %v691_v22  ;;  %v1083_v3 = vsel %vm1051_vm14, %v1035_v10, %v1067_v18  ;;  %v1010_v43 = vmul.f32 %v1524_v51, %v930_v57  ;;  %1227 = vst [vmem:[%s1142_s6 + $0xd0] sm:$0xff] (%p1662_p6), %v1226_v41 }
 0x1f7   : > { %1128 = vst [vmem:[%s1978_s18 + $0x60] sm:$0xff] %v1112_v62  ;;  %v1099_v28 = vadd.f32 1.0, %v1083_v3  ;;  %v1018_v56 = vmul.f32 %v1526_v8, %v938_v29 }
 0x1f8   : > { %1123 = vst [vmem:[%s1978_s18 + $0x38] sm:$0xff] %v1107_v5  ;;  %v1026_v11 = vsub.f32 1.0, %v1010_v43 }
 0x1f9   : > { %v1115_v16 = vmul.f32 %v1099_v28, %v699_v58  ;;  %v1034_v54 = vsub.f32 1.0, %v1018_v56  ;;  %v1208_v32 = vld [vmem:[%s1978_s18 + $0x20] sm:$0xff] (%p1662_p6) }
 0x1fa   : > { %v1058_v14 = vsub.f32 0.0, %v1026_v11  ;;  %1209 = vst [vmem:[%s1142_s6 + $0x40] sm:$0xff] (%p1662_p6), %v1208_v32 }
 0x1fb   : > { %1131 = vst [vmem:[%s1978_s18 + $0x78] sm:$0xff] %v1115_v16  ;;  %v1066_v38 = vsub.f32 0.0, %v1034_v54 }
 0x1fc   : > { %v1074_v13 = vsel %vm1042_vm15, %v1026_v11, %v1058_v14  ;;  %1138 = sbr.rel (!%p1662_p6) target bundleno = 523 (0x20b), region = 82 }
 0x1fd   : > { %v1090_v7 = vadd.f32 1.0, %v1074_v13  ;;  %v1082_v1 = vsel %vm1050_vm0, %v1034_v54, %v1066_v38 }
 0x1fe   : > { %v1098_v42 = vadd.f32 1.0, %v1082_v1  ;;  %v1224_v19 = vld [vmem:[%s1978_s18 + $0x60] sm:$0xff] (%p1662_p6) }
 0x1ff   : > { %v1106_v63 = vmul.f32 %v1090_v7, %v690_v17  ;;  %v1214_v37 = vld [vmem:[%s1978_s18 + $0x38] sm:$0xff] (%p1662_p6)  ;;  %1225 = vst [vmem:[%s1142_s6 + $0xc0] sm:$0xff] (%p1662_p6), %v1224_v19 }
 0x200   : > { %v1114_v30 = vmul.f32 %v1098_v42, %v698_v61  ;;  %1215 = vst [vmem:[%s1142_s6 + $0x70] sm:$0xff] (%p1662_p6), %v1214_v37 }
 0x201   : > { %1122 = vst [vmem:[%s1978_s18 + $0x30] sm:$0xff] %v1106_v63 }
 0x202   : > { %1130 = vst [vmem:[%s1978_s18 + $0x70] sm:$0xff] %v1114_v30  ;;  %v1230_v27 = vld [vmem:[%s1978_s18 + $0x78] sm:$0xff] (%p1662_p6) }
 0x203   : > { %1231 = vst [vmem:[%s1142_s6 + $0xf0] sm:$0xff] %v1230_v27 }
 0x208   : > { %v1212_v39 = vld [vmem:[%s1978_s18 + $0x30] sm:$0xff] }
 0x209   : > { %1213 = vst [vmem:[%s1142_s6 + $0x60] sm:$0xff] %v1212_v39  ;;  %v1228_v12 = vld [vmem:[%s1978_s18 + $0x70] sm:$0xff] }
 0x20a   : > { %1229 = vst [vmem:[%s1142_s6 + $0xe0] sm:$0xff] %v1228_v12 }
 0x20b PF: > { %s15_s24 = sadd.s32 1, %s1581_s24   ;;  %s2186_s18 = smov %s1561_s19 }
 0x20c   : > { %p12_p12 = scmp.ge.s32.totalorder %s15_s24, 6   ;;  %s2187_s19 = smov %s1670_s8 }
 0x20d   : > { %s2188_s20 = smov %s1573_s22  ;;  %s2189_s21 = smov %s1577_s23 }
 0x20e   : > { %s2190_s22 = smov %s2193_s25  ;;  %s2191_s23 = smov %s2197_s26 }
 0x20f   :  { %14 = sbr.rel (!%p12_p12) target bundleno = 4 (0x4), region = 151 }

// kernel: transformer_block.5
= control target key start
LH: loop header
LB: loop body
LE: loop exit
PB: predicated region body
PF: predicated region fallthrough
CT: control target
= control target key end

     0   :  { %s3487_s0 = inlined_call_operand.vmem [shape: f32[2,32,256], index: 0, kind: input, shape index: {}]   ;;  %s3488_s1 = inlined_call_operand.vmem [shape: f32[2,2,32,1], index: 1, kind: input, shape index: {}]   ;;  %s3489_s2 = inlined_call_operand.vmem [shape: f32[2,2,32,1], index: 2, kind: input, shape index: {}]   ;;  %s3490_s3 = inlined_call_operand.vmem [shape: f32[2,1,256], index: 3, kind: input, shape index: {}]   ;;  %s3491_s4 = inlined_call_operand.vmem [shape: f32[32,1], index: 4, kind: input, shape index: {}]   ;;  %s3492_s5 = inlined_call_operand.vmem [shape: f32[32,1], index: 5, kind: input, shape index: {}]   ;;  %s3493_s6 = inlined_call_operand.vmem [shape: f32[3,32,3], index: 6, kind: input, shape index: {}]   ;;  %s3494_s7 = inlined_call_operand.vmem [shape: f32[3,32,1], index: 7, kind: input, shape index: {}]   ;;  %s3495_s8 = inlined_call_operand.vmem [shape: f32[3,32,1], index: 8, kind: input, shape index: {}]   ;;  %s3496_s9 = inlined_call_operand.vmem [shape: f32[3,32,32], index: 9, kind: input, shape index: {}]   ;;  %s3497_s10 = inlined_call_operand.vmem [shape: f32[3,32,1], index: 10, kind: input, shape index: {}]   ;;  %s3498_s11 = inlined_call_operand.vmem [shape: f32[2,32,256], index: 11, kind: output, shape index: {0}]   ;;  %s3499_s12 = inlined_call_operand.vmem [shape: f32[2,32,256], index: 12, kind: output, shape index: {1}]   ;;  %s3500_s13 = inlined_call_operand.vmem [shape: f32[2,32,256], index: 13, kind: output, shape index: {2}]  }
   0x1   :  { %3505 = sst [smem:[#allocation10_spill]] %s3487_s0 }
   0x2   :  { %3506 = sst [smem:[#allocation11_spill]] %s3498_s11 }
   0x3   :  { %3507 = sst [smem:[#allocation12_spill]] %s3499_s12 }
   0x4   :  { %3508 = sst [smem:[#allocation13_spill]] %s3500_s13 }
   0x5   :  { %s2572_s25 = smov 0   ;;  %s2574_s26 = smov 0  }
   0x6   :  { %s2576_s27 = smov 0   ;;  %s2578_s28 = smov 0  }
   0x7   :  { %s2580_s29 = smov 0   ;;  %s2582_s30 = smov 0  }
   0x8   :  { %s2584_s14 = smov 0  }
   0x9 LB: > { %3509 = sst [smem:[#allocation6_spill]] %s2491_s30  ;;  %s33_s15 = sadd.s32 1, %s2487_s29  ;;  %s2495_s14 = sphi %s2584_s14, %s24_s14   ;;  %s2491_s30 = sphi %s2582_s30, %s3523_s30   ;;  %s2487_s29 = sphi %s2580_s29, %s3527_s29   ;;  %s2483_s28 = sphi %s2578_s28, %s3521_s28   ;;  %s2479_s27 = sphi %s2576_s27, %s3526_s27   ;;  %s2475_s26 = sphi %s2574_s26, %s3525_s26   ;;  %s2471_s25 = sphi %s2572_s25, %s3524_s25  }
   0xa   : > { %p34_p0 = scmp.ge.s32.totalorder %s33_s15, 2  ;;  %s36_s16 = sadd.s32 1, %s2491_s30 }
   0xb   : > { %s2167_s17 = sadd.s32 4294967295, %s2495_s14   ;;  %p52_p1 = scmp.ne.s32.totalorder %s2475_s26, %s2471_s25 }
   0xc   : > { %s3529_s15 = smov (%p34_p0, %s33_s15), 0  ;;  %s3531_s16 = smov (!%p34_p0, %s36_s16), %s2491_s30 }
   0xd   : > { %3510 = sst [smem:[#allocation7_spill]] %s3529_s15  ;;  %p53_p2 = scmp.eq.s32.totalorder %s2495_s14, 0 }
   0xe   : > { %p38_p3 = scmp.ge.s32.totalorder %s3531_s16, 2  ;;  %p315_p4 = scmp.eq.s32.totalorder %s2167_s17, 3 }
   0xf   : > { %s41_s18 = ssub.s32 %s2487_s29, %s3529_s15  ;;  %p54_p5 = por %p53_p2, %p52_p1 }
  0x10   : > { %s3533_s16 = smov (%p38_p3, %s3531_s16), 0  ;;  %p2620_p6 = por %p315_p4, %p52_p1 }
  0x11   : > { %3511 = sst [smem:[#allocation8_spill]] %s3533_s16  ;;  %s40_s20 = ssub.s32 %s2491_s30, %s3533_s16 }
  0x12   : > { %s3512_s19 = scalar_select %p2620_p6, 1, 0 }
  0x13   : > { %s42_s21 = sor.u32 %s41_s18, %s40_s20  ;;  %s45_s22 = sadd.s32 1, %s2475_s26 }
  0x14   : > { %3513 = sst [smem:[#allocation9_spill]] %s3512_s19  ;;  %p43_p7 = scmp.eq.s32.totalorder %s42_s21, 0 }
  0x15   : > { %p2170_p8 = scmp.ge.s32.totalorder %s2495_s14, 4 }
  0x16   : > { %s2628_s23 = scalar_select %p43_p7, %s2475_s26, %s45_s22  }
  0x17   : > { %414 = sbr.rel (%p2170_p8) target bundleno = 42 (0x2a), region = 44 }
  0x1e   : > { %417 = sbr.rel (!%p54_p5) target bundleno = 42 (0x2a), region = 48  ;;  %s419_s24 = sand.u32 (%p54_p5), 1, %s2475_s26  }
  0x1f   : > { %s2172_s17 = sshll.u32 (%p54_p5), %s2491_s30, 3  ;;  %s2171_s15 = sshll.u32 (%p54_p5), %s419_s24, 5 }
  0x20   : > { %s423_s13 = sadd.s32 (%p54_p5), %s2487_s29, %s2172_s17  ;;  %s3514_s0 = sld [smem:[#allocation10_spill]] (%p54_p5) }
  0x21   : > { %s2173_s12 = sshll.u32 (%p54_p5), %s423_s13, 3  ;;  %s421_s20 = scalar_lea.vmem (%p54_p5), [#allocation2], %s2171_s15 }
  0x26   : > { %s425_s18 = scalar_lea.vmem %s3514_s0, %s2173_s12 }
  0x27   : > { %v459_v0 = vld [vmem:[%s425_s18] sm:$0xff]  ;;  %v461_v1 = vld [vmem:[%s425_s18 + $0x10] sm:$0xff] }
  0x28   : > { %v463_v2 = vld [vmem:[%s425_s18 + $0x20] sm:$0xff]  ;;  %460 = vst [vmem:[%s421_s20] sm:$0xff] %v459_v0  ;;  %462 = vst [vmem:[%s421_s20 + $0x8] sm:$0xff] %v461_v1  ;;  %v465_v3 = vld [vmem:[%s425_s18 + $0x30] sm:$0xff] }
  0x29   : > { %464 = vst [vmem:[%s421_s20 + $0x10] sm:$0xff] %v463_v2  ;;  %466 = vst [vmem:[%s421_s20 + $0x18] sm:$0xff] %v465_v3 }
  0x2a PF: > { %p2174_p9 = scmp.ge.s32.totalorder %s2495_s14, 1  ;;  %p505_p10 = scmp.lt.s32.totalorder %s2495_s14, 5 }
  0x2c   : > { %p506_p11 = pnand %p2174_p9, %p505_p10 }
  0x2d   : > { %v2642_v4 = vld [vmem:[%s3491_s4 + $0x10] sm:$0xff] (!%p506_p11)  ;;  %p587_p12 = scmp.lt.s32.totalorder (!%p506_p11), %s2483_s28, 1  ;;  %p589_p13 = scmp.lt.s32.totalorder (!%p506_p11), %s2479_s27, 1  ;;  %v2649_v5 = vld [vmem:[%s3491_s4] sm:$0xff] (!%p506_p11)  ;;  %v2497_v6 = vmov (!%p506_p11), 0   ;;  %v2667_v8 = vld [vmem:[%s3491_s4 + $0x8] sm:$0xff] (!%p506_p11) }
  0x2e   : > { %509 = sbr.rel (%p506_p11) target bundleno = 660 (0x294), region = 98  ;;  %2406 = vset.pattern.permute.xlu1 (!%p506_p11), %v2497_v6  ;;  %2405 = vset.pattern.permute.xlu0 (!%p506_p11), %v2497_v6  ;;  %v2662_v7 = vld [vmem:[%s3492_s5] sm:$0xff] (!%p506_p11)  ;;  %vm711_vm0 = vcmask (!%p506_p11), 7168   ;;  %v2676_v9 = vld [vmem:[%s3491_s4 + $0x18] sm:$0xff] (!%p506_p11)  ;;  %v2681_v10 = vld [vmem:[%s3492_s5 + $0x8] sm:$0xff] (!%p506_p11)  ;;  %v2498_v48 = vmov (!%p506_p11), 1  }
  0x2f   : > { %671 = vperm.xlu1 (!%p506_p11), %2406, %v2642_v4   ;;  %661 = vperm.xlu0 (!%p506_p11), %2405, %v2649_v5   ;;  %v2699_v14 = vld [vmem:[%s3492_s5 + $0x18] sm:$0xff] (!%p506_p11)  ;;  %v2722_v26 = vld [vmem:[%s3492_s5 + $0x10] sm:$0xff] (!%p506_p11)  ;;  %v2735_v33 = vld [vmem:[%s3493_s6 + $0x8] sm:$0xff] (!%p506_p11)  ;;  %p816_p0 = scmp.gt.s32.totalorder (!%p506_p11), %s2479_s27, 0  ;;  %s2500_s24 = smov (!%p506_p11), 1   ;;  %vm1103_vm1 = vcmask (!%p506_p11), 261120  }
  0x30   : > { %v2740_v35 = vld [vmem:[%s3493_s6] sm:$0xff] (!%p506_p11)  ;;  %v2754_v43 = vld [vmem:[%s3493_s6 + $0x28] sm:$0xff] (!%p506_p11)  ;;  %v2765_v51 = vld [vmem:[%s3493_s6 + $0x30] sm:$0xff] (!%p506_p11)  ;;  %s2501_s17 = smov (!%p506_p11), 127  }
  0x31   : > { %v2772_v55 = vld [vmem:[%s3493_s6 + $0x20] sm:$0xff] (!%p506_p11)  ;;  %v2780_v59 = vld [vmem:[%s3493_s6 + $0x18] sm:$0xff] (!%p506_p11) }
  0x33   : > { %685 = vperm.xlu1 (!%p506_p11), %2406, %v2662_v7   ;;  %666 = vperm.xlu0 (!%p506_p11), %2405, %v2667_v8  }
  0x35   : > { %s588_s19 = scalar_select %p587_p12, %s2483_s28, 1 }
  0x36   : > { %s590_s21 = scalar_select %p589_p13, %s2479_s27, 1 }
  0x37   : > { %s2180_s20 = sshll.u32 %s588_s19, 3  ;;  %s2185_s13 = sshll.u32 %s588_s19, 1  ;;  %676 = vperm.xlu1 %2406, %v2676_v9   ;;  %690 = vperm.xlu0 %2405, %v2681_v10  }
  0x38   : > { %s2179_s11 = sshll.u32 %s590_s21, 2  ;;  %s2669_s12 = sadd.s32 %s2185_s13, %s590_s21 }
  0x39   : > { %s593_s15 = sadd.s32 %s2180_s20, %s2179_s11  ;;  %s512_s19 = sand.u32 1, %s2471_s25  }
  0x3a   : > { %s2181_s0 = sshll.u32 %s593_s15, 3  ;;  %s2724_s16 = sshll.u32 %s512_s19, 5 }
  0x3b   : > { %s595_s20 = scalar_lea.vmem %s3488_s1, %s2181_s0  ;;  %s604_s30 = scalar_lea.vmem %s3489_s2, %s2181_s0  ;;  %700 = vperm.xlu1 %2406, %v2699_v14   ;;  %695 = vperm.xlu0 %2405, %v2722_v26  }
  0x3c   : > { %v2690_v11 = vld [vmem:[%s595_s20] sm:$0xff]  ;;  %v2692_v12 = vld [vmem:[%s595_s20 + $0x8] sm:$0xff]  ;;  %v2694_v13 = vld [vmem:[%s595_s20 + $0x10] sm:$0xff]  ;;  %s514_s19 = scalar_lea.vmem [#allocation2], %s2724_s16  ;;  %s611_s18 = scalar_lea.vmem %s3490_s3, %s2669_s12 }
  0x3d   : > { %v2701_v15 = vld [vmem:[%s595_s20 + $0x18] sm:$0xff]  ;;  %v712_v16 = vsel %vm711_vm0, %v2690_v11, 0.0  ;;  %v713_v17 = vsel %vm711_vm0, %v2692_v12, 0.0  ;;  %v715_v18 = vsel %vm711_vm0, %v2694_v13, 0.0  ;;  %v2709_v19 = vld [vmem:[%s604_s30] sm:$0xff]  ;;  %v2711_v20 = vld [vmem:[%s604_s30 + $0x8] sm:$0xff] }
  0x3e   : > { %v714_v21 = vadd.f32 %v713_v17, %v712_v16  ;;  %v764_v22 = vld [vmem:[%s604_s30 + $0x10] sm:$0xff]  ;;  %v765_v23 = vld [vmem:[%s604_s30 + $0x18] sm:$0xff]  ;;  %v766_v24 = vsel %vm711_vm0, %v2709_v19, 0.0  ;;  %v767_v25 = vsel %vm711_vm0, %v2711_v20, 0.0  ;;  %v717_v27 = vsel %vm711_vm0, %v2701_v15, 0.0  ;;  %v2743_v36 = vld [vmem:[%s514_s19] sm:$0xff] }
  0x3f   : > { %v768_v28 = vadd.f32 %v767_v25, %v766_v24  ;;  %v769_v29 = vsel %vm711_vm0, %v764_v22, 0.0  ;;  %v771_v31 = vsel %vm711_vm0, %v765_v23, 0.0  ;;  %v2745_v37 = vld [vmem:[%s514_s19 + $0x8] sm:$0xff]  ;;  %910 = vperm.xlu1 %2406, %v2735_v33   ;;  %905 = vperm.xlu0 %2405, %v2740_v35   ;;  %v2756_v44 = vld [vmem:[%s514_s19 + $0x10] sm:$0xff]  ;;  %v2767_v52 = vld [vmem:[%s514_s19 + $0x18] sm:$0xff]  ;;  %s3413_s15 = scalar_lea.vmem [#allocation3], %s2724_s16 }
  0x40   : > { %v716_v30 = vadd.f32 %v715_v18, %v714_v21  ;;  %v624_v41 = vadd.f32 %v2745_v37, %v2743_v36  ;;  %v2799_v16 = vld [vmem:[%s3493_s6 + $0x38] sm:$0xff]  ;;  %s817_s19 = scalar_select %p816_p0, 1.0, 0.0 }
  0x41   : > { %v770_v32 = vadd.f32 %v769_v29, %v768_v28  ;;  %s824_s21 = scalar_select %p589_p13, 1.0, 0.0 }
  0x42   : > { %v718_v34 = vadd.f32 %v717_v27, %v716_v30  ;;  %v625_v49 = vadd.f32 %v624_v41, %v2756_v44  ;;  %s3417_s22 = scalar_lea.vmem [#allocation4], %s2724_s16  ;;  %s3427_s0 = scalar_lea.vmem [#allocation5], %s2724_s16 }
  0x43   : > { %v772_v38 = vadd.f32 %v771_v31, %v770_v32  ;;  %2407 = vset.pattern.permute.xlu1 %v2498_v48  ;;  %1217 = vperm.xlu0 %2405, %v2754_v43   ;;  %s2242_s30 = sshll.u32 (%p2620_p6), %s2483_s28, 3  ;;  %s3516_s12 = sld [smem:[#allocation11_spill]] (%p2620_p6) }
  0x44   : > { %v719_v39 = vrot.slane %v718_v34, 4  ;;  %932 = vperm.xlu1 %2407, %v2735_v33   ;;  %v626_v57 = vadd.f32 %v625_v49, %v2767_v52  ;;  %s1829_s16 = sadd.s32 (%p2620_p6), %s2479_s27, %s2242_s30 }
  0x45   : > { %v773_v40 = vrot.slane %v772_v38, 4 }
  0x46   : > { %v720_v42 = vadd.f32 %v719_v39, %v718_v34  ;;  %v627_v63 = vrot.slane %v626_v57, 4 }
  0x47   : > { %v774_v45 = vadd.f32 %v773_v40, %v772_v38  ;;  %1222 = vperm.xlu0 %2405, %v2765_v51  }
  0x48   : > { %v721_v46 = vrot.slane %v720_v42, 2  ;;  %2408 = vset.pattern.permute.xlu1 %v2497_v6  ;;  %v628_v29 = vadd.f32 %v627_v63, %v626_v57 }
  0x49   : > { %v775_v47 = vrot.slane %v774_v45, 2  ;;  %1212 = vperm.xlu1 %2408, %v2772_v55  }
  0x4a   : > { %v722_v50 = vadd.f32 %v721_v46, %v720_v42 }
  0x4b   : > { %v776_v53 = vadd.f32 %v775_v47, %v774_v45  ;;  %920 = vperm.xlu0 %2405, %v2780_v59   ;;  %v2842_v45 = vld [vmem:[%s3493_s6 + $0x10] sm:$0xff]  ;;  %v629_v47 = vrot.slane %v628_v29, 2 }
  0x4c   : > { %v723_v54 = vrot.slane %v722_v50, 1 }
  0x4d   : > { %v777_v56 = vrot.slane %v776_v53, 1  ;;  %2409 = vset.pattern.permute.xlu1 %v2498_v48 }
  0x4e   : > { %v724_v58 = vadd.f32 %v723_v54, %v722_v50  ;;  %1235 = vperm.xlu1 %2409, %v2772_v55  }
  0x4f   : > { %v778_v60 = vadd.f32 %v777_v56, %v776_v53  ;;  %1227 = vperm.xlu0 %2405, %v2799_v16   ;;  %v630_v56 = vadd.f32 %v629_v47, %v628_v29 }
  0x50   : > { %v725_v61 = vmul.f32 0.03125, %v724_v58 }
  0x51   : > { %v779_v62 = vmul.f32 0.03125, %v778_v60  ;;  %v2499_v60 = vmov 2   ;;  %v631_v63 = vrot.slane %v630_v56, 1 }
  0x52   : > { %v2785_v0 = vsub.f32 %v2690_v11, %v725_v61  ;;  %v2788_v1 = vsub.f32 %v2692_v12, %v725_v61  ;;  %v2791_v2 = vsub.f32 %v2694_v13, %v725_v61  ;;  %v2794_v3 = vsub.f32 %v2701_v15, %v725_v61  ;;  %1239 = vperm.xlu1 %2409, %v2754_v43  }
  0x53   : > { %v2802_v17 = vsub.f32 %v2709_v19, %v779_v62  ;;  %v2805_v11 = vsub.f32 %v2711_v20, %v779_v62  ;;  %v2807_v18 = vsub.f32 %v764_v22, %v779_v62  ;;  %v2809_v12 = vsub.f32 %v765_v23, %v779_v62 }
  0x54   : > { %v730_v13 = vmul.f32 %v2785_v0, %v2785_v0  ;;  %v731_v15 = vmul.f32 %v2788_v1, %v2788_v1  ;;  %v732_v21 = vmul.f32 %v2791_v2, %v2791_v2  ;;  %v733_v19 = vmul.f32 %v2794_v3, %v2794_v3 }
  0x55   : > { %v784_v20 = vmul.f32 %v2802_v17, %v2802_v17  ;;  %v785_v22 = vmul.f32 %v2805_v11, %v2805_v11  ;;  %v786_v23 = vmul.f32 %v2807_v18, %v2807_v18  ;;  %v787_v24 = vmul.f32 %v2809_v12, %v2809_v12 }
  0x56   : > { %v734_v25 = vsel %vm711_vm0, %v730_v13, 0.0  ;;  %v735_v27 = vsel %vm711_vm0, %v731_v15, 0.0  ;;  %v737_v28 = vsel %vm711_vm0, %v732_v21, 0.0  ;;  %v739_v38 = vsel %vm711_vm0, %v733_v19, 0.0  ;;  %2410 = vset.pattern.permute.xlu1 %v2497_v6 }
  0x57   : > { %v736_v30 = vadd.f32 %v735_v27, %v734_v25  ;;  %v788_v31 = vsel %vm711_vm0, %v784_v20, 0.0  ;;  %v789_v32 = vsel %vm711_vm0, %v785_v22, 0.0  ;;  %v791_v34 = vsel %vm711_vm0, %v786_v23, 0.0  ;;  %915 = vperm.xlu1 %2410, %v2842_v45  }
  0x58   : > { %v790_v39 = vadd.f32 %v789_v32, %v788_v31  ;;  %v793_v41 = vsel %vm711_vm0, %v787_v24, 0.0  ;;  %v632_v20 = vadd.f32 %v631_v63, %v630_v56 }
  0x59   : > { %v738_v40 = vadd.f32 %v737_v28, %v736_v30 }
  0x5a   : > { %v792_v42 = vadd.f32 %v791_v34, %v790_v39  ;;  %v634_v27 = vmul.f32 0.03125, %v632_v20  ;;  %v825_v34 = vstv %s824_s21  ;;  %v2215_v20 = vld [vmem:[%s3493_s6 + $0x40] sm:$0xff] }
  0x5b   : > { %v740_v46 = vadd.f32 %v739_v38, %v738_v40  ;;  %2411 = vset.pattern.permute.xlu1 %v2499_v60 }
  0x5c   : > { %v794_v49 = vadd.f32 %v793_v41, %v792_v42  ;;  %952 = vperm.xlu1 %2411, %v2740_v35   ;;  %v2857_v29 = vsub.f32 %v2745_v37, %v634_v27  ;;  %v2863_v30 = vsub.f32 %v2756_v44, %v634_v27 }
  0x5d   : > { %v741_v50 = vrot.slane %v740_v46, 4 }
  0x5e   : > { %v795_v53 = vrot.slane %v794_v49, 4  ;;  %v640_v32 = vmul.f32 %v2857_v29, %v2857_v29  ;;  %v641_v44 = vmul.f32 %v2863_v30, %v2863_v30 }
  0x5f   : > { %v742_v54 = vadd.f32 %v741_v50, %v740_v46 }
  0x60   : > { %v796_v57 = vadd.f32 %v795_v53, %v794_v49  ;;  %956 = vperm.xlu1 %2411, %v2735_v33   ;;  %v2854_v33 = vsub.f32 %v2743_v36, %v634_v27  ;;  %v818_v36 = vstv %s817_s19 }
  0x61   : > { %v743_v58 = vrot.slane %v742_v54, 2 }
  0x62   : > { %v797_v61 = vrot.slane %v796_v57, 2  ;;  %v639_v31 = vmul.f32 %v2854_v33, %v2854_v33 }
  0x63   : > { %v744_v62 = vadd.f32 %v743_v58, %v742_v54 }
  0x64   : > { %v798_v13 = vadd.f32 %v797_v61, %v796_v57  ;;  %2412 = vset.pattern.permute.xlu1 %v2498_v48  ;;  %v643_v38 = vadd.f32 %v640_v32, %v639_v31  ;;  %v2216_v31 = vld [vmem:[%s3493_s6 + $0x48] sm:$0xff] }
  0x65   : > { %v745_v15 = vrot.slane %v744_v62, 1  ;;  %1243 = vperm.xlu1 %2412, %v2765_v51  }
  0x66   : > { %v799_v21 = vrot.slane %v798_v13, 1  ;;  %v644_v63 = vadd.f32 %v643_v38, %v641_v44 }
  0x67   : > { %v746_v19 = vadd.f32 %v745_v15, %v744_v62 }
  0x68   : > { %v800_v22 = vadd.f32 %v799_v21, %v798_v13 }
  0x69   : > { %v747_v23 = vmul.f32 0.03125, %v746_v19  ;;  %2413 = vset.pattern.permute.xlu1 %v2499_v60 }
  0x6a   : > { %v801_v24 = vmul.f32 0.03125, %v800_v22  ;;  %1259 = vperm.xlu1 %2413, %v2772_v55   ;;  %v2872_v55 = vsub.f32 %v2767_v52, %v634_v27 }
  0x6b   : > { %v748_v25 = vadd.f32 1e-05, %v747_v23  ;;  %v2911_v23 = vld [vmem:[%s3493_s6 + $0x50] sm:$0xff] }
  0x6c   : > { %v802_v28 = vadd.f32 1e-05, %v801_v24  ;;  %v642_v62 = vmul.f32 %v2872_v55, %v2872_v55 }
  0x6d   : > { %2429 = vrsqrt.f32 %v748_v25 }
  0x6e   : > { %2431 = vrsqrt.f32 %v802_v28  ;;  %2414 = vset.pattern.permute.xlu1 %v2498_v48 }
  0x6f   : > { %940 = vperm.xlu1 %2414, %v2780_v59  }
  0x73   : > { %2415 = vset.pattern.permute.xlu1 %v2499_v60 }
  0x74   : > { %960 = vperm.xlu1 %2415, %v2842_v45  }
  0x77   : > { %v2430_v37 = vpop.eup %2429 }
  0x78   : > { %v2432_v39 = vpop.eup %2431  ;;  %v752_v40 = vmul.f32 %v2430_v37, %v2791_v2  ;;  %v750_v41 = vmul.f32 %v2430_v37, %v2785_v0  ;;  %v751_v42 = vmul.f32 %v2430_v37, %v2788_v1  ;;  %v753_v46 = vmul.f32 %v2430_v37, %v2794_v3  ;;  %2416 = vset.pattern.permute.xlu1 %v2497_v6 }
  0x79   : > { %v806_v47 = vmul.f32 %v2432_v39, %v2807_v18  ;;  %v804_v49 = vmul.f32 %v2432_v39, %v2802_v17  ;;  %v805_v52 = vmul.f32 %v2432_v39, %v2805_v11  ;;  %v807_v50 = vmul.f32 %v2432_v39, %v2809_v12 }
  0x7a   : > { %v756_v53 = vmul.f32 %v752_v40, %v2642_v4  ;;  %v754_v2 = vmul.f32 %v750_v41, %v2649_v5  ;;  %v755_v0 = vmul.f32 %v751_v42, %v2667_v8  ;;  %v757_v1 = vmul.f32 %v753_v46, %v2676_v9 }
  0x7b   : > { %v810_v3 = vmul.f32 %v806_v47, %v2642_v4  ;;  %v808_v17 = vmul.f32 %v804_v49, %v2649_v5  ;;  %v809_v11 = vmul.f32 %v805_v52, %v2667_v8  ;;  %v811_v18 = vmul.f32 %v807_v50, %v2676_v9  ;;  %v985_v50 = vld [vmem:[%s3494_s7] sm:$0xff] }
  0x7c   : > { %v758_v12 = vadd.f32 %v754_v2, %v2662_v7  ;;  %v759_v54 = vadd.f32 %v755_v0, %v2681_v10  ;;  %v761_v56 = vadd.f32 %v757_v1, %v2699_v14  ;;  %v760_v57 = vadd.f32 %v756_v53, %v2722_v26  ;;  %v990_v0 = vld [vmem:[%s3495_s8 + $0x8] sm:$0xff] }
  0x7d   : > { %v812_v58 = vadd.f32 %v808_v17, %v2662_v7  ;;  %v813_v61 = vadd.f32 %v809_v11, %v2681_v10  ;;  %v815_v4 = vadd.f32 %v811_v18, %v2699_v14  ;;  %v814_v5 = vadd.f32 %v810_v3, %v2722_v26  ;;  %v2200_v3 = vld [vmem:[%s3495_s8 + $0x28] sm:$0xff]  ;;  %v988_v11 = vld [vmem:[%s3494_s7 + $0x18] sm:$0xff] }
  0x7e   : > { %v820_v8 = vmul.f32 %v818_v36, %v759_v54  ;;  %v819_v9 = vmul.f32 %v818_v36, %v758_v12  ;;  %v821_v19 = vmul.f32 %v818_v36, %v760_v57  ;;  %v645_v10 = vadd.f32 %v644_v63, %v642_v62  ;;  %v2198_v12 = vld [vmem:[%s3494_s7 + $0x38] sm:$0xff]  ;;  %v986_v54 = vld [vmem:[%s3494_s7 + $0x8] sm:$0xff]  ;;  %v2199_v62 = vld [vmem:[%s3495_s8 + $0x20] sm:$0xff] }
  0x7f   : > { %v827_v13 = vmul.f32 %v825_v34, %v813_v61  ;;  %v828_v15 = vmul.f32 %v825_v34, %v814_v5  ;;  %v829_v21 = vmul.f32 %v825_v34, %v815_v4  ;;  %v826_v7 = vmul.f32 %v825_v34, %v812_v58  ;;  %v992_v57 = vld [vmem:[%s3495_s8 + $0x18] sm:$0xff]  ;;  %v2195_v58 = vld [vmem:[%s3494_s7 + $0x20] sm:$0xff] }
  0x80   : > { %848 = vperm.xlu1 %2416, %v820_v8   ;;  %843 = vperm.xlu0 %2405, %v819_v9   ;;  %v822_v14 = vmul.f32 %v818_v36, %v761_v56  ;;  %v646_v26 = vrot.slane %v645_v10, 4  ;;  %v989_v5 = vld [vmem:[%s3495_s8] sm:$0xff]  ;;  %v2220_v9 = vld [vmem:[%s3494_s7 + $0x48] sm:$0xff] }
  0x82   : > { %v647_v22 = vadd.f32 %v646_v26, %v645_v10  ;;  %v2197_v10 = vld [vmem:[%s3494_s7 + $0x30] sm:$0xff] }
  0x84   : > { %876 = vperm.xlu1 %2416, %v826_v7   ;;  %853 = vperm.xlu0 %2405, %v821_v19   ;;  %v648_v24 = vrot.slane %v647_v22, 2  ;;  %v2222_v19 = vld [vmem:[%s3494_s7 + $0x58] sm:$0xff] }
  0x86   : > { %v649_v25 = vadd.f32 %v648_v24, %v647_v22  ;;  %v991_v22 = vld [vmem:[%s3495_s8 + $0x10] sm:$0xff]  ;;  %v1080_v24 = vld [vmem:[%s3497_s10 + $0x8] sm:$0xff] }
  0x88   : > { %858 = vperm.xlu1 %2416, %v822_v14   ;;  %881 = vperm.xlu0 %2405, %v827_v13   ;;  %v650_v27 = vrot.slane %v649_v25, 1  ;;  %v2224_v13 = vld [vmem:[%s3495_s8 + $0x48] sm:$0xff] }
  0x8a   : > { %v651_v28 = vadd.f32 %v650_v27, %v649_v25  ;;  %v2201_v25 = vld [vmem:[%s3495_s8 + $0x30] sm:$0xff] }
  0x8c   : > { %886 = vperm.xlu1 %2416, %v828_v15   ;;  %1516 = vperm.xlu0 %2405, %v2215_v20   ;;  %v652_v32 = vmul.f32 0.03125, %v651_v28  ;;  %v987_v15 = vld [vmem:[%s3494_s7 + $0x10] sm:$0xff]  ;;  %v1082_v28 = vld [vmem:[%s3497_s10 + $0x18] sm:$0xff] }
  0x90   : > { %2417 = vset.pattern.permute.xlu1 %v2498_v48  ;;  %1526 = vperm.xlu0 %2405, %v2911_v23  }
  0x91   : > { %1247 = vperm.xlu1 %2417, %v2799_v16  }
  0x94   : > { %2422 = vset.pattern.permute.xlu0 %v2499_v60 }
  0x95   : > { %2418 = vset.pattern.permute.xlu1 %v2497_v6  ;;  %1263 = vperm.xlu0 %2422, %v2754_v43   ;;  %v653_v43 = vadd.f32 1e-05, %v652_v32 }
  0x96   : > { %891 = vperm.xlu1 %2418, %v829_v21  }
  0x97   : > { %2433 = vrsqrt.f32 %v653_v43 }
  0x99   : > { %1267 = vperm.xlu0 %2422, %v2765_v51  }
  0x9a   : > { %2419 = vset.pattern.permute.xlu1 %v2499_v60 }
  0x9b   : > { %964 = vperm.xlu1 %2419, %v2780_v59   ;;  %v2218_v59 = vld [vmem:[%s3493_s6 + $0x58] sm:$0xff] }
  0x9d   : > { %1271 = vperm.xlu0 %2422, %v2799_v16  }
  0x9f   : > { %2420 = vset.pattern.permute.xlu1 %v2497_v6 }
  0xa0   : > { %1521 = vperm.xlu1 %2420, %v2216_v31  }
  0xa1   : > { %1567 = vperm.xlu0 %2422, %v2216_v31   ;;  %v2434_v51 = vpop.eup %2433 }
  0xa2   : > { %v656_v37 = vmul.f32 %v2434_v51, %v2857_v29  ;;  %v657_v38 = vmul.f32 %v2434_v51, %v2863_v30  ;;  %v658_v47 = vmul.f32 %v2434_v51, %v2872_v55  ;;  %v2196_v55 = vld [vmem:[%s3494_s7 + $0x28] sm:$0xff] }
  0xa4   : > { %2421 = vset.pattern.permute.xlu1 %v2498_v48 }
  0xa5   : > { %1539 = vperm.xlu1 %2421, %v2215_v20   ;;  %2424 = vset.pattern.permute.xlu0 %v2498_v48  ;;  %v655_v48 = vmul.f32 %v2434_v51, %v2854_v33  ;;  %v2208_v51 = vld [vmem:[%s3497_s10 + $0x28] sm:$0xff] }
  0xa6   : > { %928 = vperm.xlu0 %2424, %v2740_v35  }
  0xa9   : > { %1547 = vperm.xlu1 %2421, %v2911_v23  }
  0xaa   : > { %936 = vperm.xlu0 %2424, %v2842_v45  }
  0xad   : > { %2423 = vset.pattern.permute.xlu1 %v2499_v60 }
  0xae   : > { %1563 = vperm.xlu1 %2423, %v2215_v20   ;;  %1543 = vperm.xlu0 %2424, %v2216_v31   ;;  %v672_v35 = vpop.permute.xlu1 %671  ;;  %v662_v16 = vpop.permute.xlu0 %661  ;;  %v2226_v20 = vld [vmem:[%s3495_s8 + $0x58] sm:$0xff]  ;;  %v2219_v31 = vld [vmem:[%s3494_s7 + $0x40] sm:$0xff] }
  0xaf   : > { %v679_v36 = vmul.f32 %v662_v16, %v655_v48  ;;  %v681_v42 = vmul.f32 %v672_v35, %v657_v38  ;;  %v2210_v16 = vld [vmem:[%s3497_s10 + $0x38] sm:$0xff]  ;;  %v2225_v38 = vld [vmem:[%s3495_s8 + $0x50] sm:$0xff] }
  0xb2   : > { %2425 = vset.pattern.permute.xlu1 %v2497_v6  ;;  %v686_v45 = vpop.permute.xlu1 %685  ;;  %v667_v34 = vpop.permute.xlu0 %666 }
  0xb3   : > { %1531 = vperm.xlu1 %2425, %v2218_v59   ;;  %v2940_v44 = vadd.f32 %v686_v45, %v679_v36  ;;  %v680_v39 = vmul.f32 %v667_v34, %v656_v37  ;;  %v2221_v36 = vld [vmem:[%s3494_s7 + $0x50] sm:$0xff]  ;;  %v2232_v34 = vld [vmem:[%s3497_s10 + $0x48] sm:$0xff] }
  0xb6   : > { %v677_v40 = vpop.permute.xlu1 %676  ;;  %v691_v41 = vpop.permute.xlu0 %690 }
  0xb7   : > { %2426 = vset.pattern.permute.xlu1 %v2499_v60  ;;  %v2944_v33 = vadd.f32 %v691_v41, %v680_v39  ;;  %v682_v49 = vmul.f32 %v677_v40, %v658_v47  ;;  %v2234_v41 = vld [vmem:[%s3497_s10 + $0x58] sm:$0xff]  ;;  %v1081_v47 = vld [vmem:[%s3497_s10 + $0x10] sm:$0xff] }
  0xb8   : > { %833 = vrot.lane.b32.xlu1 %v2940_v44, %s2500_s24 }
  0xb9   : > { %835 = vrot.lane.b32.xlu0 %v2944_v33, %s2500_s24 }
  0xba   : > { %v701_v29 = vpop.permute.xlu1 %700  ;;  %v696_v46 = vpop.permute.xlu0 %695 }
  0xbb   : > { %v2947_v60 = vadd.f32 %v696_v46, %v681_v42  ;;  %v2955_v52 = vadd.f32 %v701_v29, %v682_v49  ;;  %v1079_v42 = vld [vmem:[%s3497_s10] sm:$0xff] }
  0xbd   : > { %866 = vrot.lane.b32.xlu0 %v2940_v44, %s2501_s17  ;;  %837 = vrot.lane.b32.xlu1 %v2947_v60, %s2500_s24 }
  0xbe   : > { %v2952_v30 = vpop.permute.xlu1 %910  ;;  %v3002_v61 = vpop.permute.xlu0 %905 }
  0xc1   : > { %1551 = vperm.xlu0 %2424, %v2218_v59   ;;  %868 = vrot.lane.b32.xlu1 %v2944_v33, %s2501_s17 }
  0xc2   : > { %v3012_v8 = vpop.permute.xlu0 %1217 }
  0xc3   : > { %v2960_v53 = vpop.permute.xlu1 %932 }
  0xc5   : > { %2427 = vset.pattern.permute.xlu0 %v2497_v6  ;;  %839 = vrot.lane.b32.xlu1 %v2955_v52, %s2500_s24  ;;  %s2243_s24 = sshll.u32 (%p2620_p6), %s1829_s16, 3 }
  0xc6   : > { %1029 = vperm.xlu0 %2427, %v985_v50   ;;  %v3028_v21 = vpop.permute.xlu0 %1222  ;;  %s1831_s19 = scalar_lea.vmem (%p2620_p6), %s3516_s12, %s2243_s24 }
  0xc8   : > { %v2967_v2 = vpop.permute.xlu1 %1212 }
  0xc9   : > { %870 = vrot.lane.b32.xlu1 %v2947_v60, %s2501_s17 }
  0xca   : > { %1337 = vperm.xlu0 %2427, %v2196_v55   ;;  %v3038_v14 = vpop.permute.xlu0 %920  ;;  %v2207_v55 = vld [vmem:[%s3497_s10 + $0x20] sm:$0xff] }
  0xcd   : > { %v2973_v1 = vpop.permute.xlu1 %1235  ;;  %872 = vrot.lane.b32.xlu1 %v2955_v52, %s2501_s17 }
  0xce   : > { %1058 = vperm.xlu0 %2427, %v990_v0   ;;  %v3056_v27 = vpop.permute.xlu0 %1227 }
  0xd1   : > { %1571 = vperm.xlu1 %2426, %v2911_v23   ;;  %v2980_v17 = vpop.permute.xlu1 %1239 }
  0xd2   : > { %1361 = vperm.xlu0 %2427, %v2200_v3   ;;  %v2209_v3 = vld [vmem:[%s3497_s10 + $0x30] sm:$0xff] }
  0xd5   : > { %1575 = vperm.xlu1 %2426, %v2218_v59   ;;  %v2223_v59 = vld [vmem:[%s3495_s8 + $0x40] sm:$0xff] }
  0xd6   : > { %1044 = vperm.xlu0 %2427, %v988_v11   ;;  %v2985_v18 = vpop.permute.xlu1 %915  ;;  %v1075_v11 = vld [vmem:[%s3496_s9] sm:$0xff] }
  0xd7   : > { %2282 = vmatprep.mubr.msk.f32.mxu0 %vm1103_vm1, %v1075_v11  ;;  %v944_v11 = vmul.f32 %v2960_v53, %v2944_v33 }
  0xd9   : > { %2428 = vset.pattern.permute.xlu1 %v2497_v6  ;;  %v2202_v6 = vld [vmem:[%s3495_s8 + $0x38] sm:$0xff] }
  0xda   : > { %1347 = vperm.xlu0 %2427, %v2198_v12   ;;  %1034 = vperm.xlu1 %2428, %v986_v54   ;;  %v2203_v12 = vld [vmem:[%s3496_s9 + $0x20] sm:$0xff] }
  0xdb   : > { %v2994_v56 = vpop.permute.xlu1 %952  ;;  %2296 = vmatprep.mubr.msk.f32.mxu1 %vm1103_vm1, %v2203_v12 }
  0xde   : > { %1068 = vperm.xlu0 %2427, %v992_v57   ;;  %1332 = vperm.xlu1 %2428, %v2195_v58   ;;  %v2231_v58 = vld [vmem:[%s3497_s10 + $0x40] sm:$0xff] }
  0xdf   : > { %v3004_v4 = vpop.permute.xlu1 %956 }
  0xe2   : > { %1371 = vperm.xlu0 %2427, %v2202_v6   ;;  %1053 = vperm.xlu1 %2428, %v989_v5  }
  0xe4   : > { %v3020_v63 = vpop.permute.xlu1 %1243 }
  0xe6   : > { %1641 = vperm.xlu0 %2427, %v2220_v9   ;;  %1356 = vperm.xlu1 %2428, %v2199_v62   ;;  %v2233_v9 = vld [vmem:[%s3497_s10 + $0x50] sm:$0xff] }
  0xe9   : > { %v3030_v7 = vpop.permute.xlu1 %1259 }
  0xea   : > { %1665 = vperm.xlu0 %2427, %v2224_v13   ;;  %1039 = vperm.xlu1 %2428, %v987_v15  }
  0xee   : > { %1651 = vperm.xlu0 %2427, %v2222_v19   ;;  %1342 = vperm.xlu1 %2428, %v2197_v10   ;;  %v3040_v26 = vpop.permute.xlu1 %940 }
  0xf2   : > { %1675 = vperm.xlu0 %2427, %v2226_v20   ;;  %1063 = vperm.xlu1 %2428, %v991_v22   ;;  %v830_v22 = vlaneseq }
  0xf3   : > { %v3048_v23 = vpop.permute.xlu1 %960 }
  0xf6   : > { %1090 = vperm.xlu0 %2427, %v1080_v24   ;;  %1366 = vperm.xlu1 %2428, %v2201_v25   ;;  %v3151_v24 = vand.u32 127, %v830_v22 }
  0xf8   : > { %vm865_vm2 = vcmp.eq.s32.totalorder %v3151_v24, 127  ;;  %vm832_vm3 = vcmp.eq.s32.totalorder %v3151_v24, 0 }
  0xfa   : > { %1100 = vperm.xlu0 %2427, %v1082_v28   ;;  %1636 = vperm.xlu1 %2428, %v2219_v31  }
  0xfe   : > { %1395 = vperm.xlu0 %2427, %v2208_v51   ;;  %1660 = vperm.xlu1 %2428, %v2223_v59  }
  0xff   : > { %v3064_v32 = vpop.permute.xlu1 %848  ;;  %v3066_v43 = vpop.permute.xlu0 %843 }
 0x102   : > { %1405 = vperm.xlu0 %2427, %v2210_v16   ;;  %1646 = vperm.xlu1 %2428, %v2221_v36   ;;  %v1250_v36 = vmul.f32 %v2973_v1, %v2940_v44 }
 0x103   : > { %v877_v48 = vpop.permute.xlu1 %876  ;;  %v3074_v35 = vpop.permute.xlu0 %853 }
 0x106   : > { %1699 = vperm.xlu0 %2427, %v2232_v34   ;;  %1670 = vperm.xlu1 %2428, %v2225_v38  }
 0x107   : > { %v3082_v37 = vpop.permute.xlu1 %858  ;;  %v3084_v45 = vpop.permute.xlu0 %881 }
 0x10a   : > { %1709 = vperm.xlu0 %2427, %v2234_v41   ;;  %1085 = vperm.xlu1 %2428, %v1079_v42  }
 0x10b   : > { %v3092_v39 = vpop.permute.xlu1 %886  ;;  %v3094_v40 = vpop.permute.xlu0 %1516 }
 0x10e   : > { %1095 = vperm.xlu1 %2428, %v1081_v47  }
 0x10f   : > { %v3102_v29 = vpop.permute.xlu0 %1526 }
 0x110   : > { %v3104_v46 = vpop.permute.xlu1 %1247 }
 0x112   : > { %1390 = vperm.xlu1 %2428, %v2207_v55   ;;  %v3182_v55 = vld [vmem:[%s611_s18] ss:$0 sm:$0xff] }
 0x114   : > { %v3109_v49 = vpop.permute.xlu0 %1263 }
 0x115   : > { %v3111_v50 = vpop.permute.xlu1 %891 }
 0x116   : > { %1400 = vperm.xlu1 %2428, %v2209_v3  }
 0x118   : > { %v3116_v0 = vpop.permute.xlu0 %1267 }
 0x11a   : > { %v3127_v54 = vpop.permute.xlu1 %964  ;;  %1694 = vperm.xlu1 %2428, %v2231_v58  }
 0x11c   : > { %v3131_v57 = vpop.permute.xlu0 %1271 }
 0x11e   : > { %1704 = vperm.xlu1 %2428, %v2233_v9  }
 0x11f   : > { %v3136_v6 = vpop.permute.xlu1 %1521 }
 0x120   : > { %v3138_v5 = vpop.permute.xlu0 %1567 }
 0x124   : > { %v3143_v62 = vpop.permute.xlu1 %1539 }
 0x125   : > { %v929_v13 = vpop.permute.xlu0 %928 }
 0x128   : > { %v3145_v15 = vpop.permute.xlu1 %1547 }
 0x129   : > { %v937_v19 = vpop.permute.xlu0 %936 }
 0x12d   : > { %v3147_v10 = vpop.permute.xlu0 %1543  ;;  %v3149_v20 = vpop.permute.xlu1 %1563 }
 0x131   : > { %v836_v25 = vpop.permute.xlu0 %835 }
 0x132   : > { %v3153_v28 = vpop.permute.xlu1 %1531  ;;  %v862_v34 = vsel %vm832_vm3, %v3064_v32, %v836_v25 }
 0x133   : > { %v924_v1 = vmul.f32 %v2952_v30, %v862_v34  ;;  %v1251_v30 = vmul.f32 %v2980_v17, %v2944_v33 }
 0x135   : > { %v867_v31 = vpop.permute.xlu0 %866  ;;  %v948_v9 = vadd.f32 %v944_v11, %v924_v1 }
 0x136   : > { %v834_v51 = vpop.permute.xlu1 %833  ;;  %v3159_v59 = vsel %vm865_vm2, %v877_v48, %v867_v31 }
 0x137   : > { %v3164_v16 = vsel %vm832_vm3, %v3066_v43, %v834_v51  ;;  %v943_v43 = vmul.f32 %v929_v13, %v2940_v44  ;;  %v1274_v41 = vmul.f32 %v3030_v7, %v3159_v59  ;;  %v1252_v7 = vmul.f32 %v3020_v63, %v2947_v60 }
 0x138   : > { %v923_v48 = vmul.f32 %v3002_v61, %v3164_v16  ;;  %v1230_v38 = vmul.f32 %v2967_v2, %v3164_v16  ;;  %v1231_v61 = vmul.f32 %v3012_v8, %v862_v34 }
 0x13a   : > { %v1254_v42 = vadd.f32 %v1250_v36, %v1230_v38  ;;  %v838_v47 = vpop.permute.xlu1 %837  ;;  %v947_v3 = vadd.f32 %v943_v43, %v923_v48  ;;  %v1255_v63 = vadd.f32 %v1251_v30, %v1231_v61  ;;  %v946_v61 = vmul.f32 %v3040_v26, %v2955_v52 }
 0x13b   : > { %v3188_v32 = vsel %vm832_vm3, %v3074_v35, %v838_v47  ;;  %v967_v35 = vmul.f32 %v2994_v56, %v3159_v59 }
 0x13c   : > { %v1278_v2 = vadd.f32 %v1274_v41, %v1254_v42  ;;  %v1232_v12 = vmul.f32 %v3028_v21, %v3188_v32  ;;  %v925_v56 = vmul.f32 %v2985_v18, %v3188_v32 }
 0x13d   : > { %v971_v22 = vadd.f32 %v967_v35, %v947_v3  ;;  %v1253_v3 = vmul.f32 %v3104_v46, %v2955_v52 }
 0x13e   : > { %v3202_v58 = vmul.f32 %v3182_v55, %v1278_v2  ;;  %v869_v8 = vpop.permute.xlu1 %868  ;;  %v1256_v13 = vadd.f32 %v1252_v7, %v1232_v12 }
 0x13f   : > { %v895_v53 = vsel %vm865_vm2, %v3084_v45, %v869_v8  ;;  %v3212_v36 = vmul.f32 %v3182_v55, %v971_v22 }
 0x140   : > { %v968_v21 = vmul.f32 %v3004_v4, %v895_v53  ;;  %v1275_v25 = vmul.f32 %v3109_v49, %v895_v53  ;;  %v945_v49 = vmul.f32 %v937_v19, %v2947_v60 }
 0x142   : > { %v972_v17 = vadd.f32 %v968_v21, %v948_v9  ;;  %v1279_v31 = vadd.f32 %v1275_v25, %v1255_v63  ;;  %v840_v51 = vpop.permute.xlu1 %839  ;;  %v949_v1 = vadd.f32 %v945_v49, %v925_v56  ;;  %v1535_v9 = vmul.f32 %v3136_v6, %v862_v34 }
 0x143   : > { %v864_v4 = vsel %vm832_vm3, %v3082_v37, %v840_v51  ;;  %v1579_v63 = vmul.f32 %v3138_v5, %v895_v53  ;;  %v1536_v6 = vmul.f32 %v3102_v29, %v3188_v32 }
 0x144   : > { %v3215_v48 = vmul.f32 %v3182_v55, %v972_v17  ;;  %v3218_v45 = vmul.f32 %v3182_v55, %v1279_v31  ;;  %v926_v41 = vmul.f32 %v3038_v14, %v864_v4  ;;  %v1233_v42 = vmul.f32 %v3056_v27, %v864_v4 }
 0x145   : > { %v1556_v31 = vmul.f32 %v3145_v15, %v2947_v60 }
 0x146   : > { %v993_v38 = vadd.f32 %v3215_v48, %v3212_v36  ;;  %v1296_v18 = vadd.f32 %v3218_v45, %v3202_v58  ;;  %v871_v43 = vpop.permute.xlu1 %870  ;;  %v950_v7 = vadd.f32 %v946_v61, %v926_v41  ;;  %v1257_v27 = vadd.f32 %v1253_v3, %v1233_v42 }
 0x147   : > { %v896_v47 = vsel %vm865_vm2, %v3092_v39, %v871_v43  ;;  %v1560_v56 = vadd.f32 %v1556_v31, %v1536_v6 }
 0x148   : > { %v969_v37 = vmul.f32 %v3048_v23, %v896_v47  ;;  %v1276_v19 = vmul.f32 %v3116_v0, %v896_v47 }
 0x14a   : > { %v973_v2 = vadd.f32 %v969_v37, %v949_v1  ;;  %v1280_v11 = vadd.f32 %v1276_v19, %v1256_v13  ;;  %v873_v14 = vpop.permute.xlu1 %872 }
 0x14b   : > { %v897_v39 = vsel %vm865_vm2, %v3111_v50, %v873_v14  ;;  %v1534_v50 = vmul.f32 %v3094_v40, %v3164_v16  ;;  %v1552_v40 = vpop.permute.xlu0 %1551 }
 0x14c   : > { %v3243_v12 = vmul.f32 %v3182_v55, %v973_v2  ;;  %v3246_v23 = vmul.f32 %v3182_v55, %v1280_v11  ;;  %v970_v26 = vmul.f32 %v3127_v54, %v897_v39  ;;  %v1277_v0 = vmul.f32 %v3131_v57, %v897_v39 }
 0x14d   : > { %v1554_v54 = vmul.f32 %v3143_v62, %v2940_v44  ;;  %v1555_v57 = vmul.f32 %v3147_v10, %v2944_v33  ;;  %v1578_v44 = vmul.f32 %v3149_v20, %v3159_v59  ;;  %v1557_v51 = vmul.f32 %v1552_v40, %v2955_v52 }
 0x14e   : > { %v994_v46 = vadd.f32 %v993_v38, %v3243_v12  ;;  %v1297_v30 = vadd.f32 %v1296_v18, %v3246_v23  ;;  %v974_v35 = vadd.f32 %v970_v26, %v950_v7  ;;  %v1281_v8 = vadd.f32 %v1277_v0, %v1257_v27 }
 0x14f   : > { %v1559_v25 = vadd.f32 %v1555_v57, %v1535_v9  ;;  %v1558_v17 = vadd.f32 %v1554_v54, %v1534_v50  ;;  %v1537_v18 = vmul.f32 %v3153_v28, %v864_v4  ;;  %v3273_v20 = vpop.permute.xlu0 %1029 }
 0x150   : > { %v984_v24 = vmul.f32 %v3182_v55, %v974_v35  ;;  %v1285_v13 = vmul.f32 %v3182_v55, %v1281_v8  ;;  %v1572_v5 = vpop.permute.xlu1 %1571 }
 0x151   : > { %v1583_v62 = vadd.f32 %v1579_v63, %v1559_v25  ;;  %v1582_v53 = vadd.f32 %v1578_v44, %v1558_v17  ;;  %v1580_v49 = vmul.f32 %v1572_v5, %v896_v47  ;;  %v1561_v42 = vadd.f32 %v1557_v51, %v1537_v18 }
 0x152   : > { %v995_v22 = vadd.f32 %v994_v46, %v984_v24  ;;  %v1298_v21 = vadd.f32 %v1297_v30, %v1285_v13 }
 0x153   : > { %v3270_v32 = vmul.f32 %v3182_v55, %v1583_v62  ;;  %v1584_v60 = vadd.f32 %v1580_v49, %v1560_v56  ;;  %v1586_v41 = vmul.f32 %v3182_v55, %v1582_v53  ;;  %v3284_v27 = vpop.permute.xlu0 %1337 }
 0x154   : > { %v996_v16 = vrot.slane %v995_v22, 4  ;;  %v1299_v34 = vrot.slane %v1298_v21, 4  ;;  %v1576_v59 = vpop.permute.xlu1 %1575 }
 0x155   : > { %v3277_v52 = vmul.f32 %v3182_v55, %v1584_v60  ;;  %v1581_v47 = vmul.f32 %v1576_v59, %v897_v39  ;;  %v1600_v19 = vadd.f32 %v3270_v32, %v1586_v41 }
 0x156   : > { %v997_v33 = vadd.f32 %v996_v16, %v995_v22  ;;  %v1300_v10 = vadd.f32 %v1299_v34, %v1298_v21 }
 0x157   : > { %v1585_v61 = vadd.f32 %v1581_v47, %v1561_v42  ;;  %v1601_v4 = vadd.f32 %v1600_v19, %v3277_v52 }
 0x158   : > { %v998_v38 = vrot.slane %v997_v33, 2  ;;  %v1301_v29 = vrot.slane %v1300_v10, 2 }
 0x159   : > { %v1589_v2 = vmul.f32 %v3182_v55, %v1585_v61  ;;  %v3282_v11 = vpop.permute.xlu1 %1034 }
 0x15a   : > { %v999_v15 = vadd.f32 %v998_v38, %v997_v33  ;;  %v1302_v43 = vadd.f32 %v1301_v29, %v1300_v10 }
 0x15b   : > { %v1602_v26 = vadd.f32 %v1601_v4, %v1589_v2 }
 0x15c   : > { %v1000_v1 = vrot.slane %v999_v15, 1  ;;  %v1303_v37 = vrot.slane %v1302_v43, 1 }
 0x15d   : > { %v3308_v50 = vpop.permute.xlu1 %1332 }
 0x15e   : > { %v1001_v3 = vadd.f32 %v1000_v1, %v999_v15  ;;  %v1304_v28 = vadd.f32 %v1303_v37, %v1302_v43 }
 0x160   : > { %v1002_v14 = vmul.f32 0.03125, %v1001_v3  ;;  %v1305_v7 = vmul.f32 0.03125, %v1304_v28 }
 0x161   : > { %v3324_v63 = vpop.permute.xlu1 %1053 }
 0x162   : > { %v3286_v0 = vsub.f32 %v984_v24, %v1002_v14  ;;  %v3288_v39 = vsub.f32 %v1285_v13, %v1305_v7  ;;  %v3291_v46 = vsub.f32 %v3212_v36, %v1002_v14  ;;  %v3294_v30 = vsub.f32 %v3215_v48, %v1002_v14 }
 0x163   : > { %v3297_v35 = vsub.f32 %v3243_v12, %v1002_v14  ;;  %v3300_v55 = vsub.f32 %v3202_v58, %v1305_v7  ;;  %v3303_v8 = vsub.f32 %v3218_v45, %v1305_v7  ;;  %v3306_v9 = vsub.f32 %v3246_v23, %v1305_v7  ;;  %v3320_v23 = vpop.permute.xlu0 %1058 }
 0x164   : > { %v1007_v36 = vmul.f32 %v3291_v46, %v3291_v46  ;;  %v1008_v48 = vmul.f32 %v3294_v30, %v3294_v30  ;;  %v1603_v13 = vrot.slane %v1602_v26, 4  ;;  %v1010_v22 = vmul.f32 %v3286_v0, %v3286_v0 }
 0x165   : > { %v1310_v12 = vmul.f32 %v3300_v55, %v3300_v55  ;;  %v1311_v58 = vmul.f32 %v3303_v8, %v3303_v8  ;;  %v1009_v45 = vmul.f32 %v3297_v35, %v3297_v35  ;;  %v1312_v54 = vmul.f32 %v3306_v9, %v3306_v9  ;;  %v3332_v33 = vpop.permute.xlu1 %1356 }
 0x166   : > { %v1011_v24 = vadd.f32 %v1008_v48, %v1007_v36  ;;  %v1604_v25 = vadd.f32 %v1603_v13, %v1602_v26  ;;  %v1313_v17 = vmul.f32 %v3288_v39, %v3288_v39 }
 0x167   : > { %v1314_v57 = vadd.f32 %v1311_v58, %v1310_v12  ;;  %v3330_v44 = vpop.permute.xlu0 %1361 }
 0x168   : > { %v1012_v21 = vadd.f32 %v1011_v24, %v1009_v45  ;;  %v1605_v16 = vrot.slane %v1604_v25, 2 }
 0x169   : > { %v1315_v6 = vadd.f32 %v1314_v57, %v1312_v54  ;;  %v1040_v15 = vpop.permute.xlu1 %1039 }
 0x16a   : > { %v1013_v40 = vadd.f32 %v1012_v21, %v1010_v22  ;;  %v1606_v62 = vadd.f32 %v1605_v16, %v1604_v25 }
 0x16b   : > { %v1316_v34 = vadd.f32 %v1315_v6, %v1313_v17  ;;  %v1045_v60 = vpop.permute.xlu0 %1044 }
 0x16c   : > { %v1014_v31 = vrot.slane %v1013_v40, 4  ;;  %v1607_v53 = vrot.slane %v1606_v62, 1 }
 0x16d   : > { %v1317_v10 = vrot.slane %v1316_v34, 4  ;;  %v1343_v26 = vpop.permute.xlu1 %1342 }
 0x16e   : > { %v1015_v5 = vadd.f32 %v1014_v31, %v1013_v40  ;;  %v1608_v49 = vadd.f32 %v1607_v53, %v1606_v62 }
 0x16f   : > { %v1318_v51 = vadd.f32 %v1317_v10, %v1316_v34 }
 0x170   : > { %v1016_v56 = vrot.slane %v1015_v5, 2  ;;  %v1609_v18 = vmul.f32 0.03125, %v1608_v49 }
 0x171   : > { %v1319_v38 = vrot.slane %v1318_v51, 2  ;;  %v1064_v13 = vpop.permute.xlu1 %1063 }
 0x172   : > { %v1017_v29 = vadd.f32 %v1016_v56, %v1015_v5  ;;  %v3334_v42 = vsub.f32 %v1586_v41, %v1609_v18  ;;  %v3337_v47 = vsub.f32 %v3270_v32, %v1609_v18  ;;  %v3340_v37 = vsub.f32 %v3277_v52, %v1609_v18  ;;  %v1348_v41 = vpop.permute.xlu0 %1347 }
 0x173   : > { %v1320_v43 = vadd.f32 %v1319_v38, %v1318_v51  ;;  %v3342_v61 = vsub.f32 %v1589_v2, %v1609_v18 }
 0x174   : > { %v1018_v59 = vrot.slane %v1017_v29, 1  ;;  %v1614_v3 = vmul.f32 %v3334_v42, %v3334_v42  ;;  %v1615_v28 = vmul.f32 %v3337_v47, %v3337_v47  ;;  %v1616_v32 = vmul.f32 %v3340_v37, %v3340_v37 }
 0x175   : > { %v1321_v1 = vrot.slane %v1320_v43, 1  ;;  %v1617_v2 = vmul.f32 %v3342_v61, %v3342_v61  ;;  %v1367_v25 = vpop.permute.xlu1 %1366 }
 0x176   : > { %v1019_v19 = vadd.f32 %v1018_v59, %v1017_v29  ;;  %v1618_v7 = vadd.f32 %v1615_v28, %v1614_v3  ;;  %v1069_v45 = vpop.permute.xlu0 %1068 }
 0x177   : > { %v1322_v4 = vadd.f32 %v1321_v1, %v1320_v43 }
 0x178   : > { %v1020_v14 = vmul.f32 0.03125, %v1019_v19  ;;  %v1619_v48 = vadd.f32 %v1618_v7, %v1616_v32  ;;  %v2205_v32 = vld [vmem:[%s3496_s9 + $0x30] sm:$0xff] }
 0x179   : > { %v1323_v36 = vmul.f32 0.03125, %v1322_v4  ;;  %v1637_v43 = vpop.permute.xlu1 %1636 }
 0x17a   : > { %v1021_v52 = vadd.f32 1e-05, %v1020_v14  ;;  %v1620_v58 = vadd.f32 %v1619_v48, %v1617_v2  ;;  %v1372_v22 = vpop.permute.xlu0 %1371 }
 0x17b   : > { %v1324_v12 = vadd.f32 1e-05, %v1323_v36 }
 0x17c   : > { %2435 = vrsqrt.f32 %v1021_v52  ;;  %v1621_v24 = vrot.slane %v1620_v58, 4 }
 0x17d   : > { %2437 = vrsqrt.f32 %v1324_v12  ;;  %v1661_v4 = vpop.permute.xlu1 %1660  ;;  %v2206_v12 = vld [vmem:[%s3496_s9 + $0x38] sm:$0xff] }
 0x17e   : > { %v1622_v54 = vadd.f32 %v1621_v24, %v1620_v58  ;;  %v1642_v18 = vpop.permute.xlu0 %1641  ;;  %v2227_v58 = vld [vmem:[%s3496_s9 + $0x40] sm:$0xff] }
 0x180   : > { %v1623_v57 = vrot.slane %v1622_v54, 2 }
 0x182   : > { %v1624_v21 = vadd.f32 %v1623_v57, %v1622_v54 }
 0x184   : > { %v1625_v6 = vrot.slane %v1624_v21, 1 }
 0x186   : > { %v2436_v17 = vpop.eup %2435  ;;  %v1626_v51 = vadd.f32 %v1625_v6, %v1624_v21  ;;  %v2228_v6 = vld [vmem:[%s3496_s9 + $0x48] sm:$0xff] }
 0x187   : > { %v2438_v40 = vpop.eup %2437  ;;  %v1023_v16 = vmul.f32 %v2436_v17, %v3291_v46  ;;  %v1026_v34 = vmul.f32 %v2436_v17, %v3286_v0  ;;  %v1024_v31 = vmul.f32 %v2436_v17, %v3294_v30  ;;  %v1025_v62 = vmul.f32 %v2436_v17, %v3297_v35 }
 0x188   : > { %v1327_v10 = vmul.f32 %v2438_v40, %v3303_v8  ;;  %v1329_v5 = vmul.f32 %v2438_v40, %v3288_v39  ;;  %v1326_v53 = vmul.f32 %v2438_v40, %v3300_v55  ;;  %v1627_v35 = vmul.f32 0.03125, %v1626_v51 }
 0x189   : > { %v1047_v56 = vmul.f32 %v3273_v20, %v1023_v16  ;;  %v1050_v49 = vmul.f32 %v1045_v60, %v1026_v34  ;;  %v1048_v38 = vmul.f32 %v3282_v11, %v1024_v31  ;;  %v1049_v29 = vmul.f32 %v1040_v15, %v1025_v62 }
 0x18a   : > { %v1351_v46 = vmul.f32 %v3284_v27, %v1327_v10  ;;  %v1353_v0 = vmul.f32 %v1348_v41, %v1329_v5  ;;  %v1350_v30 = vmul.f32 %v3308_v50, %v1326_v53  ;;  %v1328_v59 = vmul.f32 %v2438_v40, %v3306_v9  ;;  %v1076_v9 = vld [vmem:[%s3496_s9 + $0x8] sm:$0xff]  ;;  %v1647_v41 = vpop.permute.xlu1 %1646  ;;  %v2230_v40 = vld [vmem:[%s3496_s9 + $0x58] sm:$0xff] }
 0x18b   : > { %v1072_v8 = vadd.f32 %v3320_v23, %v1048_v38  ;;  %v1074_v39 = vadd.f32 %v1069_v45, %v1050_v49  ;;  %v1071_v55 = vadd.f32 %v3324_v63, %v1047_v56  ;;  %v1628_v60 = vadd.f32 1e-05, %v1627_v35  ;;  %v1666_v23 = vpop.permute.xlu0 %1665 }
 0x18c   : > { %v1375_v20 = vadd.f32 %v3330_v44, %v1351_v46  ;;  %v1374_v11 = vadd.f32 %v3332_v33, %v1350_v30  ;;  %v1377_v15 = vadd.f32 %v1372_v22, %v1353_v0  ;;  %v1352_v27 = vmul.f32 %v1343_v26, %v1328_v59  ;;  %v2204_v44 = vld [vmem:[%s3496_s9 + $0x28] sm:$0xff]  ;;  %v1077_v33 = vld [vmem:[%s3496_s9 + $0x10] sm:$0xff]  ;;  %v1078_v26 = vld [vmem:[%s3496_s9 + $0x18] sm:$0xff] }
 0x18d   : > { %v1073_v1 = vadd.f32 %v1064_v13, %v1049_v29  ;;  %v2316_v19 = vpack.c.bf16 %v1072_v8, %v1071_v55  ;;  %2439 = vrsqrt.f32 %v1628_v60 }
 0x18e   : > { %v2324_v50 = vpack.c.bf16 %v1375_v20, %v1374_v11  ;;  %v1376_v28 = vadd.f32 %v1367_v25, %v1352_v27  ;;  %v1671_v13 = vpop.permute.xlu1 %1670 }
 0x18f   : > { %v2320_v3 = vpack.c.bf16 %v1074_v39, %v1073_v1  ;;  %2317 = vmatprep.subr.bf16.mxu0 %v2316_v19  ;;  %v1652_v14 = vpop.permute.xlu0 %1651 }
 0x190   : > { %2325 = vmatprep.subr.bf16.mxu1 %v2324_v50  ;;  %2319 = vmatpush3.bf16.msra.mxu0 %v2316_v19  ;;  %v2328_v63 = vpack.c.bf16 %v1377_v15, %v1376_v28 }
 0x191   : > { %2327 = vmatpush3.bf16.msra.mxu1 %v2324_v50  ;;  %2321 = vmatprep.subr.bf16.mxu0 %v2320_v3 }
 0x192   : > { %2329 = vmatprep.subr.bf16.mxu1 %v2328_v63  ;;  %v1086_v34 = vpop.permute.xlu1 %1085 }
 0x194   : > { %2323 = vmatpush3.bf16.msra.mxu0 %v2320_v3 }
 0x195   : > { %2331 = vmatpush3.bf16.msra.mxu1 %v2328_v63 }
 0x196   : > { %v1096_v62 = vpop.permute.xlu1 %1095 }
 0x197   : > { %2283 = vmatmul.mubr.msk.f32.vlgmr.msra.gmra.mrb[0].mxu0 %vm1103_vm1, %v1076_v9  ;;  %v2440_v7 = vpop.eup %2439 }
 0x198   : > { %2297 = vmatmul.mubr.msk.f32.vlgmr.msra.gmra.mrb[0].mxu1 %vm1103_vm1, %v2204_v44  ;;  %2285 = vmatprep.mubr.msk.f32.mxu0 %vm1103_vm1, %v1077_v33  ;;  %v1631_v36 = vmul.f32 %v2440_v7, %v3337_v47  ;;  %v1633_v52 = vmul.f32 %v2440_v7, %v3342_v61  ;;  %v1630_v2 = vmul.f32 %v2440_v7, %v3334_v42  ;;  %v2229_v47 = vld [vmem:[%s3496_s9 + $0x50] sm:$0xff] }
 0x199   : > { %v1632_v48 = vmul.f32 %v2440_v7, %v3340_v37  ;;  %2299 = vmatprep.mubr.msk.f32.mxu1 %vm1103_vm1, %v2205_v32  ;;  %v1676_v37 = vpop.permute.xlu0 %1675 }
 0x19a   : > { %v1655_v45 = vmul.f32 %v1642_v18, %v1631_v36  ;;  %v1657_v61 = vmul.f32 %v1652_v14, %v1633_v52  ;;  %v1654_v24 = vmul.f32 %v1637_v43, %v1630_v2  ;;  %v1391_v5 = vpop.permute.xlu1 %1390 }
 0x19b   : > { %v1656_v42 = vmul.f32 %v1647_v41, %v1632_v48  ;;  %2286 = vmatmul.mubr.msk.f32.gmra.mrb[2].mxu0 %vm1103_vm1, %v1078_v26 }
 0x19c   : > { %2300 = vmatmul.mubr.msk.f32.gmra.mrb[2].mxu1 %vm1103_vm1, %v2206_v12  ;;  %2310 = vmatprep.mubr.msk.f32.mxu0 %vm1103_vm1, %v2227_v58  ;;  %v1679_v54 = vadd.f32 %v1666_v23, %v1655_v45  ;;  %v1681_v57 = vadd.f32 %v1676_v37, %v1657_v61  ;;  %v1678_v22 = vadd.f32 %v1661_v4, %v1654_v24 }
 0x19d   : > { %v1680_v21 = vadd.f32 %v1671_v13, %v1656_v42  ;;  %2313 = vmatprep.mubr.msk.f32.mxu1 %vm1103_vm1, %v2229_v47  ;;  %v1091_v16 = vpop.permute.xlu0 %1090 }
 0x19e   : > { %v2332_v25 = vpack.c.bf16 %v1679_v54, %v1678_v22  ;;  %v1401_v18 = vpop.permute.xlu1 %1400 }
 0x19f   : > { %v2336_v17 = vpack.c.bf16 %v1681_v57, %v1680_v21 }
 0x1a0   : > { %2333 = vmatprep.subr.bf16.mxu0 %v2332_v25  ;;  %2340 = vmatprep.subr.bf16.mxu1 %v2332_v25 }
 0x1a1   : > { %2335 = vmatpush3.bf16.msra.mxu0 %v2332_v25  ;;  %2342 = vmatpush3.bf16.msra.mxu1 %v2332_v25  ;;  %v1101_v31 = vpop.permute.xlu0 %1100 }
 0x1a2   : > { %2337 = vmatprep.subr.bf16.mxu0 %v2336_v17  ;;  %2341 = vmatprep.subr.bf16.mxu1 %v2336_v17  ;;  %v1695_v15 = vpop.permute.xlu1 %1694 }
 0x1a5   : > { %2339 = vmatpush3.bf16.msra.mxu0 %v2336_v17  ;;  %2343 = vmatpush3.bf16.msra.mxu1 %v2336_v17  ;;  %v1396_v10 = vpop.permute.xlu0 %1395 }
 0x1a6   : > { %v1705_v1 = vpop.permute.xlu1 %1704 }
 0x1a8   : > { %2311 = vmatmul.mubr.msk.f32.vlgmr.msra.gmra.mrb[4].mxu0 %vm1103_vm1, %v2228_v6  ;;  %2314 = vmatmul.mubr.msk.f32.vlgmr.msra.gmra.mrb[4].mxu1 %vm1103_vm1, %v2230_v40 }
 0x1a9   : > { %v1406_v0 = vpop.permute.xlu0 %1405 }
 0x1ad   : > { %v1700_v11 = vpop.permute.xlu0 %1699 }
 0x1b1   : > { %v1710_v27 = vpop.permute.xlu0 %1709 }
 0x26a   : > { %v2284_v53 = vpop.f32.mrb[0].mxu0 }
 0x26b   : > { %v1188_v51 = vadd.f32 %v2284_v53, %v1091_v16  ;;  %v2298_v56 = vpop.f32.mrb[0].mxu1  ;;  %v1182_v49 = vpop.f32.mrb[1].mxu0 }
 0x26c   : > { %v1492_v38 = vadd.f32 %v2298_v56, %v1396_v10  ;;  %v1183_v29 = vadd.f32 %v1182_v49, %v1086_v34  ;;  %v1486_v46 = vpop.f32.mrb[1].mxu1 }
 0x26d   : > { %1202 = vst [vmem:[%s3413_s15 + $0x8] sm:$0xff] %v1188_v51  ;;  %v1487_v30 = vadd.f32 %v1486_v46, %v1391_v5 }
 0x26e   : > { %1506 = vst [vmem:[%s3417_s22 + $0x8] sm:$0xff] %v1492_v38  ;;  %1201 = vst [vmem:[%s3413_s15] sm:$0xff] %v1183_v29  ;;  %v2287_v35 = vpop.f32.mrb[2].mxu0 }
 0x26f   : > { %1505 = vst [vmem:[%s3417_s22] sm:$0xff] %v1487_v30  ;;  %v1198_v43 = vadd.f32 %v2287_v35, %v1101_v31  ;;  %v2301_v8 = vpop.f32.mrb[2].mxu1  ;;  %v1192_v39 = vpop.f32.mrb[3].mxu0 }
 0x270   : > { %v1502_v55 = vadd.f32 %v2301_v8, %v1406_v0  ;;  %v1193_v59 = vadd.f32 %v1192_v39, %v1096_v62  ;;  %v1496_v20 = vpop.f32.mrb[3].mxu1 }
 0x271   : > { %1204 = vst [vmem:[%s3413_s15 + $0x18] sm:$0xff] %v1198_v43  ;;  %v1497_v60 = vadd.f32 %v1496_v20, %v1401_v18 }
 0x272   : > { %1508 = vst [vmem:[%s3417_s22 + $0x18] sm:$0xff] %v1502_v55  ;;  %1203 = vst [vmem:[%s3413_s15 + $0x10] sm:$0xff] %v1193_v59 }
 0x273   : > { %1507 = vst [vmem:[%s3417_s22 + $0x10] sm:$0xff] %v1497_v60 }
 0x274   : > { %v1867_v33 = vld [vmem:[%s3413_s15 + $0x8] sm:$0xff] (%p2620_p6) }
 0x275   : > { %v1865_v44 = vld [vmem:[%s3413_s15] sm:$0xff] (%p2620_p6)  ;;  %1868 = vst [vmem:[%s1831_s19 + $0x10] sm:$0xff] (%p2620_p6), %v1867_v33 }
 0x276   : > { %1866 = vst [vmem:[%s1831_s19] sm:$0xff] (%p2620_p6), %v1865_v44 }
 0x278   : > { %v1871_v41 = vld [vmem:[%s3413_s15 + $0x18] sm:$0xff] (%p2620_p6) }
 0x279   : > { %1827 = sbr.rel (!%p2620_p6) target bundleno = 640 (0x280), region = 106  ;;  %v1869_v14 = vld [vmem:[%s3413_s15 + $0x10] sm:$0xff] (%p2620_p6)  ;;  %1872 = vst [vmem:[%s1831_s19 + $0x30] sm:$0xff] (%p2620_p6), %v1871_v41 }
 0x27a   : > { %1870 = vst [vmem:[%s1831_s19 + $0x20] sm:$0xff] (%p2620_p6), %v1869_v14 }
 0x27b   : > { %v2312_v19 = vpop.f32.mrb[4].mxu0  ;;  %v2315_v50 = vpop.f32.mrb[4].mxu1 }
 0x27c   : > { %v1796_v3 = vadd.f32 %v2312_v19, %v1700_v11  ;;  %v1806_v28 = vadd.f32 %v2315_v50, %v1710_v27  ;;  %v1790_v23 = vpop.f32.mrb[5].mxu0  ;;  %v1800_v4 = vpop.f32.mrb[5].mxu1 }
 0x27d   : > { %v1791_v63 = vadd.f32 %v1790_v23, %v1695_v15  ;;  %v1801_v9 = vadd.f32 %v1800_v4, %v1705_v1 }
 0x27e   : > { %1810 = vst [vmem:[%s3427_s0 + $0x8] sm:$0xff] %v1796_v3  ;;  %1812 = vst [vmem:[%s3427_s0 + $0x18] sm:$0xff] %v1806_v28 }
 0x27f   : > { %1809 = vst [vmem:[%s3427_s0] sm:$0xff] %v1791_v63  ;;  %1811 = vst [vmem:[%s3427_s0 + $0x10] sm:$0xff] %v1801_v9 }
 0x280 PF: > { %1878 = sbr.rel (!%p2620_p6) target bundleno = 650 (0x28a), region = 144  ;;  %s2244_s13 = sshll.u32 (%p2620_p6), %s2483_s28, 3  ;;  %v1916_v32 = vld [vmem:[%s3417_s22] sm:$0xff] (%p2620_p6)  ;;  %v1918_v7 = vld [vmem:[%s3417_s22 + $0x8] sm:$0xff] (%p2620_p6)  ;;  %v1920_v26 = vld [vmem:[%s3417_s22 + $0x10] sm:$0xff] (%p2620_p6) }
 0x281   : > { %s1880_s20 = sadd.s32 (%p2620_p6), %s2479_s27, %s2244_s13  ;;  %v1922_v36 = vld [vmem:[%s3417_s22 + $0x18] sm:$0xff] (%p2620_p6)  ;;  %s3518_s30 = sld [smem:[#allocation12_spill]] (%p2620_p6) }
 0x282   : > { %s2245_s11 = sshll.u32 (%p2620_p6), %s1880_s20, 3 }
 0x287   : > { %s1882_s16 = scalar_lea.vmem %s3518_s30, %s2245_s11 }
 0x288   : > { %1917 = vst [vmem:[%s1882_s16] sm:$0xff] %v1916_v32  ;;  %1919 = vst [vmem:[%s1882_s16 + $0x10] sm:$0xff] %v1918_v7 }
 0x289   : > { %1921 = vst [vmem:[%s1882_s16 + $0x20] sm:$0xff] %v1920_v26  ;;  %1923 = vst [vmem:[%s1882_s16 + $0x30] sm:$0xff] %v1922_v36 }
 0x28a PF: > { %1929 = sbr.rel (!%p2620_p6) target bundleno = 660 (0x294), region = 182  ;;  %s2246_s22 = sshll.u32 (%p2620_p6), %s2483_s28, 3  ;;  %v1967_v52 = vld [vmem:[%s3427_s0] sm:$0xff] (%p2620_p6)  ;;  %v1969_v2 = vld [vmem:[%s3427_s0 + $0x8] sm:$0xff] (%p2620_p6)  ;;  %v1971_v48 = vld [vmem:[%s3427_s0 + $0x10] sm:$0xff] (%p2620_p6) }
 0x28b   : > { %s1931_s17 = sadd.s32 (%p2620_p6), %s2479_s27, %s2246_s22  ;;  %v1973_v12 = vld [vmem:[%s3427_s0 + $0x18] sm:$0xff] (%p2620_p6)  ;;  %s3520_s21 = sld [smem:[#allocation13_spill]] (%p2620_p6) }
 0x28c   : > { %s2247_s18 = sshll.u32 (%p2620_p6), %s1931_s17, 3 }
 0x291   : > { %s1933_s13 = scalar_lea.vmem %s3520_s21, %s2247_s18 }
 0x292   : > { %1968 = vst [vmem:[%s1933_s13] sm:$0xff] %v1967_v52  ;;  %1970 = vst [vmem:[%s1933_s13 + $0x10] sm:$0xff] %v1969_v2 }
 0x293   : > { %1972 = vst [vmem:[%s1933_s13 + $0x20] sm:$0xff] %v1971_v48  ;;  %1974 = vst [vmem:[%s1933_s13 + $0x30] sm:$0xff] %v1973_v12 }
 0x294 PF: > { %s24_s14 = sadd.s32 1, %s2495_s14   ;;  %s3521_s28 = sld [smem:[#allocation6_spill]] }
 0x295   : > { %p21_p1 = scmp.ge.s32.totalorder %s24_s14, 6   ;;  %s3522_s20 = sld [smem:[#allocation7_spill]] }
 0x296   : > { %s3523_s30 = sld [smem:[#allocation8_spill]]  ;;  %s3524_s25 = smov %s2475_s26 }
 0x297   : > { %s3525_s26 = smov %s2628_s23  ;;  %s3526_s27 = smov %s2487_s29 }
 0x298   :  { %23 = sbr.rel (!%p21_p1) target bundleno = 9 (0x9), region = 294 }
 0x29b   : > { %s3527_s29 = smov %s3522_s20 }

// kernel: transformer_block.9
= control target key start
LH: loop header
LB: loop body
LE: loop exit
PB: predicated region body
PF: predicated region fallthrough
CT: control target
= control target key end

     0   :  { %s1279_s0 = inlined_call_operand.vmem [shape: f32[2,128,256], index: 0, kind: input, shape index: {}]   ;;  %s1280_s1 = inlined_call_operand.vmem [shape: f32[32,128], index: 1, kind: input, shape index: {}]   ;;  %s1281_s2 = inlined_call_operand.vmem [shape: f32[32,1], index: 2, kind: input, shape index: {}]   ;;  %s1282_s3 = inlined_call_operand.vmem [shape: f32[2,1,256], index: 3, kind: input, shape index: {}]   ;;  %s1283_s4 = inlined_call_operand.vmem [shape: f32[2,32,256], index: 4, kind: input, shape index: {}]   ;;  %s1284_s5 = inlined_call_operand.hbm [shape: f32[2,32,256], index: 5, kind: output, shape index: {}]  }
   0x1   :  { %1285 = sst [smem:[#allocation7_spill]] %s1279_s0 }
   0x2   :  { %10 = vsyncpa [#allocation5], 0 }
   0x3   :  { %12 = vsyncpa [#allocation5 + $0x1], 0  ;;  %s1053_s18 = smov 0   ;;  %s1055_s19 = smov 0  }
   0x4   :  { %s1057_s20 = smov 0   ;;  %s1059_s21 = smov 0  }
   0x5   :  { %s1061_s22 = smov 0   ;;  %s1063_s23 = smov 0  }
   0x6   :  { %s1065_s24 = smov 0   ;;  %s1067_s25 = smov 0  }
   0x7 LB: > { %s718_s26 = sadd.s32 4294967295, %s1016_s25   ;;  %s719_s27 = sadd.s32 4294967294, %s1016_s25   ;;  %s1016_s25 = sphi %s1067_s25, %s18_s25   ;;  %s1012_s24 = sphi %s1065_s24, %s1296_s24   ;;  %s1008_s23 = sphi %s1063_s23, %s1295_s23   ;;  %s1004_s22 = sphi %s1061_s22, %s1294_s22   ;;  %s1000_s21 = sphi %s1059_s21, %s1293_s21   ;;  %s996_s20 = sphi %s1057_s20, %s1292_s20   ;;  %s992_s19 = sphi %s1055_s19, %s1291_s19   ;;  %s988_s18 = sphi %s1053_s18, %s1290_s18  }
   0x8   : > { %s27_s28 = sadd.s32 1, %s1008_s23  ;;  %s30_s29 = sadd.s32 1, %s1012_s24 }
   0x9   : > { %p28_p0 = scmp.ge.s32.totalorder %s27_s28, 2  ;;  %p46_p1 = scmp.ne.s32.totalorder %s996_s20, %s992_s19 }
   0xa   : > { %p47_p2 = scmp.eq.s32.totalorder %s1016_s25, 0  ;;  %p176_p5 = scmp.eq.s32.totalorder %s718_s26, 3 }
   0xb   : > { %s1298_s28 = smov (%p28_p0, %s27_s28), 0  ;;  %s1300_s29 = smov (!%p28_p0, %s30_s29), %s1012_s24 }
   0xc   : > { %s35_s30 = ssub.s32 %s1008_s23, %s1298_s28  ;;  %p1105_p3 = por %p47_p2, %p46_p1 }
   0xd   : > { %p32_p4 = scmp.ge.s32.totalorder %s1300_s29, 2  ;;  %p181_p6 = scmp.ne.s32.totalorder %s992_s19, %s988_s18 }
   0xe   : > { %p182_p7 = scmp.eq.s32.totalorder %s719_s27, 3  ;;  %p1113_p8 = por %p176_p5, %p46_p1 }
   0xf   : > { %s1302_s29 = smov (%p32_p4, %s1300_s29), 0  ;;  %s39_s11 = sadd.s32 1, %s996_s20 }
  0x10   : > { %p1117_p9 = por %p182_p7, %p181_p6  ;;  %s34_s9 = ssub.s32 %s1012_s24, %s1302_s29 }
  0x11   : > { %s36_s10 = sor.u32 %s35_s30, %s34_s9  ;;  %p721_p11 = scmp.ge.s32.totalorder %s1016_s25, 4 }
  0x12   : > { %p37_p10 = scmp.eq.s32.totalorder %s36_s10, 0 }
  0x13   : > { %204 = sbr.rel (%p721_p11) target bundleno = 52 (0x34), region = 24 }
  0x14   : > { %s1125_s12 = scalar_select %p37_p10, %s996_s20, %s39_s11  }
  0x1a   : > { %207 = sbr.rel (!%p1105_p3) target bundleno = 44 (0x2c), region = 28  ;;  %s209_s13 = sand.u32 (%p1105_p3), 1, %s996_s20  }
  0x1b   : > { %s723_s14 = sshll.u32 (%p1105_p3), %s1012_s24, 5  ;;  %s722_s15 = sshll.u32 (%p1105_p3), %s209_s13, 7 }
  0x1c   : > { %s213_s16 = sadd.s32 (%p1105_p3), %s1008_s23, %s723_s14  ;;  %s1289_s0 = sld [smem:[#allocation7_spill]] (%p1105_p3) }
  0x1d   : > { %s724_s17 = sshll.u32 (%p1105_p3), %s213_s16, 3  ;;  %s211_s9 = scalar_lea.vmem (%p1105_p3), [#allocation2], %s722_s15 }
  0x22   : > { %s1136_s30 = scalar_lea.vmem %s1289_s0, %s724_s17 }
  0x23   : > { %v273_v0 = vld [vmem:[%s1136_s30] sm:$0xff]  ;;  %v275_v1 = vld [vmem:[%s1136_s30 + $0x10] sm:$0xff] }
  0x24   : > { %v277_v2 = vld [vmem:[%s1136_s30 + $0x20] sm:$0xff]  ;;  %274 = vst [vmem:[%s211_s9] sm:$0xff] %v273_v0  ;;  %276 = vst [vmem:[%s211_s9 + $0x8] sm:$0xff] %v275_v1  ;;  %v279_v3 = vld [vmem:[%s1136_s30 + $0x30] sm:$0xff] }
  0x25   : > { %278 = vst [vmem:[%s211_s9 + $0x10] sm:$0xff] %v277_v2  ;;  %v281_v4 = vld [vmem:[%s1136_s30 + $0x40] sm:$0xff]  ;;  %v283_v5 = vld [vmem:[%s1136_s30 + $0x50] sm:$0xff]  ;;  %280 = vst [vmem:[%s211_s9 + $0x18] sm:$0xff] %v279_v3 }
  0x26   : > { %282 = vst [vmem:[%s211_s9 + $0x20] sm:$0xff] %v281_v4  ;;  %284 = vst [vmem:[%s211_s9 + $0x28] sm:$0xff] %v283_v5  ;;  %v285_v6 = vld [vmem:[%s1136_s30 + $0x60] sm:$0xff]  ;;  %v287_v7 = vld [vmem:[%s1136_s30 + $0x70] sm:$0xff] }
  0x27   : > { %v289_v8 = vld [vmem:[%s1136_s30 + $0x80] sm:$0xff]  ;;  %286 = vst [vmem:[%s211_s9 + $0x30] sm:$0xff] %v285_v6  ;;  %288 = vst [vmem:[%s211_s9 + $0x38] sm:$0xff] %v287_v7  ;;  %v291_v9 = vld [vmem:[%s1136_s30 + $0x90] sm:$0xff] }
  0x28   : > { %290 = vst [vmem:[%s211_s9 + $0x40] sm:$0xff] %v289_v8  ;;  %v293_v10 = vld [vmem:[%s1136_s30 + $0xa0] sm:$0xff]  ;;  %v295_v11 = vld [vmem:[%s1136_s30 + $0xb0] sm:$0xff]  ;;  %292 = vst [vmem:[%s211_s9 + $0x48] sm:$0xff] %v291_v9 }
  0x29   : > { %294 = vst [vmem:[%s211_s9 + $0x50] sm:$0xff] %v293_v10  ;;  %296 = vst [vmem:[%s211_s9 + $0x58] sm:$0xff] %v295_v11  ;;  %v297_v12 = vld [vmem:[%s1136_s30 + $0xc0] sm:$0xff]  ;;  %v299_v13 = vld [vmem:[%s1136_s30 + $0xd0] sm:$0xff] }
  0x2a   : > { %v301_v14 = vld [vmem:[%s1136_s30 + $0xe0] sm:$0xff]  ;;  %298 = vst [vmem:[%s211_s9 + $0x60] sm:$0xff] %v297_v12  ;;  %300 = vst [vmem:[%s211_s9 + $0x68] sm:$0xff] %v299_v13  ;;  %v303_v15 = vld [vmem:[%s1136_s30 + $0xf0] sm:$0xff] }
  0x2b   : > { %302 = vst [vmem:[%s211_s9 + $0x70] sm:$0xff] %v301_v14  ;;  %304 = vst [vmem:[%s211_s9 + $0x78] sm:$0xff] %v303_v15 }
  0x2c PF: > { %320 = sbr.rel (!%p1105_p3) target bundleno = 52 (0x34), region = 70  ;;  %s322_s10 = sand.u32 (%p1105_p3), 1, %s996_s20  }
  0x2d   : > { %s726_s11 = sshll.u32 (%p1105_p3), %s1012_s24, 3  ;;  %s725_s13 = sshll.u32 (%p1105_p3), %s322_s10, 5 }
  0x2e   : > { %s326_s14 = sadd.s32 (%p1105_p3), %s1008_s23, %s726_s11  ;;  %s324_s27 = scalar_lea.vmem (%p1105_p3), [#allocation3], %s725_s13 }
  0x2f   : > { %s727_s15 = sshll.u32 (%p1105_p3), %s326_s14, 3 }
  0x30   : > { %s328_s26 = scalar_lea.vmem (%p1105_p3), %s1283_s4, %s727_s15 }
  0x31   : > { %v362_v16 = vld [vmem:[%s328_s26] sm:$0xff] (%p1105_p3)  ;;  %v364_v17 = vld [vmem:[%s328_s26 + $0x10] sm:$0xff] (%p1105_p3) }
  0x32   : > { %v366_v18 = vld [vmem:[%s328_s26 + $0x20] sm:$0xff] (%p1105_p3)  ;;  %363 = vst [vmem:[%s324_s27] sm:$0xff] (%p1105_p3), %v362_v16  ;;  %365 = vst [vmem:[%s324_s27 + $0x8] sm:$0xff] (%p1105_p3), %v364_v17  ;;  %v368_v19 = vld [vmem:[%s328_s26 + $0x30] sm:$0xff] (%p1105_p3) }
  0x33   : > { %367 = vst [vmem:[%s324_s27 + $0x10] sm:$0xff] %v366_v18  ;;  %369 = vst [vmem:[%s324_s27 + $0x18] sm:$0xff] %v368_v19 }
  0x34 PF: > { %p728_p12 = scmp.ge.s32.totalorder %s1016_s25, 1  ;;  %p374_p13 = scmp.lt.s32.totalorder %s1016_s25, 5 }
  0x36   : > { %p375_p0 = pnand %p728_p12, %p374_p13 }
  0x37   : > { %s1165_s6 = sand.u32 (!%p375_p0), 1, %s992_s19   ;;  %v450_v20 = vld [vmem:[%s1280_s1] sm:$0xff] (!%p375_p0)  ;;  %v452_v21 = vld [vmem:[%s1280_s1 + $0x10] sm:$0xff] (!%p375_p0)  ;;  %v1018_v24 = vmov (!%p375_p0), 0   ;;  %v457_v33 = vld [vmem:[%s1281_s2 + $0x18] sm:$0xff] (!%p375_p0)  ;;  %p426_p1 = scmp.lt.s32.totalorder (!%p375_p0), %s1004_s22, 1 }
  0x38   : > { %378 = sbr.rel (%p375_p0) target bundleno = 328 (0x148), region = 108  ;;  %s729_s13 = sshll.u32 (!%p375_p0), %s1165_s6, 7  ;;  %791 = vmatprep.mubr.f32.mxu0 (!%p375_p0), %v450_v20  ;;  %794 = vmatprep.mubr.f32.mxu1 (!%p375_p0), %v452_v21  ;;  %v456_v22 = vld [vmem:[%s1281_s2 + $0x10] sm:$0xff] (!%p375_p0)  ;;  %v454_v23 = vld [vmem:[%s1281_s2] sm:$0xff] (!%p375_p0)  ;;  %v455_v34 = vld [vmem:[%s1281_s2 + $0x8] sm:$0xff] (!%p375_p0) }
  0x39   : > { %921 = vset.pattern.permute.xlu1 (!%p375_p0), %v1018_v24  ;;  %920 = vset.pattern.permute.xlu0 (!%p375_p0), %v1018_v24  ;;  %s1180_s26 = scalar_lea.vmem (!%p375_p0), [#allocation2], %s729_s13  ;;  %v451_v51 = vld [vmem:[%s1280_s1 + $0x8] sm:$0xff] (!%p375_p0)  ;;  %v453_v52 = vld [vmem:[%s1280_s1 + $0x18] sm:$0xff] (!%p375_p0)  ;;  %p428_p2 = scmp.lt.s32.totalorder (!%p375_p0), %s1000_s21, 1 }
  0x3a   : > { %v433_v25 = vld [vmem:[%s1180_s26] sm:$0xff] (!%p375_p0)  ;;  %v434_v26 = vld [vmem:[%s1180_s26 + $0x8] sm:$0xff] (!%p375_p0)  ;;  %v435_v27 = vld [vmem:[%s1180_s26 + $0x10] sm:$0xff] (!%p375_p0)  ;;  %470 = vperm.xlu1 (!%p375_p0), %921, %v456_v22   ;;  %460 = vperm.xlu0 (!%p375_p0), %920, %v454_v23   ;;  %s730_s30 = sshll.u32 (!%p375_p0), %s1165_s6, 5  ;;  %s735_s9 = sshll.u32 (!%p375_p0), %s1004_s22, 3 }
  0x3b   : > { %v797_v28 = vpack.c.bf16 (!%p375_p0), %v434_v26, %v433_v25  ;;  %v436_v29 = vld [vmem:[%s1180_s26 + $0x18] sm:$0xff] (!%p375_p0)  ;;  %v437_v31 = vld [vmem:[%s1180_s26 + $0x20] sm:$0xff] (!%p375_p0)  ;;  %v438_v32 = vld [vmem:[%s1180_s26 + $0x28] sm:$0xff] (!%p375_p0)  ;;  %s597_s14 = sadd.s32 (!%p375_p0), %s1000_s21, %s735_s9  ;;  %s425_s15 = scalar_lea.vmem (!%p375_p0), [#allocation4], %s730_s30 }
  0x3c   : > { %v801_v30 = vpack.c.bf16 (!%p375_p0), %v436_v29, %v435_v27  ;;  %v805_v35 = vpack.c.bf16 (!%p375_p0), %v438_v32, %v437_v31  ;;  %v439_v36 = vld [vmem:[%s1180_s26 + $0x30] sm:$0xff] (!%p375_p0)  ;;  %v440_v37 = vld [vmem:[%s1180_s26 + $0x38] sm:$0xff] (!%p375_p0)  ;;  %v441_v39 = vld [vmem:[%s1180_s26 + $0x40] sm:$0xff] (!%p375_p0)  ;;  %s600_s0 = sshll.u32 (!%p375_p0), %s425_s15, 4  ;;  %s1019_s9 = smov (!%p375_p0), [#allocation4]   ;;  %s1220_s0 = int_to_ptr.vmem [resolvable:$true] %s600_s0 }
  0x3d   : > { %798 = vmatprep.subr.bf16.mxu0 (!%p375_p0), %v797_v28  ;;  %829 = vmatprep.subr.bf16.mxu1 (!%p375_p0), %v797_v28  ;;  %v809_v38 = vpack.c.bf16 (!%p375_p0), %v440_v37, %v439_v36  ;;  %v442_v40 = vld [vmem:[%s1180_s26 + $0x48] sm:$0xff] (!%p375_p0)  ;;  %v443_v42 = vld [vmem:[%s1180_s26 + $0x50] sm:$0xff] (!%p375_p0)  ;;  %v444_v43 = vld [vmem:[%s1180_s26 + $0x58] sm:$0xff] (!%p375_p0)  ;;  %s926_s10 = sshll.u32 (!%p375_p0), %s1019_s9, 4  ;;  %s927_s10 = int_to_ptr.vmem [resolvable:$false] %s926_s10 }
  0x3e   : > { %800 = vmatpush3.bf16.msra.mxu0 (!%p375_p0), %v797_v28  ;;  %837 = vmatpush3.bf16.msra.mxu1 (!%p375_p0), %v797_v28  ;;  %v813_v41 = vpack.c.bf16 (!%p375_p0), %v442_v40, %v441_v39  ;;  %v817_v44 = vpack.c.bf16 (!%p375_p0), %v444_v43, %v443_v42  ;;  %v445_v45 = vld [vmem:[%s1180_s26 + $0x60] sm:$0xff] (!%p375_p0)  ;;  %v446_v46 = vld [vmem:[%s1180_s26 + $0x68] sm:$0xff] (!%p375_p0)  ;;  %v447_v48 = vld [vmem:[%s1180_s26 + $0x70] sm:$0xff] (!%p375_p0)  ;;  %s928_s11 = scalar_lea.vmem (!%p375_p0), %s927_s10, 1024  ;;  %p929_p6 = scmp.lt.s32.totalorder (!%p375_p0), %s1220_s0, %s927_s10 }
  0x3f   : > { %802 = vmatprep.subr.bf16.mxu0 %v801_v30  ;;  %830 = vmatprep.subr.bf16.mxu1 %v801_v30  ;;  %v821_v47 = vpack.c.bf16 %v446_v46, %v445_v45  ;;  %v448_v49 = vld [vmem:[%s1180_s26 + $0x78] sm:$0xff]  ;;  %s427_s16 = scalar_select %p426_p1, %s1004_s22, 1 }
  0x40   : > { %475 = vperm.xlu1 %921, %v457_v33   ;;  %465 = vperm.xlu0 %920, %v455_v34   ;;  %v825_v50 = vpack.c.bf16 %v448_v49, %v447_v48  ;;  %s429_s17 = scalar_select %p428_p2, %s1000_s21, 1 }
  0x41   : > { %s732_s26 = sshll.u32 %s427_s16, 1  ;;  %s390_s16 = scalar_lea.vmem [#allocation3], %s730_s30 }
  0x42   : > { %804 = vmatpush3.bf16.msra.mxu0 %v801_v30  ;;  %838 = vmatpush3.bf16.msra.mxu1 %v801_v30  ;;  %s431_s27 = sadd.s32 %s732_s26, %s429_s17  ;;  %v574_v0 = vld [vmem:[%s390_s16 + $0x8] sm:$0xff]  ;;  %v576_v1 = vld [vmem:[%s390_s16 + $0x18] sm:$0xff]  ;;  %s736_s22 = sshll.u32 %s597_s14, 7  ;;  %v573_v6 = vld [vmem:[%s390_s16] sm:$0xff] }
  0x43   : > { %806 = vmatprep.subr.bf16.mxu0 %v805_v35  ;;  %831 = vmatprep.subr.bf16.mxu1 %v805_v35  ;;  %s432_s13 = scalar_lea.vmem %s1282_s3, %s431_s27  ;;  %v575_v7 = vld [vmem:[%s390_s16 + $0x10] sm:$0xff]  ;;  %s1225_s26 = scalar_lea.hbm %s1284_s5, %s736_s22 }
  0x44   : > { %v733_v57 = vld [vmem:[%s432_s13] ss:$0 sm:$0xff]  ;;  %s586_s27 = scalar_lea.sflag [#allocation5], %s1165_s6  ;;  %s922_s30 = scalar_lea.vmem %s1220_s0, 512 }
  0x45   : > { %p923_p3 = scmp.ne.s32.totalorder %s1220_s0, %s922_s30  ;;  %p930_p7 = scmp.lt.s32.totalorder %s928_s11, %s922_s30 }
  0x46   : > { %808 = vmatpush3.bf16.msra.mxu0 %v805_v35  ;;  %839 = vmatpush3.bf16.msra.mxu1 %v805_v35 }
  0x47   : > { %810 = vmatprep.subr.bf16.mxu0 %v809_v38  ;;  %832 = vmatprep.subr.bf16.mxu1 %v809_v38  ;;  %p924_p4 = pnand %p923_p3, %p1113_p8  ;;  %p931_p10 = por %p930_p7, %p929_p6 }
  0x49   : > { %p925_p5 = pneg %p924_p4 }
  0x4a   : > { %812 = vmatpush3.bf16.msra.mxu0 %v809_v38  ;;  %840 = vmatpush3.bf16.msra.mxu1 %v809_v38 }
  0x4b   : > { %814 = vmatprep.subr.bf16.mxu0 %v813_v41  ;;  %833 = vmatprep.subr.bf16.mxu1 %v813_v41  ;;  %p932_p11 = pnand %p931_p10, %p925_p5 }
  0x4e   : > { %816 = vmatpush3.bf16.msra.mxu0 %v813_v41  ;;  %841 = vmatpush3.bf16.msra.mxu1 %v813_v41 }
  0x4f   : > { %818 = vmatprep.subr.bf16.mxu0 %v817_v44  ;;  %834 = vmatprep.subr.bf16.mxu1 %v817_v44 }
  0x52   : > { %820 = vmatpush3.bf16.msra.mxu0 %v817_v44  ;;  %842 = vmatpush3.bf16.msra.mxu1 %v817_v44 }
  0x53   : > { %822 = vmatprep.subr.bf16.mxu0 %v821_v47  ;;  %835 = vmatprep.subr.bf16.mxu1 %v821_v47 }
  0x56   : > { %824 = vmatpush3.bf16.msra.mxu0 %v821_v47  ;;  %843 = vmatpush3.bf16.msra.mxu1 %v821_v47 }
  0x57   : > { %826 = vmatprep.subr.bf16.mxu0 %v825_v50  ;;  %836 = vmatprep.subr.bf16.mxu1 %v825_v50 }
  0x5a   : > { %828 = vmatpush3.bf16.msra.mxu0 %v825_v50  ;;  %844 = vmatpush3.bf16.msra.mxu1 %v825_v50 }
  0x5d   : > { %792 = vmatmul.mubr.f32.vlgmr.msra.gmra.mrb[0].mxu0 %v451_v51  ;;  %795 = vmatmul.mubr.f32.vlgmr.msra.gmra.mrb[0].mxu1 %v453_v52 }
  0xb9   : > { %v471_v53 = vpop.permute.xlu1 %470  ;;  %v461_v54 = vpop.permute.xlu0 %460 }
  0xbf   : > { %v476_v55 = vpop.permute.xlu1 %475  ;;  %v466_v56 = vpop.permute.xlu0 %465 }
 0x130   : > { %v793_v58 = vpop.f32.mrb[0].mxu0  ;;  %v796_v59 = vpop.f32.mrb[0].mxu1 }
 0x131   : > { %v550_v60 = vadd.f32 %v793_v58, %v466_v56  ;;  %v560_v61 = vadd.f32 %v796_v59, %v476_v55  ;;  %v544_v62 = vpop.f32.mrb[1].mxu0  ;;  %v554_v63 = vpop.f32.mrb[1].mxu1 }
 0x132   : > { %v545_v2 = vadd.f32 %v544_v62, %v461_v54  ;;  %v555_v3 = vadd.f32 %v554_v63, %v471_v53 }
 0x133   : > { %v570_v4 = vmul.f32 %v733_v57, %v550_v60  ;;  %v572_v5 = vmul.f32 %v733_v57, %v560_v61 }
 0x134   : > { %v569_v8 = vmul.f32 %v733_v57, %v545_v2  ;;  %v571_v9 = vmul.f32 %v733_v57, %v555_v3 }
 0x135   : > { %v578_v10 = vadd.f32 %v574_v0, %v570_v4  ;;  %v580_v11 = vadd.f32 %v576_v1, %v572_v5 }
 0x136   : > { %v577_v12 = vadd.f32 %v573_v6, %v569_v8  ;;  %v579_v13 = vadd.f32 %v575_v7, %v571_v9 }
 0x137   : > { %582 = vst [vmem:[%s425_s15 + $0x8] sm:$0xff] %v578_v10  ;;  %584 = vst [vmem:[%s425_s15 + $0x18] sm:$0xff] %v580_v11 }
 0x138   : > { %581 = vst [vmem:[%s425_s15] sm:$0xff] %v577_v12  ;;  %583 = vst [vmem:[%s425_s15 + $0x10] sm:$0xff] %v579_v13 }
 0x139   : > { %935 = shalt.err (!%p932_p11)
}
 0x13a   : > { %s936_s13 = scalar_lea.hbm %s1225_s26, 512  ;;  %s940_s16 = scalar_lea.hbm %s1284_s5, 2048 }
 0x13b   : > { %p937_p12 = scmp.ne.s32.totalorder %s1225_s26, %s936_s13  ;;  %p941_p1 = scmp.lt.u32.totalorder %s1225_s26, %s1284_s5 }
 0x13c   : > { %p942_p2 = scmp.lt.u32.totalorder %s940_s16, %s936_s13  ;;  %p944_p4 = scmp.lt.u32.totalorder %s936_s13, %s1225_s26 }
 0x13d   : > { %p938_p13 = pnand %p937_p12, %p1113_p8 }
 0x13e   : > { %p943_p3 = por %p942_p2, %p941_p1 }
 0x13f   : > { %p939_p0 = pneg %p938_p13 }
 0x140   : > { %p945_p5 = por %p944_p4, %p943_p3 }
 0x142   : > { %p946_p6 = pnand %p945_p5, %p939_p0 }
 0x144   : > { %949 = shalt.err (!%p946_p6)
}
 0x145   : > { %s1020_s17 = smov 128   ;;  %s1021_s30 = smov 256  }
 0x146   : > { %s1022_s9 = smov 8  }
 0x147   : > { %845 = dma.vmem_to_hbm [thread:$0]  (%p1113_p8), %s1220_s0, 512, %s1225_s26, %s586_s27, %s1020_s17, %s1021_s30, %s1022_s9  }
 0x148 PF: > { %p851_p7 = scmp.ge.s32.totalorder %s1016_s25, 2  ;;  %s615_s10 = sand.u32 1, %s988_s18  }
 0x149   : > { %s616_s11 = scalar_lea.sflag [#allocation5], %s615_s10 }
 0x14a   : > { %p848_p10 = pnand %p851_p7, %p1117_p9 }
 0x14c   : > { %983 = dma.done.wait (!%p848_p10), %s616_s11, 512  }
 0x14d   : > { %985 = vsyncadd (!%p848_p10), %s616_s11, 4294966784  ;;  %s18_s25 = sadd.s32 1, %s1016_s25   ;;  %s1290_s18 = smov %s992_s19 }
 0x14e   : > { %p15_p11 = scmp.ge.s32.totalorder %s18_s25, 6   ;;  %s1291_s19 = smov %s996_s20 }
 0x14f   : > { %s1292_s20 = smov %s1125_s12  ;;  %s1293_s21 = smov %s1008_s23 }
 0x150   : > { %s1294_s22 = smov %s1012_s24  ;;  %s1295_s23 = smov %s1298_s28 }
 0x151   : > { %s1296_s24 = smov %s1302_s29  ;;  %17 = sbr.rel (!%p15_p11) target bundleno = 7 (0x7), region = 167 }
 0x158   :  { %621 = vsyncpa [#allocation5], 1 }
 0x159   :  { %623 = vsyncpa [#allocation5 + $0x1], 1 }

</bundles_post_ra>
